<compile_context>
chip_gen: v7x
topology: tpu7x:2x2x1
jax: 0.10.0
libtpu: 0.0.40
codegen_flags: <defaults>
</compile_context>

<pallas_src>
import numpy as np
import jax
import jax.numpy as jnp
from jax import lax
from jax.experimental import pallas as pl
from jax.experimental.pallas import tpu as pltpu

BN_EPS = 1e-5


# --------------------------------------------------------------------------
# Bilinear 2x upsample factors (align_corners=True, == nn.UpsamplingBilinear2d)
# --------------------------------------------------------------------------
def _upsample_weights(n_in, n_out):
    """align_corners=True bilinear interpolation matrix of shape (n_out, n_in)."""
    w = np.zeros((n_out, n_in), dtype=np.float32)
    if n_in == 1 or n_out == 1:          # guard against divide-by-zero
        w[:, 0] = 1.0
        return w
    scale = (n_in - 1) / (n_out - 1)
    for o in range(n_out):
        src = o * scale
        i0 = min(int(np.floor(src)), n_in - 1)
        i1 = min(i0 + 1, n_in - 1)
        f = src - i0
        w[o, i0] += 1.0 - f
        w[o, i1] += f
    return w


# --------------------------------------------------------------------------
# Fused kernel: attention gate + separable 2x upsample + conv1 + conv2 (NHWC)
# --------------------------------------------------------------------------
def _decoder_block_kernel(x_ref, skip_ref, wh_ref, wwt_ref,
                          wg_ref, sg_ref, tg_ref,
                          ws_ref, ss_ref, ts_ref,
                          wp_ref, bp_ref,
                          w1_ref, s1_ref, t1_ref,
                          w2_ref, s2_ref, t2_ref,
                          o_ref, pcat_ref, py_ref):
    f32, bf16 = jnp.float32, jnp.bfloat16
    h, w, cin = x_ref.shape
    ho, wo, cs = skip_ref.shape
    inter = wg_ref.shape[-1]
    cout = o_ref.shape[-1]
    ccat = cin + cs

    wh = wh_ref[...]            # (Ho, H)  bf16 row-upsample factor
    wwt = wwt_ref[...]          # (W, Wo)  bf16 col-upsample factor (transposed)

    def upsample2x(v, c):
        """Separable align_corners=True 2x bilinear upsample (H,W,c)->(Ho,Wo,c).
        Two small bf16 matmuls (f32 accumulation) + two minor-dim transposes;
        never builds the dense (Ho*Wo, H*W) operator."""
        vr = jnp.dot(wh, v.reshape(h, w * c), preferred_element_type=f32)   # rows
        vt = jnp.transpose(vr.reshape(ho, w, c), (0, 2, 1))                 # (Ho,c,W) f32
        vc = jnp.dot(vt.astype(bf16).reshape(ho * c, w), wwt,
                     preferred_element_type=f32)                            # cols
        return jnp.transpose(vc.reshape(ho, c, wo), (0, 2, 1))              # (Ho,Wo,c)

    # ---- attention gate ---------------------------------------------------
    xl = x_ref[...]                                            # (H, W, Cin) bf16
    # gating-branch 1x1 conv + BN at LOW resolution (exact commutation: the
    # affine map commutes with the bilinear operator since its rows sum to 1)
    g1_low = jnp.dot(xl.reshape(h * w, cin), wg_ref[...],
                     preferred_element_type=f32)
    g1_low = g1_low * sg_ref[...] + tg_ref[...]                # (HW, inter)

    # upsample decoder features and the gating projection together in one pass
    v_low = jnp.concatenate(
        [xl, g1_low.reshape(h, w, inter).astype(bf16)], axis=-1)
    up = upsample2x(v_low, cin + inter).reshape(ho * wo, cin + inter)
    x_up = up[:, :cin]                                         # (HoWo, Cin) f32
    g1 = up[:, cin:]                                           # (HoWo, inter) f32

    skip2 = skip_ref[...].reshape(ho * wo, cs)                 # bf16
    x1 = jnp.dot(skip2, ws_ref[...], preferred_element_type=f32)
    x1 = x1 * ss_ref[...] + ts_ref[...]                        # (HoWo, inter)

    psi = jnp.maximum(g1 + x1, 0.0)
    # psi 1x1 conv (inter -> 1) as a lane reduction, not an N=1 MXU matmul
    att = jax.nn.sigmoid(
        jnp.sum(psi * wp_ref[...], axis=-1, keepdims=True) + bp_ref[...])
    gated = skip2.astype(f32) * att                            # (HoWo, Cs)

    # ---- stage [x_up, gated] into the zero-padded conv1 buffer -------------
    # Only the 1-pixel border is zeroed (interior is fully rewritten below).
    # Zeroing happens every step (not under @pl.when(pid==0)) so the kernel
    # stays correct when the 'parallel' batch axis is split across TensorCores,
    # each of which owns a private scratch buffer.
    def zero_border(ref, c):
        hb, wb = ref.shape[0], ref.shape[1]
        ref[0:1, :, :] = jnp.zeros((1, wb, c), bf16)
        ref[hb - 1:hb, :, :] = jnp.zeros((1, wb, c), bf16)
        ref[:, 0:1, :] = jnp.zeros((hb, 1, c), bf16)
        ref[:, wb - 1:wb, :] = jnp.zeros((hb, 1, c), bf16)

    zero_border(pcat_ref, ccat)
    pcat_ref[1:ho + 1, 1:wo + 1, :] = jnp.concatenate(
        [x_up, gated], axis=-1).reshape(ho, wo, ccat).astype(bf16)

    # ---- conv3x3 + BN + ReLU, twice (conv1 output never leaves VMEM) -------
    def conv3x3_bn_relu(p_ref, w_ref, s, t):
        xp = p_ref[...]                                        # (Ho+2, Wo+2, C) bf16
        c = xp.shape[-1]
        # dx-im2col slab: the three shifted W-slices are materialized once and
        # each conv becomes 3 matmuls (one per dy) instead of 9.
        slab = jnp.concatenate(
            [xp[:, 0:wo, :], xp[:, 1:wo + 1, :], xp[:, 2:wo + 2, :]], axis=-1)
        wr = w_ref[...]                                        # (3, 3*C, Cout)
        acc = jnp.dot(slab[0:ho].reshape(ho * wo, 3 * c), wr[0],
                      preferred_element_type=f32)              # dy=0 initializes acc
        acc = acc + jnp.dot(slab[1:ho + 1].reshape(ho * wo, 3 * c), wr[1],
                            preferred_element_type=f32)
        acc = acc + jnp.dot(slab[2:ho + 2].reshape(ho * wo, 3 * c), wr[2],
                            preferred_element_type=f32)
        return jnp.maximum(acc * s + t, 0.0)                   # (HoWo, Cout) f32

    y1 = conv3x3_bn_relu(pcat_ref, w1_ref, s1_ref[...], t1_ref[...])

    zero_border(py_ref, cout)
    py_ref[1:ho + 1, 1:wo + 1, :] = y1.reshape(ho, wo, cout).astype(bf16)
    y2 = conv3x3_bn_relu(py_ref, w2_ref, s2_ref[...], t2_ref[...])

    o_ref[...] = y2.reshape(ho, wo, cout).astype(o_ref.dtype)


# --------------------------------------------------------------------------
# Parameters (deterministic init, BN folded) and forward glue
# --------------------------------------------------------------------------
def fold_bn(conv_bias, gamma, beta, mean, var, eps=BN_EPS):
    scale = gamma / jnp.sqrt(var + eps)
    shift = beta - mean * scale + conv_bias * scale
    return scale[None, :], shift[None, :]      # (1, C) each


def init_params(key, in_channels, out_channels, skip_channels):
    inter = skip_channels // 2
    cat_channels = in_channels + skip_channels
    ks = jax.random.split(key, 14)

    def w_init(k, shape):
        fan_in = float(np.prod(shape[:-1]))
        return jax.random.normal(k, shape, jnp.float32) / np.sqrt(fan_in)

    def bn_init(k, c):
        k1, k2, k3, k4 = jax.random.split(k, 4)
        gamma = 1.0 + 0.1 * jax.random.normal(k1, (c,), jnp.float32)
        beta = 0.1 * jax.random.normal(k2, (c,), jnp.float32)
        mean = 0.1 * jax.random.normal(k3, (c,), jnp.float32)
        var = jax.random.uniform(k4, (c,), jnp.float32, minval=0.5, maxval=1.5)
        return gamma, beta, mean, var

    p = {}
    # AttentionGate: W_skip (skip->inter), W_gating (in->inter), psi (inter->1)
    p['ws'] = w_init(ks[0], (skip_channels, inter))
    bs = 0.1 * jax.random.normal(ks[1], (inter,), jnp.float32)
    p['ss'], p['ts'] = fold_bn(bs, *bn_init(ks[2], inter))
    p['wg'] = w_init(ks[3], (in_channels, inter))
    bg = 0.1 * jax.random.normal(ks[4], (inter,), jnp.float32)
    p['sg'], p['tg'] = fold_bn(bg, *bn_init(ks[5], inter))
    p['wp'] = w_init(ks[6], (inter, 1)).T                  # stored as (1, inter) row
    p['bp'] = 0.1 * jax.random.normal(ks[7], (1, 1), jnp.float32)

    # TODO(synk): the reference __init__ gives conv1 only `in_channels` inputs when
    # use_attention=True, which contradicts torch.cat([x, skip], dim=1) in forward();
    # we size conv1 for the concatenated tensor (in_channels + skip_channels) so it runs.
    p['w1'] = w_init(ks[8], (3, 3, cat_channels, out_channels))
    b1 = 0.1 * jax.random.normal(ks[9], (out_channels,), jnp.float32)
    p['s1'], p['t1'] = fold_bn(b1, *bn_init(ks[10], out_channels))
    p['w2'] = w_init(ks[11], (3, 3, out_channels, out_channels))
    b2 = 0.1 * jax.random.normal(ks[12], (out_channels,), jnp.float32)
    p['s2'], p['t2'] = fold_bn(b2, *bn_init(ks[13], out_channels))
    return p


def decoder_block_forward(params, x_nchw, skip_nchw):
    p = params
    n, cin, h, w = x_nchw.shape
    _, cs, ho, wo = skip_nchw.shape
    assert (ho, wo) == (2 * h, 2 * w)
    cout = p['w1'].shape[-1]
    ccat = cin + cs
    assert p['w1'].shape[2] == ccat
    bf16 = jnp.bfloat16

    # single NCHW -> NHWC transpose at the block boundary; bf16 activations so
    # the MXU sees native operands and input HBM traffic is halved
    x_nhwc = jnp.transpose(x_nchw, (0, 2, 3, 1)).astype(bf16)
    skip_nhwc = jnp.transpose(skip_nchw, (0, 2, 3, 1)).astype(bf16)

    # separable bilinear factors (never build the dense (Ho*Wo, H*W) operator)
    wh = jnp.asarray(_upsample_weights(h, ho)).astype(bf16)       # (Ho, H)
    wwt = jnp.asarray(_upsample_weights(w, wo).T).astype(bf16)    # (W, Wo)

    wg = p['wg'].astype(bf16)
    ws = p['ws'].astype(bf16)
    # conv weights reshaped (dy, dx*Cin, Cout) to match the dx-im2col slab order
    w1r = p['w1'].reshape(3, 3 * ccat, cout).astype(bf16)
    w2r = p['w2'].reshape(3, 3 * cout, cout).astype(bf16)

    cparams = pltpu.CompilerParams(
        dimension_semantics=("parallel",),
        # kept <= ~48 MiB so the same kernel is safe on v7x (64 MiB physical);
        # v5e/v6e can raise this once production row/Cout tiling is added.
        vmem_limit_bytes=48 * 1024 * 1024)

    def full(a):
        return pl.BlockSpec(a.shape, lambda i, _nd=a.ndim: (0,) * _nd)

    y = pl.pallas_call(
        _decoder_block_kernel,
        out_shape=jax.ShapeDtypeStruct((n, ho, wo, cout), jnp.float32),
        grid=(n,),
        in_specs=[
            pl.BlockSpec((None, h, w, cin), lambda i: (i, 0, 0, 0)),
            pl.BlockSpec((None, ho, wo, cs), lambda i: (i, 0, 0, 0)),
            full(wh), full(wwt),
            full(wg), full(p['sg']), full(p['tg']),
            full(ws), full(p['ss']), full(p['ts']),
            full(p['wp']), full(p['bp']),
            full(w1r), full(p['s1']), full(p['t1']),
            full(w2r), full(p['s2']), full(p['t2']),
        ],
        out_specs=pl.BlockSpec((None, ho, wo, cout), lambda i: (i, 0, 0, 0)),
        scratch_shapes=[
            pltpu.VMEM((ho + 2, wo + 2, ccat), bf16),   # padded [x_up | gated]
            pltpu.VMEM((ho + 2, wo + 2, cout), bf16),   # padded conv1 output
        ],
        compiler_params=cparams,
    )(x_nhwc, skip_nhwc, wh, wwt, wg, p['sg'], p['tg'],
      ws, p['ss'], p['ts'], p['wp'], p['bp'],
      w1r, p['s1'], p['t1'], w2r, p['s2'], p['t2'])

    return jnp.transpose(y, (0, 3, 1, 2))                  # back to NCHW


# --------------------------------------------------------------------------
# Pure-JAX reference (sanity check). Uses the original PyTorch op order
# (upsample first, gating conv at HIGH resolution) but mirrors the kernel's
# bf16-operand / f32-accumulate matmul policy so the comparison isolates
# kernel bugs rather than dtype policy.
# --------------------------------------------------------------------------
def reference_forward(params, x_nchw, skip_nchw):
    p = params
    bf16, f32 = jnp.bfloat16, jnp.float32
    n, c, h, w = x_nchw.shape
    wh = jnp.asarray(_upsample_weights(h, 2 * h)).astype(bf16)
    ww = jnp.asarray(_upsample_weights(w, 2 * w)).astype(bf16)
    xh = jnp.transpose(x_nchw, (0, 2, 3, 1)).astype(bf16)      # NHWC
    sk = jnp.transpose(skip_nchw, (0, 2, 3, 1)).astype(bf16)

    xu = jnp.einsum('oh,nhwc->nowc', wh, xh, preferred_element_type=f32)
    xu = jnp.einsum('pw,nowc->nopc', ww, xu.astype(bf16), preferred_element_type=f32)

    x1 = jnp.einsum('nhwc,cd->nhwd', sk, p['ws'].astype(bf16),
                    preferred_element_type=f32) * p['ss'] + p['ts']
    g1 = jnp.einsum('nhwc,cd->nhwd', xu.astype(bf16), p['wg'].astype(bf16),
                    preferred_element_type=f32) * p['sg'] + p['tg']
    psi = jax.nn.relu(g1 + x1)
    att = jax.nn.sigmoid(
        jnp.einsum('nhwd,d->nhw', psi, p['wp'][0])[..., None] + p['bp'][0, 0])
    gated = sk.astype(f32) * att

    xcat = jnp.concatenate([xu, gated], axis=-1).astype(bf16)

    def conv_bn_relu(xb, wk, s, t):
        dn = lax.conv_dimension_numbers(xb.shape, wk.shape, ('NHWC', 'HWIO', 'NHWC'))
        y = lax.conv_general_dilated(xb, wk.astype(bf16), (1, 1), 'SAME',
                                     dimension_numbers=dn,
                                     preferred_element_type=f32)
        return jax.nn.relu(y * s + t)

    y = conv_bn_relu(xcat, p['w1'], p['s1'], p['t1'])
    y = conv_bn_relu(y.astype(bf16), p['w2'], p['s2'], p['t2'])
    return jnp.transpose(y, (0, 3, 1, 2))


if __name__ == "__main__":
    key = jax.random.PRNGKey(0)
    in_channels, out_channels, skip_channels = 4, 8, 4
    N, H, W = 2, 8, 8

    k_x, k_s, k_p = jax.random.split(key, 3)
    x = jax.random.normal(k_x, (N, in_channels, H, W), jnp.float32)
    skip = jax.random.normal(k_s, (N, skip_channels, 2 * H, 2 * W), jnp.float32)
    params = init_params(k_p, in_channels, out_channels, skip_channels)

    out = jax.block_until_ready(decoder_block_forward(params, x, skip))
    assert out.shape == (N, out_channels, 2 * H, 2 * W)

    ref = reference_forward(params, x, skip)
    max_err = float(jnp.max(jnp.abs(out - ref)))
    # bf16 operands end-to-end (incl. gate branch + upsample) with slightly
    # different-but-equivalent op order in the kernel -> 2e-2 tolerance.
    assert jnp.allclose(out, ref, rtol=2e-2, atol=2e-2), f"max_err={max_err}"

    print("KERNEL_OK")
</pallas_src>

<mosaic_0001>
module attributes {stable_mosaic.version = 11 : i64} {
  func.func @_decoder_block_kernel(%arg0: i32, %arg1: memref<1x8x8x4xbf16, #tpu.memory_space<vmem>>, %arg2: memref<1x16x16x4xbf16, #tpu.memory_space<vmem>>, %arg3: memref<16x8xbf16, #tpu.memory_space<vmem>>, %arg4: memref<8x16xbf16, #tpu.memory_space<vmem>>, %arg5: memref<4x2xbf16, #tpu.memory_space<vmem>>, %arg6: memref<1x2xf32, #tpu.memory_space<vmem>>, %arg7: memref<1x2xf32, #tpu.memory_space<vmem>>, %arg8: memref<4x2xbf16, #tpu.memory_space<vmem>>, %arg9: memref<1x2xf32, #tpu.memory_space<vmem>>, %arg10: memref<1x2xf32, #tpu.memory_space<vmem>>, %arg11: memref<1x2xf32, #tpu.memory_space<vmem>>, %arg12: memref<1x1xf32, #tpu.memory_space<vmem>>, %arg13: memref<3x24x8xbf16, #tpu.memory_space<vmem>>, %arg14: memref<1x8xf32, #tpu.memory_space<vmem>>, %arg15: memref<1x8xf32, #tpu.memory_space<vmem>>, %arg16: memref<3x24x8xbf16, #tpu.memory_space<vmem>>, %arg17: memref<1x8xf32, #tpu.memory_space<vmem>>, %arg18: memref<1x8xf32, #tpu.memory_space<vmem>>, %arg19: memref<1x16x16x8xf32, #tpu.memory_space<vmem>>, %arg20: memref<18x18x8xbf16, #tpu.memory_space<vmem>>, %arg21: memref<18x18x8xbf16, #tpu.memory_space<vmem>>) attributes {dimension_semantics = [#tpu.dimension_semantics<parallel>], iteration_bounds = array<i64: 2>, scalar_prefetch = 0 : i64, scratch_operands = 2 : i64, tpu.core_type = #tpu.core_type<tc>, window_params = [{transform_indices = @transform_0, window_bounds = array<i64: 1, 8, 8, 4>}, {transform_indices = @transform_1, window_bounds = array<i64: 1, 16, 16, 4>}, {pipeline_mode = #tpu.pipeline_mode<synchronous>, transform_indices = @transform_2, window_bounds = array<i64: 16, 8>}, {pipeline_mode = #tpu.pipeline_mode<synchronous>, transform_indices = @transform_3, window_bounds = array<i64: 8, 16>}, {pipeline_mode = #tpu.pipeline_mode<synchronous>, transform_indices = @transform_4, window_bounds = array<i64: 4, 2>}, {pipeline_mode = #tpu.pipeline_mode<synchronous>, transform_indices = @transform_5, window_bounds = array<i64: 1, 2>}, {pipeline_mode = #tpu.pipeline_mode<synchronous>, transform_indices = @transform_6, window_bounds = array<i64: 1, 2>}, {pipeline_mode = #tpu.pipeline_mode<synchronous>, transform_indices = @transform_7, window_bounds = array<i64: 4, 2>}, {pipeline_mode = #tpu.pipeline_mode<synchronous>, transform_indices = @transform_8, window_bounds = array<i64: 1, 2>}, {pipeline_mode = #tpu.pipeline_mode<synchronous>, transform_indices = @transform_9, window_bounds = array<i64: 1, 2>}, {pipeline_mode = #tpu.pipeline_mode<synchronous>, transform_indices = @transform_10, window_bounds = array<i64: 1, 2>}, {pipeline_mode = #tpu.pipeline_mode<synchronous>, transform_indices = @transform_11, window_bounds = array<i64: 1, 1>}, {pipeline_mode = #tpu.pipeline_mode<synchronous>, transform_indices = @transform_12, window_bounds = array<i64: 3, 24, 8>}, {pipeline_mode = #tpu.pipeline_mode<synchronous>, transform_indices = @transform_13, window_bounds = array<i64: 1, 8>}, {pipeline_mode = #tpu.pipeline_mode<synchronous>, transform_indices = @transform_14, window_bounds = array<i64: 1, 8>}, {pipeline_mode = #tpu.pipeline_mode<synchronous>, transform_indices = @transform_15, window_bounds = array<i64: 3, 24, 8>}, {pipeline_mode = #tpu.pipeline_mode<synchronous>, transform_indices = @transform_16, window_bounds = array<i64: 1, 8>}, {pipeline_mode = #tpu.pipeline_mode<synchronous>, transform_indices = @transform_17, window_bounds = array<i64: 1, 8>}, {transform_indices = @transform_18, window_bounds = array<i64: 1, 16, 16, 8>}]} {
    %c0 = arith.constant 0 : index
    %c0_0 = arith.constant 0 : index
    %0 = vector.load %arg3[%c0, %c0_0] : memref<16x8xbf16, #tpu.memory_space<vmem>>, vector<16x8xbf16>
    %c0_1 = arith.constant 0 : index
    %c0_2 = arith.constant 0 : index
    %1 = vector.load %arg4[%c0_1, %c0_2] : memref<8x16xbf16, #tpu.memory_space<vmem>>, vector<8x16xbf16>
    %c0_3 = arith.constant 0 : index
    %c0_4 = arith.constant 0 : index
    %c0_5 = arith.constant 0 : index
    %c0_6 = arith.constant 0 : index
    %2 = vector.load %arg1[%c0_3, %c0_4, %c0_5, %c0_6] : memref<1x8x8x4xbf16, #tpu.memory_space<vmem>>, vector<1x8x8x4xbf16>
    %3 = vector.shape_cast %2 : vector<1x8x8x4xbf16> to vector<8x8x4xbf16>
    %4 = vector.shape_cast %3 : vector<8x8x4xbf16> to vector<64x4xbf16>
    %c0_7 = arith.constant 0 : index
    %c0_8 = arith.constant 0 : index
    %5 = vector.load %arg5[%c0_7, %c0_8] : memref<4x2xbf16, #tpu.memory_space<vmem>>, vector<4x2xbf16>
    %cst = arith.constant dense<0.000000e+00> : vector<64x2xf32>
    %6 = tpu.matmul %4, %5, %cst {dimension_numbers = #tpu.dot_dimension_numbers<[1], [0], [0], [1], [0, 0, 1, 1], [], []>} : vector<64x4xbf16>, vector<4x2xbf16>, vector<64x2xf32> -> vector<64x2xf32>
    %c0_9 = arith.constant 0 : index
    %c0_10 = arith.constant 0 : index
    %7 = vector.load %arg6[%c0_9, %c0_10] : memref<1x2xf32, #tpu.memory_space<vmem>>, vector<1x2xf32>
    %8 = vector.broadcast %7 : vector<1x2xf32> to vector<64x2xf32>
    %9 = arith.mulf %6, %8 : vector<64x2xf32>
    %c0_11 = arith.constant 0 : index
    %c0_12 = arith.constant 0 : index
    %10 = vector.load %arg7[%c0_11, %c0_12] : memref<1x2xf32, #tpu.memory_space<vmem>>, vector<1x2xf32>
    %11 = vector.broadcast %10 : vector<1x2xf32> to vector<64x2xf32>
    %12 = arith.addf %9, %11 : vector<64x2xf32>
    %13 = vector.shape_cast %12 : vector<64x2xf32> to vector<8x8x2xf32>
    %14 = arith.truncf %13 : vector<8x8x2xf32> to vector<8x8x2xbf16>
    %15 = tpu.concatenate %3, %14 in 2 : vector<8x8x4xbf16>, vector<8x8x2xbf16> -> vector<8x8x6xbf16>
    %16 = vector.shape_cast %15 : vector<8x8x6xbf16> to vector<8x48xbf16>
    %cst_13 = arith.constant dense<0.000000e+00> : vector<16x48xf32>
    %17 = tpu.matmul %0, %16, %cst_13 {dimension_numbers = #tpu.dot_dimension_numbers<[1], [0], [0], [1], [0, 0, 1, 1], [], []>} : vector<16x8xbf16>, vector<8x48xbf16>, vector<16x48xf32> -> vector<16x48xf32>
    %18 = vector.shape_cast %17 : vector<16x48xf32> to vector<16x8x6xf32>
    %19 = tpu.transpose %18, [0, 2, 1] : vector<16x8x6xf32> -> vector<16x6x8xf32>
    %20 = arith.truncf %19 : vector<16x6x8xf32> to vector<16x6x8xbf16>
    %21 = vector.shape_cast %20 : vector<16x6x8xbf16> to vector<96x8xbf16>
    %cst_14 = arith.constant dense<0.000000e+00> : vector<96x16xf32>
    %22 = tpu.matmul %21, %1, %cst_14 {dimension_numbers = #tpu.dot_dimension_numbers<[1], [0], [0], [1], [0, 0, 1, 1], [], []>} : vector<96x8xbf16>, vector<8x16xbf16>, vector<96x16xf32> -> vector<96x16xf32>
    %23 = vector.shape_cast %22 : vector<96x16xf32> to vector<16x6x16xf32>
    %24 = tpu.transpose %23, [0, 2, 1] : vector<16x6x16xf32> -> vector<16x16x6xf32>
    %25 = vector.shape_cast %24 : vector<16x16x6xf32> to vector<256x6xf32>
    %26 = vector.extract_strided_slice %25 {offsets = [0, 0], sizes = [256, 4], strides = [1, 1]} : vector<256x6xf32> to vector<256x4xf32>
    %27 = vector.extract_strided_slice %25 {offsets = [0, 4], sizes = [256, 2], strides = [1, 1]} : vector<256x6xf32> to vector<256x2xf32>
    %c0_15 = arith.constant 0 : index
    %c0_16 = arith.constant 0 : index
    %c0_17 = arith.constant 0 : index
    %c0_18 = arith.constant 0 : index
    %28 = vector.load %arg2[%c0_15, %c0_16, %c0_17, %c0_18] : memref<1x16x16x4xbf16, #tpu.memory_space<vmem>>, vector<1x16x16x4xbf16>
    %29 = vector.shape_cast %28 : vector<1x16x16x4xbf16> to vector<16x16x4xbf16>
    %30 = vector.shape_cast %29 : vector<16x16x4xbf16> to vector<256x4xbf16>
    %c0_19 = arith.constant 0 : index
    %c0_20 = arith.constant 0 : index
    %31 = vector.load %arg8[%c0_19, %c0_20] : memref<4x2xbf16, #tpu.memory_space<vmem>>, vector<4x2xbf16>
    %cst_21 = arith.constant dense<0.000000e+00> : vector<256x2xf32>
    %32 = tpu.matmul %30, %31, %cst_21 {dimension_numbers = #tpu.dot_dimension_numbers<[1], [0], [0], [1], [0, 0, 1, 1], [], []>} : vector<256x4xbf16>, vector<4x2xbf16>, vector<256x2xf32> -> vector<256x2xf32>
    %c0_22 = arith.constant 0 : index
    %c0_23 = arith.constant 0 : index
    %33 = vector.load %arg9[%c0_22, %c0_23] : memref<1x2xf32, #tpu.memory_space<vmem>>, vector<1x2xf32>
    %34 = vector.broadcast %33 : vector<1x2xf32> to vector<256x2xf32>
    %35 = arith.mulf %32, %34 : vector<256x2xf32>
    %c0_24 = arith.constant 0 : index
    %c0_25 = arith.constant 0 : index
    %36 = vector.load %arg10[%c0_24, %c0_25] : memref<1x2xf32, #tpu.memory_space<vmem>>, vector<1x2xf32>
    %37 = vector.broadcast %36 : vector<1x2xf32> to vector<256x2xf32>
    %38 = arith.addf %35, %37 : vector<256x2xf32>
    %39 = arith.addf %27, %38 : vector<256x2xf32>
    %cst_26 = arith.constant 0.000000e+00 : f32
    %40 = vector.broadcast %cst_26 : f32 to vector<256x2xf32>
    %41 = arith.maximumf %39, %40 : vector<256x2xf32>
    %c0_27 = arith.constant 0 : index
    %c0_28 = arith.constant 0 : index
    %42 = vector.load %arg11[%c0_27, %c0_28] : memref<1x2xf32, #tpu.memory_space<vmem>>, vector<1x2xf32>
    %43 = vector.broadcast %42 : vector<1x2xf32> to vector<256x2xf32>
    %44 = arith.mulf %41, %43 : vector<256x2xf32>
    %cst_29 = arith.constant dense<0.000000e+00> : vector<256xf32>
    %45 = vector.multi_reduction <add>, %44, %cst_29 [1] : vector<256x2xf32> to vector<256xf32>
    %46 = vector.shape_cast %45 : vector<256xf32> to vector<256x1xf32>
    %c0_30 = arith.constant 0 : index
    %c0_31 = arith.constant 0 : index
    %47 = vector.load %arg12[%c0_30, %c0_31] : memref<1x1xf32, #tpu.memory_space<vmem>>, vector<1x1xf32>
    %48 = vector.broadcast %47 : vector<1x1xf32> to vector<256x1xf32>
    %49 = arith.addf %46, %48 : vector<256x1xf32>
    %50 = arith.negf %49 : vector<256x1xf32>
    %51 = math.exp %50 : vector<256x1xf32>
    %cst_32 = arith.constant 1.000000e+00 : f32
    %52 = vector.broadcast %cst_32 : f32 to vector<256x1xf32>
    %53 = arith.addf %52, %51 : vector<256x1xf32>
    %54 = arith.divf %52, %53 : vector<256x1xf32>
    %55 = arith.extf %30 : vector<256x4xbf16> to vector<256x4xf32>
    %56 = vector.broadcast %54 : vector<256x1xf32> to vector<256x4xf32>
    %57 = arith.mulf %55, %56 : vector<256x4xf32>
    %cst_33 = arith.constant 0.000000e+00 : bf16
    %58 = vector.broadcast %cst_33 : bf16 to vector<1x18x8xbf16>
    %c0_34 = arith.constant 0 : index
    %c0_35 = arith.constant 0 : index
    %c0_36 = arith.constant 0 : index
    %59 = vector.load %arg20[%c0_34, %c0_35, %c0_36] : memref<18x18x8xbf16, #tpu.memory_space<vmem>>, vector<1x18x8xbf16>
    tpu.vector_store %arg20[%c0_34, %c0_35, %c0_36], %58 {strides = array<i32>} : memref<18x18x8xbf16, #tpu.memory_space<vmem>>, vector<1x18x8xbf16>,
    %cst_37 = arith.constant 0.000000e+00 : bf16
    %60 = vector.broadcast %cst_37 : bf16 to vector<1x18x8xbf16>
    %c17 = arith.constant 17 : index
    %c0_38 = arith.constant 0 : index
    %c0_39 = arith.constant 0 : index
    %61 = vector.load %arg20[%c17, %c0_38, %c0_39] : memref<18x18x8xbf16, #tpu.memory_space<vmem>>, vector<1x18x8xbf16>
    tpu.vector_store %arg20[%c17, %c0_38, %c0_39], %60 {strides = array<i32>} : memref<18x18x8xbf16, #tpu.memory_space<vmem>>, vector<1x18x8xbf16>,
    %cst_40 = arith.constant 0.000000e+00 : bf16
    %62 = vector.broadcast %cst_40 : bf16 to vector<18x1x8xbf16>
    %c0_41 = arith.constant 0 : index
    %c0_42 = arith.constant 0 : index
    %c0_43 = arith.constant 0 : index
    %63 = vector.load %arg20[%c0_41, %c0_42, %c0_43] : memref<18x18x8xbf16, #tpu.memory_space<vmem>>, vector<18x1x8xbf16>
    tpu.vector_store %arg20[%c0_41, %c0_42, %c0_43], %62 {strides = array<i32>} : memref<18x18x8xbf16, #tpu.memory_space<vmem>>, vector<18x1x8xbf16>,
    %cst_44 = arith.constant 0.000000e+00 : bf16
    %64 = vector.broadcast %cst_44 : bf16 to vector<18x1x8xbf16>
    %c0_45 = arith.constant 0 : index
    %c17_46 = arith.constant 17 : index
    %c0_47 = arith.constant 0 : index
    %65 = vector.load %arg20[%c0_45, %c17_46, %c0_47] : memref<18x18x8xbf16, #tpu.memory_space<vmem>>, vector<18x1x8xbf16>
    tpu.vector_store %arg20[%c0_45, %c17_46, %c0_47], %64 {strides = array<i32>} : memref<18x18x8xbf16, #tpu.memory_space<vmem>>, vector<18x1x8xbf16>,
    %66 = tpu.concatenate %26, %57 in 1 : vector<256x4xf32>, vector<256x4xf32> -> vector<256x8xf32>
    %67 = vector.shape_cast %66 : vector<256x8xf32> to vector<16x16x8xf32>
    %68 = arith.truncf %67 : vector<16x16x8xf32> to vector<16x16x8xbf16>
    %c1 = arith.constant 1 : index
    %c1_48 = arith.constant 1 : index
    %c0_49 = arith.constant 0 : index
    %69 = vector.load %arg20[%c1, %c1_48, %c0_49] : memref<18x18x8xbf16, #tpu.memory_space<vmem>>, vector<16x16x8xbf16>
    tpu.vector_store %arg20[%c1, %c1_48, %c0_49], %68 {strides = array<i32>} : memref<18x18x8xbf16, #tpu.memory_space<vmem>>, vector<16x16x8xbf16>,
    %c0_50 = arith.constant 0 : index
    %c0_51 = arith.constant 0 : index
    %70 = vector.load %arg14[%c0_50, %c0_51] : memref<1x8xf32, #tpu.memory_space<vmem>>, vector<1x8xf32>
    %c0_52 = arith.constant 0 : index
    %c0_53 = arith.constant 0 : index
    %71 = vector.load %arg15[%c0_52, %c0_53] : memref<1x8xf32, #tpu.memory_space<vmem>>, vector<1x8xf32>
    %c0_54 = arith.constant 0 : index
    %c0_55 = arith.constant 0 : index
    %c0_56 = arith.constant 0 : index
    %72 = vector.load %arg20[%c0_54, %c0_55, %c0_56] : memref<18x18x8xbf16, #tpu.memory_space<vmem>>, vector<18x18x8xbf16>
    %73 = vector.extract_strided_slice %72 {offsets = [0, 0, 0], sizes = [18, 16, 8], strides = [1, 1, 1]} : vector<18x18x8xbf16> to vector<18x16x8xbf16>
    %74 = vector.extract_strided_slice %72 {offsets = [0, 1, 0], sizes = [18, 16, 8], strides = [1, 1, 1]} : vector<18x18x8xbf16> to vector<18x16x8xbf16>
    %75 = vector.extract_strided_slice %72 {offsets = [0, 2, 0], sizes = [18, 16, 8], strides = [1, 1, 1]} : vector<18x18x8xbf16> to vector<18x16x8xbf16>
    %76 = tpu.concatenate %73, %74, %75 in 2 : vector<18x16x8xbf16>, vector<18x16x8xbf16>, vector<18x16x8xbf16> -> vector<18x16x24xbf16>
    %c0_57 = arith.constant 0 : index
    %c0_58 = arith.constant 0 : index
    %c0_59 = arith.constant 0 : index
    %77 = vector.load %arg13[%c0_57, %c0_58, %c0_59] : memref<3x24x8xbf16, #tpu.memory_space<vmem>>, vector<3x24x8xbf16>
    %78 = vector.extract_strided_slice %76 {offsets = [0, 0, 0], sizes = [16, 16, 24], strides = [1, 1, 1]} : vector<18x16x24xbf16> to vector<16x16x24xbf16>
    %79 = vector.shape_cast %78 : vector<16x16x24xbf16> to vector<256x24xbf16>
    %80 = vector.extract_strided_slice %77 {offsets = [0, 0, 0], sizes = [1, 24, 8], strides = [1, 1, 1]} : vector<3x24x8xbf16> to vector<1x24x8xbf16>
    %81 = vector.shape_cast %80 : vector<1x24x8xbf16> to vector<24x8xbf16>
    %cst_60 = arith.constant dense<0.000000e+00> : vector<256x8xf32>
    %82 = tpu.matmul %79, %81, %cst_60 {dimension_numbers = #tpu.dot_dimension_numbers<[1], [0], [0], [1], [0, 0, 1, 1], [], []>} : vector<256x24xbf16>, vector<24x8xbf16>, vector<256x8xf32> -> vector<256x8xf32>
    %83 = vector.extract_strided_slice %76 {offsets = [1, 0, 0], sizes = [16, 16, 24], strides = [1, 1, 1]} : vector<18x16x24xbf16> to vector<16x16x24xbf16>
    %84 = vector.shape_cast %83 : vector<16x16x24xbf16> to vector<256x24xbf16>
    %85 = vector.extract_strided_slice %77 {offsets = [1, 0, 0], sizes = [1, 24, 8], strides = [1, 1, 1]} : vector<3x24x8xbf16> to vector<1x24x8xbf16>
    %86 = vector.shape_cast %85 : vector<1x24x8xbf16> to vector<24x8xbf16>
    %cst_61 = arith.constant dense<0.000000e+00> : vector<256x8xf32>
    %87 = tpu.matmul %84, %86, %cst_61 {dimension_numbers = #tpu.dot_dimension_numbers<[1], [0], [0], [1], [0, 0, 1, 1], [], []>} : vector<256x24xbf16>, vector<24x8xbf16>, vector<256x8xf32> -> vector<256x8xf32>
    %88 = arith.addf %82, %87 : vector<256x8xf32>
    %89 = vector.extract_strided_slice %76 {offsets = [2, 0, 0], sizes = [16, 16, 24], strides = [1, 1, 1]} : vector<18x16x24xbf16> to vector<16x16x24xbf16>
    %90 = vector.shape_cast %89 : vector<16x16x24xbf16> to vector<256x24xbf16>
    %91 = vector.extract_strided_slice %77 {offsets = [2, 0, 0], sizes = [1, 24, 8], strides = [1, 1, 1]} : vector<3x24x8xbf16> to vector<1x24x8xbf16>
    %92 = vector.shape_cast %91 : vector<1x24x8xbf16> to vector<24x8xbf16>
    %cst_62 = arith.constant dense<0.000000e+00> : vector<256x8xf32>
    %93 = tpu.matmul %90, %92, %cst_62 {dimension_numbers = #tpu.dot_dimension_numbers<[1], [0], [0], [1], [0, 0, 1, 1], [], []>} : vector<256x24xbf16>, vector<24x8xbf16>, vector<256x8xf32> -> vector<256x8xf32>
    %94 = arith.addf %88, %93 : vector<256x8xf32>
    %95 = vector.broadcast %70 : vector<1x8xf32> to vector<256x8xf32>
    %96 = arith.mulf %94, %95 : vector<256x8xf32>
    %97 = vector.broadcast %71 : vector<1x8xf32> to vector<256x8xf32>
    %98 = arith.addf %96, %97 : vector<256x8xf32>
    %cst_63 = arith.constant 0.000000e+00 : f32
    %99 = vector.broadcast %cst_63 : f32 to vector<256x8xf32>
    %100 = arith.maximumf %98, %99 : vector<256x8xf32>
    %cst_64 = arith.constant 0.000000e+00 : bf16
    %101 = vector.broadcast %cst_64 : bf16 to vector<1x18x8xbf16>
    %c0_65 = arith.constant 0 : index
    %c0_66 = arith.constant 0 : index
    %c0_67 = arith.constant 0 : index
    %102 = vector.load %arg21[%c0_65, %c0_66, %c0_67] : memref<18x18x8xbf16, #tpu.memory_space<vmem>>, vector<1x18x8xbf16>
    tpu.vector_store %arg21[%c0_65, %c0_66, %c0_67], %101 {strides = array<i32>} : memref<18x18x8xbf16, #tpu.memory_space<vmem>>, vector<1x18x8xbf16>,
    %cst_68 = arith.constant 0.000000e+00 : bf16
    %103 = vector.broadcast %cst_68 : bf16 to vector<1x18x8xbf16>
    %c17_69 = arith.constant 17 : index
    %c0_70 = arith.constant 0 : index
    %c0_71 = arith.constant 0 : index
    %104 = vector.load %arg21[%c17_69, %c0_70, %c0_71] : memref<18x18x8xbf16, #tpu.memory_space<vmem>>, vector<1x18x8xbf16>
    tpu.vector_store %arg21[%c17_69, %c0_70, %c0_71], %103 {strides = array<i32>} : memref<18x18x8xbf16, #tpu.memory_space<vmem>>, vector<1x18x8xbf16>,
    %cst_72 = arith.constant 0.000000e+00 : bf16
    %105 = vector.broadcast %cst_72 : bf16 to vector<18x1x8xbf16>
    %c0_73 = arith.constant 0 : index
    %c0_74 = arith.constant 0 : index
    %c0_75 = arith.constant 0 : index
    %106 = vector.load %arg21[%c0_73, %c0_74, %c0_75] : memref<18x18x8xbf16, #tpu.memory_space<vmem>>, vector<18x1x8xbf16>
    tpu.vector_store %arg21[%c0_73, %c0_74, %c0_75], %105 {strides = array<i32>} : memref<18x18x8xbf16, #tpu.memory_space<vmem>>, vector<18x1x8xbf16>,
    %cst_76 = arith.constant 0.000000e+00 : bf16
    %107 = vector.broadcast %cst_76 : bf16 to vector<18x1x8xbf16>
    %c0_77 = arith.constant 0 : index
    %c17_78 = arith.constant 17 : index
    %c0_79 = arith.constant 0 : index
    %108 = vector.load %arg21[%c0_77, %c17_78, %c0_79] : memref<18x18x8xbf16, #tpu.memory_space<vmem>>, vector<18x1x8xbf16>
    tpu.vector_store %arg21[%c0_77, %c17_78, %c0_79], %107 {strides = array<i32>} : memref<18x18x8xbf16, #tpu.memory_space<vmem>>, vector<18x1x8xbf16>,
    %109 = vector.shape_cast %100 : vector<256x8xf32> to vector<16x16x8xf32>
    %110 = arith.truncf %109 : vector<16x16x8xf32> to vector<16x16x8xbf16>
    %c1_80 = arith.constant 1 : index
    %c1_81 = arith.constant 1 : index
    %c0_82 = arith.constant 0 : index
    %111 = vector.load %arg21[%c1_80, %c1_81, %c0_82] : memref<18x18x8xbf16, #tpu.memory_space<vmem>>, vector<16x16x8xbf16>
    tpu.vector_store %arg21[%c1_80, %c1_81, %c0_82], %110 {strides = array<i32>} : memref<18x18x8xbf16, #tpu.memory_space<vmem>>, vector<16x16x8xbf16>,
    %c0_83 = arith.constant 0 : index
    %c0_84 = arith.constant 0 : index
    %112 = vector.load %arg17[%c0_83, %c0_84] : memref<1x8xf32, #tpu.memory_space<vmem>>, vector<1x8xf32>
    %c0_85 = arith.constant 0 : index
    %c0_86 = arith.constant 0 : index
    %113 = vector.load %arg18[%c0_85, %c0_86] : memref<1x8xf32, #tpu.memory_space<vmem>>, vector<1x8xf32>
    %c0_87 = arith.constant 0 : index
    %c0_88 = arith.constant 0 : index
    %c0_89 = arith.constant 0 : index
    %114 = vector.load %arg21[%c0_87, %c0_88, %c0_89] : memref<18x18x8xbf16, #tpu.memory_space<vmem>>, vector<18x18x8xbf16>
    %115 = vector.extract_strided_slice %114 {offsets = [0, 0, 0], sizes = [18, 16, 8], strides = [1, 1, 1]} : vector<18x18x8xbf16> to vector<18x16x8xbf16>
    %116 = vector.extract_strided_slice %114 {offsets = [0, 1, 0], sizes = [18, 16, 8], strides = [1, 1, 1]} : vector<18x18x8xbf16> to vector<18x16x8xbf16>
    %117 = vector.extract_strided_slice %114 {offsets = [0, 2, 0], sizes = [18, 16, 8], strides = [1, 1, 1]} : vector<18x18x8xbf16> to vector<18x16x8xbf16>
    %118 = tpu.concatenate %115, %116, %117 in 2 : vector<18x16x8xbf16>, vector<18x16x8xbf16>, vector<18x16x8xbf16> -> vector<18x16x24xbf16>
    %c0_90 = arith.constant 0 : index
    %c0_91 = arith.constant 0 : index
    %c0_92 = arith.constant 0 : index
    %119 = vector.load %arg16[%c0_90, %c0_91, %c0_92] : memref<3x24x8xbf16, #tpu.memory_space<vmem>>, vector<3x24x8xbf16>
    %120 = vector.extract_strided_slice %118 {offsets = [0, 0, 0], sizes = [16, 16, 24], strides = [1, 1, 1]} : vector<18x16x24xbf16> to vector<16x16x24xbf16>
    %121 = vector.shape_cast %120 : vector<16x16x24xbf16> to vector<256x24xbf16>
    %122 = vector.extract_strided_slice %119 {offsets = [0, 0, 0], sizes = [1, 24, 8], strides = [1, 1, 1]} : vector<3x24x8xbf16> to vector<1x24x8xbf16>
    %123 = vector.shape_cast %122 : vector<1x24x8xbf16> to vector<24x8xbf16>
    %cst_93 = arith.constant dense<0.000000e+00> : vector<256x8xf32>
    %124 = tpu.matmul %121, %123, %cst_93 {dimension_numbers = #tpu.dot_dimension_numbers<[1], [0], [0], [1], [0, 0, 1, 1], [], []>} : vector<256x24xbf16>, vector<24x8xbf16>, vector<256x8xf32> -> vector<256x8xf32>
    %125 = vector.extract_strided_slice %118 {offsets = [1, 0, 0], sizes = [16, 16, 24], strides = [1, 1, 1]} : vector<18x16x24xbf16> to vector<16x16x24xbf16>
    %126 = vector.shape_cast %125 : vector<16x16x24xbf16> to vector<256x24xbf16>
    %127 = vector.extract_strided_slice %119 {offsets = [1, 0, 0], sizes = [1, 24, 8], strides = [1, 1, 1]} : vector<3x24x8xbf16> to vector<1x24x8xbf16>
    %128 = vector.shape_cast %127 : vector<1x24x8xbf16> to vector<24x8xbf16>
    %cst_94 = arith.constant dense<0.000000e+00> : vector<256x8xf32>
    %129 = tpu.matmul %126, %128, %cst_94 {dimension_numbers = #tpu.dot_dimension_numbers<[1], [0], [0], [1], [0, 0, 1, 1], [], []>} : vector<256x24xbf16>, vector<24x8xbf16>, vector<256x8xf32> -> vector<256x8xf32>
    %130 = arith.addf %124, %129 : vector<256x8xf32>
    %131 = vector.extract_strided_slice %118 {offsets = [2, 0, 0], sizes = [16, 16, 24], strides = [1, 1, 1]} : vector<18x16x24xbf16> to vector<16x16x24xbf16>
    %132 = vector.shape_cast %131 : vector<16x16x24xbf16> to vector<256x24xbf16>
    %133 = vector.extract_strided_slice %119 {offsets = [2, 0, 0], sizes = [1, 24, 8], strides = [1, 1, 1]} : vector<3x24x8xbf16> to vector<1x24x8xbf16>
    %134 = vector.shape_cast %133 : vector<1x24x8xbf16> to vector<24x8xbf16>
    %cst_95 = arith.constant dense<0.000000e+00> : vector<256x8xf32>
    %135 = tpu.matmul %132, %134, %cst_95 {dimension_numbers = #tpu.dot_dimension_numbers<[1], [0], [0], [1], [0, 0, 1, 1], [], []>} : vector<256x24xbf16>, vector<24x8xbf16>, vector<256x8xf32> -> vector<256x8xf32>
    %136 = arith.addf %130, %135 : vector<256x8xf32>
    %137 = vector.broadcast %112 : vector<1x8xf32> to vector<256x8xf32>
    %138 = arith.mulf %136, %137 : vector<256x8xf32>
    %139 = vector.broadcast %113 : vector<1x8xf32> to vector<256x8xf32>
    %140 = arith.addf %138, %139 : vector<256x8xf32>
    %cst_96 = arith.constant 0.000000e+00 : f32
    %141 = vector.broadcast %cst_96 : f32 to vector<256x8xf32>
    %142 = arith.maximumf %140, %141 : vector<256x8xf32>
    %143 = vector.shape_cast %142 : vector<256x8xf32> to vector<16x16x8xf32>
    %c0_97 = arith.constant 0 : index
    %c0_98 = arith.constant 0 : index
    %c0_99 = arith.constant 0 : index
    %c0_100 = arith.constant 0 : index
    %144 = vector.load %arg19[%c0_97, %c0_98, %c0_99, %c0_100] : memref<1x16x16x8xf32, #tpu.memory_space<vmem>>, vector<1x16x16x8xf32>
    %145 = vector.shape_cast %144 : vector<1x16x16x8xf32> to vector<16x16x8xf32>
    %146 = vector.shape_cast %143 : vector<16x16x8xf32> to vector<1x16x16x8xf32>
    tpu.vector_store %arg19[%c0_97, %c0_98, %c0_99, %c0_100], %146 {strides = array<i32>} : memref<1x16x16x8xf32, #tpu.memory_space<vmem>>, vector<1x16x16x8xf32>,
    return
  }
  func.func @transform_0(%arg0: i32) -> (i32, i32, i32, i32) {
    %c0_i32 = arith.constant 0 : i32
    %c0_i32_0 = arith.constant 0 : i32
    %c0_i32_1 = arith.constant 0 : i32
    %c0_i32_2 = arith.constant 0 : i32
    return %arg0, %c0_i32, %c0_i32_0, %c0_i32_1 : i32, i32, i32, i32
  }
  func.func @transform_1(%arg0: i32) -> (i32, i32, i32, i32) {
    %c0_i32 = arith.constant 0 : i32
    %c0_i32_0 = arith.constant 0 : i32
    %c0_i32_1 = arith.constant 0 : i32
    %c0_i32_2 = arith.constant 0 : i32
    return %arg0, %c0_i32, %c0_i32_0, %c0_i32_1 : i32, i32, i32, i32
  }
  func.func @transform_2(%arg0: i32) -> (i32, i32) {
    %c0_i32 = arith.constant 0 : i32
    %c0_i32_0 = arith.constant 0 : i32
    %c0_i32_1 = arith.constant 0 : i32
    return %c0_i32, %c0_i32_0 : i32, i32
  }
  func.func @transform_3(%arg0: i32) -> (i32, i32) {
    %c0_i32 = arith.constant 0 : i32
    %c0_i32_0 = arith.constant 0 : i32
    %c0_i32_1 = arith.constant 0 : i32
    return %c0_i32, %c0_i32_0 : i32, i32
  }
  func.func @transform_4(%arg0: i32) -> (i32, i32) {
    %c0_i32 = arith.constant 0 : i32
    %c0_i32_0 = arith.constant 0 : i32
    %c0_i32_1 = arith.constant 0 : i32
    return %c0_i32, %c0_i32_0 : i32, i32
  }
  func.func @transform_5(%arg0: i32) -> (i32, i32) {
    %c0_i32 = arith.constant 0 : i32
    %c0_i32_0 = arith.constant 0 : i32
    %c0_i32_1 = arith.constant 0 : i32
    return %c0_i32, %c0_i32_0 : i32, i32
  }
  func.func @transform_6(%arg0: i32) -> (i32, i32) {
    %c0_i32 = arith.constant 0 : i32
    %c0_i32_0 = arith.constant 0 : i32
    %c0_i32_1 = arith.constant 0 : i32
    return %c0_i32, %c0_i32_0 : i32, i32
  }
  func.func @transform_7(%arg0: i32) -> (i32, i32) {
    %c0_i32 = arith.constant 0 : i32
    %c0_i32_0 = arith.constant 0 : i32
    %c0_i32_1 = arith.constant 0 : i32
    return %c0_i32, %c0_i32_0 : i32, i32
  }
  func.func @transform_8(%arg0: i32) -> (i32, i32) {
    %c0_i32 = arith.constant 0 : i32
    %c0_i32_0 = arith.constant 0 : i32
    %c0_i32_1 = arith.constant 0 : i32
    return %c0_i32, %c0_i32_0 : i32, i32
  }
  func.func @transform_9(%arg0: i32) -> (i32, i32) {
    %c0_i32 = arith.constant 0 : i32
    %c0_i32_0 = arith.constant 0 : i32
    %c0_i32_1 = arith.constant 0 : i32
    return %c0_i32, %c0_i32_0 : i32, i32
  }
  func.func @transform_10(%arg0: i32) -> (i32, i32) {
    %c0_i32 = arith.constant 0 : i32
    %c0_i32_0 = arith.constant 0 : i32
    %c0_i32_1 = arith.constant 0 : i32
    return %c0_i32, %c0_i32_0 : i32, i32
  }
  func.func @transform_11(%arg0: i32) -> (i32, i32) {
    %c0_i32 = arith.constant 0 : i32
    %c0_i32_0 = arith.constant 0 : i32
    %c0_i32_1 = arith.constant 0 : i32
    return %c0_i32, %c0_i32_0 : i32, i32
  }
  func.func @transform_12(%arg0: i32) -> (i32, i32, i32) {
    %c0_i32 = arith.constant 0 : i32
    %c0_i32_0 = arith.constant 0 : i32
    %c0_i32_1 = arith.constant 0 : i32
    %c0_i32_2 = arith.constant 0 : i32
    return %c0_i32, %c0_i32_0, %c0_i32_1 : i32, i32, i32
  }
  func.func @transform_13(%arg0: i32) -> (i32, i32) {
    %c0_i32 = arith.constant 0 : i32
    %c0_i32_0 = arith.constant 0 : i32
    %c0_i32_1 = arith.constant 0 : i32
    return %c0_i32, %c0_i32_0 : i32, i32
  }
  func.func @transform_14(%arg0: i32) -> (i32, i32) {
    %c0_i32 = arith.constant 0 : i32
    %c0_i32_0 = arith.constant 0 : i32
    %c0_i32_1 = arith.constant 0 : i32
    return %c0_i32, %c0_i32_0 : i32, i32
  }
  func.func @transform_15(%arg0: i32) -> (i32, i32, i32) {
    %c0_i32 = arith.constant 0 : i32
    %c0_i32_0 = arith.constant 0 : i32
    %c0_i32_1 = arith.constant 0 : i32
    %c0_i32_2 = arith.constant 0 : i32
    return %c0_i32, %c0_i32_0, %c0_i32_1 : i32, i32, i32
  }
  func.func @transform_16(%arg0: i32) -> (i32, i32) {
    %c0_i32 = arith.constant 0 : i32
    %c0_i32_0 = arith.constant 0 : i32
    %c0_i32_1 = arith.constant 0 : i32
    return %c0_i32, %c0_i32_0 : i32, i32
  }
  func.func @transform_17(%arg0: i32) -> (i32, i32) {
    %c0_i32 = arith.constant 0 : i32
    %c0_i32_0 = arith.constant 0 : i32
    %c0_i32_1 = arith.constant 0 : i32
    return %c0_i32, %c0_i32_0 : i32, i32
  }
  func.func @transform_18(%arg0: i32) -> (i32, i32, i32, i32) {
    %c0_i32 = arith.constant 0 : i32
    %c0_i32_0 = arith.constant 0 : i32
    %c0_i32_1 = arith.constant 0 : i32
    %c0_i32_2 = arith.constant 0 : i32
    return %arg0, %c0_i32, %c0_i32_0, %c0_i32_1 : i32, i32, i32, i32
  }
}

</mosaic_0001>

<bundles_post_ra>
// kernel: tpu_custom_call.1
= control target key start
LH: loop header
LB: loop body
LE: loop exit
PB: predicated region body
PF: predicated region fallthrough
CT: control target
= control target key end

     0   :  { %s10672_s29 = smov 0   ;;  %s13217_s0 = inlined_call_operand.vmem [shape: bf16[2,8,8,4], index: 0, kind: input, shape index: {}]   ;;  %s13218_s1 = inlined_call_operand.vmem [shape: bf16[2,16,16,4], index: 1, kind: input, shape index: {}]   ;;  %s13219_s2 = inlined_call_operand.vmem [shape: bf16[16,8], index: 2, kind: input, shape index: {}]   ;;  %s13220_s3 = inlined_call_operand.vmem [shape: bf16[8,16], index: 3, kind: input, shape index: {}]   ;;  %s13221_s4 = inlined_call_operand.vmem [shape: bf16[4,2], index: 4, kind: input, shape index: {}]   ;;  %s13222_s5 = inlined_call_operand.vmem [shape: f32[1,2], index: 5, kind: input, shape index: {}]   ;;  %s13223_s6 = inlined_call_operand.vmem [shape: f32[1,2], index: 6, kind: input, shape index: {}]   ;;  %s13224_s7 = inlined_call_operand.vmem [shape: bf16[4,2], index: 7, kind: input, shape index: {}]   ;;  %s13225_s8 = inlined_call_operand.vmem [shape: f32[1,2], index: 8, kind: input, shape index: {}]   ;;  %s13226_s9 = inlined_call_operand.vmem [shape: f32[1,2], index: 9, kind: input, shape index: {}]   ;;  %s13227_s10 = inlined_call_operand.vmem [shape: f32[1,2], index: 10, kind: input, shape index: {}]   ;;  %s13228_s11 = inlined_call_operand.<no memory space> [shape: f32[1,1], index: 11, kind: input, shape index: {}]   ;;  %s13229_s12 = inlined_call_operand.vmem [shape: bf16[3,24,8], index: 12, kind: input, shape index: {}]   ;;  %s13230_s13 = inlined_call_operand.vmem [shape: f32[1,8], index: 13, kind: input, shape index: {}]   ;;  %s13231_s14 = inlined_call_operand.vmem [shape: f32[1,8], index: 14, kind: input, shape index: {}]   ;;  %s13232_s15 = inlined_call_operand.vmem [shape: bf16[3,24,8], index: 15, kind: input, shape index: {}]   ;;  %s13233_s16 = inlined_call_operand.vmem [shape: f32[1,8], index: 16, kind: input, shape index: {}]   ;;  %s13234_s17 = inlined_call_operand.vmem [shape: f32[1,8], index: 17, kind: input, shape index: {}]   ;;  %s13235_s18 = inlined_call_operand.vmem [shape: f32[2,16,16,8], index: 18, kind: output, shape index: {}]  }
   0x1   :  { %13238 = sst [smem:[#allocation5_spill]] %s13217_s0  ;;  %v23_v0 = vstv %s13228_s11 }
   0x2   :  { %13239 = sst [smem:[#allocation6_spill]] %s13218_s1  ;;  %24 = vst [vmem:[#allocation4] sm:$0x1] %v23_v0 }
   0x3   :  { %13240 = sst [smem:[#allocation7_spill]] %s13219_s2 }
   0x4 LB: > { %s9125_s30 = sadd.s32 4294967295, %s10548_s29   ;;  %p9129_p0 = scmp.ge.s32.totalorder %s10548_s29, 1  ;;  %s10548_s29 = sphi %s10672_s29, %s30_s29  }
   0x5   : > { %p524_p1 = scmp.lt.s32.totalorder %s10548_s29, 3 }
   0x7   : > { %p525_p2 = pnand %p9129_p0, %p524_p1 }
   0x8   : > { %v610_v1 = vld [vmem:[%s13221_s4] sm:$0x3] (!%p525_p2)  ;;  %vm644_vm0 = vcmask (!%p525_p2), 1041408   ;;  %p583_p3 = scmp.lt.s32.totalorder (!%p525_p2), %s9125_s30, 1  ;;  %s13241_s21 = sld [smem:[#allocation5_spill]] (!%p525_p2)  ;;  %vm631_vm1 = vcmask (!%p525_p2), 31744   ;;  %v811_v54 = vlaneseq (!%p525_p2) }
   0x9   : > { %528 = sbr.rel (%p525_p2) target bundleno = 3224 (0xc98), region = 92  ;;  %10088 = vmatprep.subr.msk.bf16.mxu0 (!%p525_p2), %vm644_vm0, %v610_v1  ;;  %v646_v2 = vsel (!%p525_p2), %vm644_vm0, %v610_v1, 0  ;;  %v9144_v15 = vld [vmem:[%s13222_s5] ss:$0 sm:$0xff] (!%p525_p2)  ;;  %s10550_s26 = smov (!%p525_p2), 4   ;;  %vm10558_vm2 = vmmov (!%p525_p2), 0  }
   0xa   : > { %9679 = vmatpush3.bf16.msra.mxu0 (!%p525_p2), %v646_v2  ;;  %v9145_v17 = vld [vmem:[%s13223_s6] ss:$0 sm:$0xff] (!%p525_p2)  ;;  %v10551_v52 = vmov (!%p525_p2), 1983009808   ;;  %v10733_v57 = vshrl.u32 (!%p525_p2), %v811_v54, 7  ;;  %s10554_s28 = smov (!%p525_p2), 24  }
   0xb   : > { %v809_v53 = vunpack.c.l.s4 (!%p525_p2), %v10551_v52  ;;  %v10552_v59 = vmov (!%p525_p2), 1934713408   ;;  %s10555_s0 = smov (!%p525_p2), 6   ;;  %s13242_s1 = sld [smem:[#allocation6_spill]] (!%p525_p2)  ;;  %vm913_vm3 = vcmask (!%p525_p2), 48128   ;;  %vm917_vm4 = vcmask (!%p525_p2), 97280  }
   0xc   : > { %v826_v60 = vunpack.c.l.s4 (!%p525_p2), %v10552_v59  ;;  %s10560_s24 = smov (!%p525_p2), 36   ;;  %s10561_s25 = smov (!%p525_p2), 18   ;;  %vm920_vm5 = vcmask (!%p525_p2), 146432   ;;  %vm923_vm6 = vcmask (!%p525_p2), 195584   ;;  %vm926_vm7 = vcmask (!%p525_p2), 244736  }
   0xd   : > { %v810_v56 = vunpack.c.0.s8 (!%p525_p2), %v809_v53  ;;  %vm929_vm8 = vcmask (!%p525_p2), 293888   ;;  %vm932_vm9 = vcmask (!%p525_p2), 343040   ;;  %vm944_vm10 = vcmask (!%p525_p2), 1043456   ;;  %s13243_s19 = sld [smem:[#allocation7_spill]] (!%p525_p2)  ;;  %s10567_s2 = smov (!%p525_p2), 92  }
   0xe   : > { %vm940_vm11 = vcmask (!%p525_p2), 64512   ;;  %s10568_s23 = smov (!%p525_p2), 98   ;;  %vm4376_vm12 = vcmask (!%p525_p2), 15360   ;;  %vm4928_vm13 = vcmask (!%p525_p2), 60416   ;;  %vm4931_vm14 = vcmask (!%p525_p2), 57344  }
   0xf   : > { %v10742_v1 = vsub.s32 (!%p525_p2), %v810_v56, %v10733_v57  ;;  %vm4938_vm15 = vsmask.f32 (!%p525_p2), 256 }
  0x10   : > { %s13256_s30 = smov (!%p583_p3, %s9125_s30), 1 }
  0x11   : > { %s9472_s11 = sshll.u32 %s13256_s30, 5  ;;  %s9473_s27 = sshll.u32 %s13256_s30, 7 }
  0x12   : > { %s587_s22 = scalar_lea.vmem %s13241_s21, %s9472_s11  ;;  %s10782_s20 = scalar_lea.vmem %s13242_s1, %s9473_s27 }
  0x13   : > { %v10691_v3 = vld [vmem:[%s587_s22] sm:$0xf]  ;;  %v10693_v4 = vld [vmem:[%s587_s22 + $0x4] sm:$0xf]  ;;  %v10697_v6 = vld [vmem:[%s587_s22 + $0x8] sm:$0xf] }
  0x14   : > { %v9136_v5 = vcombine.low %v10691_v3, %v10693_v4  ;;  %v10699_v7 = vld [vmem:[%s587_s22 + $0xc] sm:$0xf]  ;;  %v10701_v8 = vld [vmem:[%s587_s22 + $0x10] sm:$0xf]  ;;  %v10705_v10 = vld [vmem:[%s587_s22 + $0x14] sm:$0xf] }
  0x15   : > { %v9137_v9 = vcombine.low %v10697_v6, %v10699_v7  ;;  %v9138_v11 = vcombine.low %v10701_v8, %v10705_v10  ;;  %v10710_v12 = vld [vmem:[%s587_s22 + $0x18] sm:$0xf]  ;;  %v10714_v13 = vld [vmem:[%s587_s22 + $0x1c] sm:$0xf]  ;;  %s10557_s21 = smov 12   ;;  %s10559_s22 = smov 30  }
  0x16   : > { %9680 = vmatprep.mubr.msk.bf16.mxu0 %vm631_vm1, %v9136_v5  ;;  %v9139_v14 = vcombine.low %v10710_v12, %v10714_v13  ;;  %v827_v5 = vunpack.c.0.s8 %v826_v60  ;;  %v3618_v54 = vld [vmem:[%s10782_s20 + $0x18] sm:$0xff]   ;;  %s10562_s27 = smov 42   ;;  %v3622_v56 = vld [vmem:[%s10782_s20 + $0x28] sm:$0xff]   ;;  %v3628_v60 = vld [vmem:[%s10782_s20 + $0x40] sm:$0xff]   ;;  %s10563_s11 = smov 116  }
  0x17   : > { %9681 = vmatmul.mubr.msk.bf16.vlgmr.msra.gmra.mrb[0].mxu0 %vm631_vm1, %v9137_v9  ;;  %v3626_v59 = vld [vmem:[%s10782_s20 + $0x38] sm:$0xff]   ;;  %s10564_s1 = smov 122  }
  0x18   : > { %9684 = vmatprep.mubr.msk.bf16.mxu0 %vm631_vm1, %v9138_v11 }
  0x1f   : > { %9685 = vmatmul.mubr.msk.bf16.gmra.mrb[4].mxu0 %vm631_vm1, %v9139_v14 }
  0xea   : > { %v9682_v16 = vpop.f32.mrb[0].mxu0 }
  0xeb   : > { %v722_v18 = vmul.f32 %v9682_v16, %v9144_v15  ;;  %v682_v19 = vpop.f32.mrb[1].mxu0 }
  0xec   : > { %v720_v20 = vmul.f32 %v9144_v15, %v682_v19  ;;  %v9683_v21 = vpop.f32.mrb[2].mxu0  ;;  %v10756_v19 = vsub.s32 %v827_v5, %v10733_v57 }
  0xed   : > { %v723_v22 = vmul.f32 %v9683_v21, %v9144_v15  ;;  %v685_v23 = vpop.f32.mrb[3].mxu0  ;;  %v737_v24 = vadd.f32 %v9145_v17, %v722_v18 }
  0xee   : > { %v721_v25 = vmul.f32 %v9144_v15, %v685_v23  ;;  %v735_v26 = vadd.f32 %v9145_v17, %v720_v20 }
  0xef   : > { %v738_v27 = vadd.f32 %v9145_v17, %v723_v22  ;;  %v745_v28 = vpack.c.bf16 %v737_v24, %v737_v24 }
  0xf0   : > { %v736_v29 = vadd.f32 %v9145_v17, %v721_v25  ;;  %v743_v30 = vpack.c.bf16 %v735_v26, %v735_v26 }
  0xf1   : > { %763 = vrot.lane.b32.xlu1 %v745_v28, %s10550_s26  ;;  %v746_v32 = vpack.c.bf16 %v738_v27, %v738_v27 }
  0xf2   : > { %759 = vrot.lane.b32.xlu0 %v743_v30, %s10550_s26  ;;  %v9686_v31 = vpop.f32.mrb[4].mxu0  ;;  %v744_v34 = vpack.c.bf16 %v736_v29, %v736_v29  ;;  %v13236_v30 = vmov 0  }
  0xf3   : > { %v698_v33 = vpop.f32.mrb[5].mxu0  ;;  %v726_v35 = vmul.f32 %v9686_v31, %v9144_v15 }
  0xf4   : > { %v724_v36 = vmul.f32 %v9144_v15, %v698_v33  ;;  %v9687_v37 = vpop.f32.mrb[6].mxu0 }
  0xf5   : > { %765 = vrot.lane.b32.xlu1 %v746_v32, %s10550_s26  ;;  %v701_v38 = vpop.f32.mrb[7].mxu0  ;;  %v727_v40 = vmul.f32 %v9687_v37, %v9144_v15  ;;  %v741_v42 = vadd.f32 %v9145_v17, %v726_v35 }
  0xf6   : > { %v739_v39 = vadd.f32 %v9145_v17, %v724_v36  ;;  %v725_v41 = vmul.f32 %v9144_v15, %v701_v38  ;;  %761 = vrot.lane.b32.xlu0 %v744_v34, %s10550_s26 }
  0xf7   : > { %v742_v45 = vadd.f32 %v9145_v17, %v727_v40  ;;  %v749_v47 = vpack.c.bf16 %v741_v42, %v741_v42 }
  0xf8   : > { %v747_v43 = vpack.c.bf16 %v739_v39, %v739_v39  ;;  %v740_v44 = vadd.f32 %v9145_v17, %v725_v41  ;;  %v10556_v39 = vmov 0.0  }
  0xf9   : > { %v750_v48 = vpack.c.bf16 %v742_v45, %v742_v45  ;;  %9688 = vmatprep.subr.bf16.mxu1 %v10556_v39  ;;  %9690 = vmatprep.mubr.msk.bf16.mxu1 %vm10558_vm2, %v10556_v39  ;;  %v10788_v45 = vld [vmem:[%s13224_s7] sm:$0x3]  ;;  %vm4994_vm2 = vsmask.f32 7938 }
  0xfa   : > { %v748_v46 = vpack.c.bf16 %v740_v44, %v740_v44  ;;  %767 = vrot.lane.b32.xlu0 %v747_v43, %s10550_s26  ;;  %10090 = vmatprep.subr.msk.bf16.mxu0 %vm644_vm0, %v10788_v45 }
  0xfc   : > { %769 = vrot.lane.b32.xlu1 %v748_v46, %s10550_s26  ;;  %v3612_v46 = vld [vmem:[%s10782_s20] sm:$0xff]  }
  0xfd   : > { %9710 = vmatprep.mubr.msk.bf16.mxu0 %vm631_vm1, %v3612_v46 }
  0xfe   : > { %771 = vrot.lane.b32.xlu0 %v749_v47, %s10550_s26  ;;  %v3614_v47 = vld [vmem:[%s10782_s20 + $0x8] sm:$0xff]  }
 0x100   : > { %773 = vrot.lane.b32.xlu1 %v750_v48, %s10550_s26  ;;  %v10796_v48 = vsel %vm644_vm0, %v10788_v45, 0 }
 0x101   : > { %9709 = vmatpush3.bf16.msra.mxu0 %v10796_v48 }
 0x104   : > { %9711 = vmatmul.mubr.msk.bf16.vlgmr.msra.gmra.mrb[8].mxu0 %vm631_vm1, %v3614_v47 }
 0x163   : > { %v764_v49 = vpop.permute.xlu1 %763 }
 0x164   : > { %v760_v50 = vpop.permute.xlu0 %759  ;;  %v785_v11 = vsel %vm631_vm1, %v10697_v6, %v764_v49  ;;  %v3616_v49 = vld [vmem:[%s10782_s20 + $0x10] sm:$0xff]  }
 0x165   : > { %v777_v63 = vsel %vm631_vm1, %v10691_v3, %v760_v50  ;;  %9714 = vmatprep.mubr.msk.bf16.mxu0 %vm631_vm1, %v3616_v49 }
 0x166   : > { %9715 = vmatmul.mubr.msk.bf16.gmra.mrb[12].mxu0 %vm631_vm1, %v3618_v54 }
 0x167   : > { %v766_v55 = vpop.permute.xlu1 %765 }
 0x168   : > { %v762_v51 = vpop.permute.xlu0 %761 }
 0x169   : > { %v781_v14 = vsel %vm631_vm1, %v10693_v4, %v762_v51 }
 0x16c   : > { %v768_v58 = vpop.permute.xlu0 %767 }
 0x16d   : > { %v793_v61 = vsel %vm631_vm1, %v10701_v8, %v768_v58  ;;  %v3624_v58 = vld [vmem:[%s10782_s20 + $0x30] sm:$0xff]  }
 0x16e   : > { %v770_v62 = vpop.permute.xlu1 %769  ;;  %v807_v2 = vcombine.low %v777_v63, %v793_v61  ;;  %v3630_v61 = vld [vmem:[%s10782_s20 + $0x48] sm:$0xff]  }
 0x16f   : > { %v797_v0 = vsel %vm631_vm1, %v10705_v10, %v770_v62  ;;  %v789_v10 = vsel %vm631_vm1, %v10699_v7, %v766_v55  ;;  %v3620_v55 = vld [vmem:[%s10782_s20 + $0x20] sm:$0xff]  }
 0x170   : > { %v772_v9 = vpop.permute.xlu0 %771  ;;  %v841_v15 = vcombine.low %v781_v14, %v797_v0  ;;  %v814_v18 = vrot.slane %v807_v2, %v10742_v1  ;;  %9718 = vmatprep.mubr.msk.bf16.mxu0 %vm631_vm1, %v3620_v55 }
 0x171   : > { %v801_v8 = vsel %vm631_vm1, %v10710_v12, %v772_v9  ;;  %9719 = vmatmul.mubr.msk.bf16.gmra.mrb[16].mxu0 %vm631_vm1, %v3622_v56 }
 0x172   : > { %v815_v3 = vcombine.low %v785_v11, %v801_v8  ;;  %v774_v16 = vpop.permute.xlu1 %773  ;;  %v848_v20 = vrot.slane %v841_v15, %v10742_v1  ;;  %9722 = vmatprep.mubr.msk.bf16.mxu0 %vm631_vm1, %v3624_v58 }
 0x173   : > { %v805_v17 = vsel %vm631_vm1, %v10714_v13, %v774_v16 }
 0x174   : > { %v822_v6 = vrot.slane %v815_v3, %v10742_v1  ;;  %v849_v4 = vcombine.low %v789_v10, %v805_v17 }
 0x176   : > { %v823_v12 = vcombine.low %v814_v18, %v822_v6  ;;  %v824_v21 = vcombine.high %v814_v18, %v822_v6  ;;  %v856_v22 = vrot.slane %v849_v4, %v10742_v1  ;;  %v10272_v6 = vld [vmem:[%s13243_s19] sm:$0xff]  }
 0x178   : > { %v10762_v7 = vrot.slane %v823_v12, %v10756_v19  ;;  %v857_v23 = vcombine.low %v848_v20, %v856_v22  ;;  %v858_v13 = vcombine.high %v848_v20, %v856_v22  ;;  %v838_v25 = vrot.slane %v824_v21, %v10756_v19 }
 0x179   : > { %9723 = vmatmul.mubr.msk.bf16.gmra.mrb[20].mxu0 %vm631_vm1, %v3626_v59 }
 0x17a   : > { %v10765_v24 = vrot.slane %v857_v23, %v10756_v19  ;;  %v872_v26 = vrot.slane %v858_v13, %v10756_v19  ;;  %v878_v28 = vshrl.u32 %v10762_v7, 16  ;;  %v839_v34 = vcombine.high %v10762_v7, %v13236_v30  ;;  %9726 = vmatprep.mubr.msk.bf16.mxu0 %vm631_vm1, %v3628_v60 }
 0x17b   : > { %v890_v37 = vshrl.u32 %v838_v25, 16  ;;  %v840_v41 = vcombine.high %v838_v25, %v13236_v30 }
 0x17c   : > { %v889_v27 = vpack.i.b16 %v872_v26, %v838_v25  ;;  %v879_v29 = vshrl.u32 %v10765_v24, 16  ;;  %v873_v31 = vcombine.high %v10765_v24, %v13236_v30  ;;  %v877_v32 = vpack.i.b16 %v10765_v24, %v10762_v7 }
 0x17d   : > { %v891_v35 = vshrl.u32 %v872_v26, 16  ;;  %v874_v38 = vcombine.high %v872_v26, %v13236_v30  ;;  %v884_v44 = vshrl.u32 %v839_v34, 16  ;;  %v896_v52 = vshrl.u32 %v840_v41, 16 }
 0x17e   : > { %905 = vrot.lane.b32.xlu1 %v889_v27, %s10554_s28  ;;  %v880_v33 = vpack.i.b16 %v879_v29, %v878_v28  ;;  %v883_v36 = vpack.i.b16 %v873_v31, %v839_v34  ;;  %v885_v42 = vshrl.u32 %v873_v31, 16  ;;  %s10573_s28 = smov 16  }
 0x17f   : > { %v892_v40 = vpack.i.b16 %v891_v35, %v890_v37  ;;  %v895_v43 = vpack.i.b16 %v874_v38, %v840_v41  ;;  %v897_v51 = vshrl.u32 %v874_v38, 16  ;;  %v10867_v41 = vld [vmem:[%s13225_s8] ss:$0 sm:$0xff] }
 0x180   : > { %899 = vrot.lane.b32.xlu0 %v880_v33, %s10555_s0  ;;  %v886_v50 = vpack.i.b16 %v885_v42, %v884_v44 }
 0x181   : > { %v898_v53 = vpack.i.b16 %v897_v51, %v896_v52  ;;  %9727 = vmatmul.mubr.msk.bf16.gmra.mrb[24].mxu0 %vm631_vm1, %v3630_v61 }
 0x182   : > { %901 = vrot.lane.b32.xlu1 %v883_v36, %s10557_s21  ;;  %s10565_s21 = smov 104  }
 0x184   : > { %907 = vrot.lane.b32.xlu0 %v892_v40, %s10559_s22  ;;  %s10566_s22 = smov 110  }
 0x186   : > { %909 = vrot.lane.b32.xlu1 %v895_v43, %s10560_s24  ;;  %s10569_s24 = smov 86   ;;  %v10875_v43 = vld [vmem:[%s13226_s9] ss:$0 sm:$0xff] }
 0x188   : > { %903 = vrot.lane.b32.xlu0 %v886_v50, %s10561_s25  ;;  %s10571_s25 = smov 124  }
 0x18c   : > { %911 = vrot.lane.b32.xlu0 %v898_v53, %s10562_s27  ;;  %s10572_s27 = smov 8  }
 0x1d7   : > { %v10826_v4 = vpop.f32.mrb[8].mxu0 }
 0x1d8   : > { %v10828_v20 = vpop.f32.mrb[9].mxu0 }
 0x1d9   : > { %v10830_v12 = vpop.f32.mrb[10].mxu0 }
 0x1da   : > { %v3813_v21 = vpop.f32.mrb[11].mxu0 }
 0x1db   : > { %v3945_v42 = vmul.f32 %v10867_v41, %v3813_v21 }
 0x1dd   : > { %v3984_v44 = vadd.f32 %v10875_v43, %v3945_v42 }
 0x1f0   : > { %v906_v62 = vpop.permute.xlu1 %905 }
 0x1f2   : > { %v900_v63 = vpop.permute.xlu0 %899 }
 0x1f3   : > { %v916_v2 = vsel %vm913_vm3, %v877_v32, %v900_v63  ;;  %vm11686_vm3 = vmand %vm4931_vm14, %vm4994_vm2 }
 0x1f4   : > { %v902_v5 = vpop.permute.xlu1 %901 }
 0x1f5   : > { %v919_v9 = vsel %vm917_vm4, %v916_v2, %v902_v5  ;;  %vm5306_vm4 = vsmask.f32 4368 }
 0x1f6   : > { %v908_v0 = vpop.permute.xlu0 %907 }
 0x1f8   : > { %v910_v15 = vpop.permute.xlu1 %909 }
 0x1fa   : > { %v904_v11 = vpop.permute.xlu0 %903 }
 0x1fb   : > { %v922_v14 = vsel %vm920_vm5, %v919_v9, %v904_v11  ;;  %vm11789_vm5 = vmor %vm4938_vm15, %vm5306_vm4 }
 0x1fc   : > { %v925_v8 = vsel %vm923_vm6, %v922_v14, %v906_v62 }
 0x1fd   : > { %v928_v3 = vsel %vm926_vm7, %v925_v8, %v908_v0  ;;  %vm11795_vm7 = vmand %vm4928_vm13, %vm4994_vm2 }
 0x1fe   : > { %v912_v16 = vpop.permute.xlu0 %911  ;;  %v931_v10 = vsel %vm929_vm8, %v928_v3, %v910_v15  ;;  %vm5943_vm8 = vsmask.f32 7424 }
 0x1ff   : > { %v934_v17 = vsel %vm932_vm9, %v931_v10, %v912_v16  ;;  %vm6196_vm9 = vcmask 1046528  }
 0x200   : > { %v945_v18 = vsel %vm944_vm10, %v934_v17, 0 }
 0x201   : > { %9689 = vmatpush3.bf16.msra.mxu1 %v945_v18 }
 0x204   : > { %9691 = vmatmul.mubr.msk.bf16.vlgmr.msra.gmra.mrb[0].mxu1 %vm940_vm11, %v10272_v6 }
 0x239   : > { %v9716_v22 = vpop.f32.mrb[12].mxu0 }
 0x23a   : > { %v3826_v7 = vpop.f32.mrb[13].mxu0  ;;  %v3950_v47 = vmul.f32 %v9716_v22, %v10867_v41 }
 0x23b   : > { %v10832_v23 = vpop.f32.mrb[14].mxu0  ;;  %v3948_v46 = vmul.f32 %v10867_v41, %v3826_v7 }
 0x23c   : > { %v10834_v13 = vpop.f32.mrb[15].mxu0  ;;  %v3989_v50 = vadd.f32 %v10875_v43, %v3950_v47 }
 0x23d   : > { %v3987_v49 = vadd.f32 %v10875_v43, %v3948_v46 }
 0x244   : > { %v9720_v24 = vpop.f32.mrb[16].mxu0 }
 0x245   : > { %v3842_v25 = vpop.f32.mrb[17].mxu0  ;;  %v3954_v52 = vmul.f32 %v9720_v24, %v10867_v41 }
 0x246   : > { %v10836_v26 = vpop.f32.mrb[18].mxu0  ;;  %v3952_v51 = vmul.f32 %v10867_v41, %v3842_v25 }
 0x247   : > { %v10838_v27 = vpop.f32.mrb[19].mxu0  ;;  %v3993_v54 = vadd.f32 %v10875_v43, %v3954_v52 }
 0x248   : > { %v3991_v53 = vadd.f32 %v10875_v43, %v3952_v51 }
 0x24c   : > { %v9724_v28 = vpop.f32.mrb[20].mxu0 }
 0x24d   : > { %v3858_v29 = vpop.f32.mrb[21].mxu0  ;;  %v3958_v56 = vmul.f32 %v9724_v28, %v10867_v41 }
 0x24e   : > { %v10840_v31 = vpop.f32.mrb[22].mxu0  ;;  %v3956_v55 = vmul.f32 %v10867_v41, %v3858_v29 }
 0x24f   : > { %v10842_v32 = vpop.f32.mrb[23].mxu0  ;;  %v3997_v59 = vadd.f32 %v10875_v43, %v3958_v56 }
 0x250   : > { %v3995_v58 = vadd.f32 %v10875_v43, %v3956_v55 }
 0x254   : > { %v10844_v33 = vpop.f32.mrb[24].mxu0 }
 0x255   : > { %v3874_v34 = vpop.f32.mrb[25].mxu0 }
 0x256   : > { %v10846_v35 = vpop.f32.mrb[26].mxu0  ;;  %v3960_v60 = vmul.f32 %v10867_v41, %v3874_v34 }
 0x257   : > { %v10848_v36 = vpop.f32.mrb[27].mxu0 }
 0x258   : > { %v3999_v61 = vadd.f32 %v10875_v43, %v3960_v60 }
 0x2d7   : > { %v10850_v37 = vpop.f32.mrb[0].mxu1 }
 0x2d8   : > { %996 = vrot.lane.b32.xlu0 %v10850_v37, %s10563_s11  ;;  %990 = vrot.lane.b32.xlu1 %v10850_v37, %s10564_s1  ;;  %v9692_v38 = vpop.f32.mrb[1].mxu1 }
 0x2d9   : > { %v10854_v39 = vpop.f32.mrb[2].mxu1 }
 0x2da   : > { %v9693_v40 = vpop.f32.mrb[3].mxu1 }
 0x2dc   : > { %1008 = vrot.lane.b32.xlu0 %v10850_v37, %s10565_s21  ;;  %1002 = vrot.lane.b32.xlu1 %v10850_v37, %s10566_s22 }
 0x2e0   : > { %1020 = vrot.lane.b32.xlu0 %v10850_v37, %s10567_s2  ;;  %1014 = vrot.lane.b32.xlu1 %v10850_v37, %s10568_s23 }
 0x2e4   : > { %1026 = vrot.lane.b32.xlu1 %v10850_v37, %s10569_s24  ;;  %992 = vrot.lane.b32.xlu0 %v10854_v39, %s10564_s1 }
 0x2e8   : > { %998 = vrot.lane.b32.xlu1 %v10854_v39, %s10563_s11  ;;  %1004 = vrot.lane.b32.xlu0 %v10854_v39, %s10566_s22 }
 0x2ec   : > { %1010 = vrot.lane.b32.xlu1 %v10854_v39, %s10565_s21  ;;  %1016 = vrot.lane.b32.xlu0 %v10854_v39, %s10568_s23 }
 0x2f0   : > { %1022 = vrot.lane.b32.xlu1 %v10854_v39, %s10567_s2  ;;  %1028 = vrot.lane.b32.xlu0 %v10854_v39, %s10569_s24 }
 0x2f4   : > { %4049 = vrot.lane.b32.xlu0 %v3984_v44, %s10550_s26 }
 0x2f8   : > { %4055 = vrot.lane.b32.xlu0 %v3987_v49, %s10550_s26 }
 0x2fc   : > { %4059 = vrot.lane.b32.xlu0 %v3989_v50, %s10550_s26 }
 0x300   : > { %4063 = vrot.lane.b32.xlu0 %v3991_v53, %s10550_s26 }
 0x304   : > { %4067 = vrot.lane.b32.xlu0 %v3993_v54, %s10550_s26 }
 0x308   : > { %4071 = vrot.lane.b32.xlu0 %v3995_v58, %s10550_s26 }
 0x30c   : > { %4075 = vrot.lane.b32.xlu0 %v3997_v59, %s10550_s26 }
 0x310   : > { %4079 = vrot.lane.b32.xlu0 %v3999_v61, %s10550_s26 }
 0x34a   : > { %v997_v62 = vpop.permute.xlu0 %996  ;;  %v991_v63 = vpop.permute.xlu1 %990 }
 0x34b   : > { %v1032_v14 = vcombine.low %v10850_v37, %v997_v62  ;;  %v1033_v15 = vcombine.high %v10850_v37, %v997_v62 }
 0x34d   : > { %v1040_v6 = vrot.slane %v1032_v14, %v10742_v1  ;;  %v1047_v24 = vrot.slane %v1033_v15, %v10742_v1 }
 0x34e   : > { %v1009_v0 = vpop.permute.xlu0 %1008  ;;  %v1003_v2 = vpop.permute.xlu1 %1002 }
 0x34f   : > { %v1048_v5 = vcombine.low %v991_v63, %v1003_v2  ;;  %v1049_v8 = vcombine.high %v991_v63, %v1003_v2 }
 0x351   : > { %v1056_v3 = vrot.slane %v1048_v5, %v10742_v1  ;;  %v1063_v21 = vrot.slane %v1049_v8, %v10742_v1 }
 0x352   : > { %v1021_v9 = vpop.permute.xlu0 %1020  ;;  %v1015_v11 = vpop.permute.xlu1 %1014 }
 0x353   : > { %v1064_v16 = vcombine.low %v1009_v0, %v1021_v9  ;;  %v1065_v10 = vcombine.high %v1009_v0, %v1021_v9  ;;  %v1096_v29 = vcombine.low %v1040_v6, %v1056_v3  ;;  %v1097_v42 = vcombine.high %v1040_v6, %v1056_v3 }
 0x354   : > { %v1112_v47 = vcombine.low %v1047_v24, %v1063_v21  ;;  %v1113_v2 = vcombine.high %v1047_v24, %v1063_v21 }
 0x355   : > { %v1072_v34 = vrot.slane %v1064_v16, %v10742_v1  ;;  %v1079_v37 = vrot.slane %v1065_v10, %v10742_v1  ;;  %v1104_v54 = vrot.slane %v1096_v29, %v10756_v19  ;;  %v1111_v60 = vrot.slane %v1097_v42, %v10756_v19 }
 0x356   : > { %v1027_v17 = vpop.permute.xlu1 %1026  ;;  %v993_v18 = vpop.permute.xlu0 %992  ;;  %v1127_v24 = vrot.slane %v1113_v2, %v10756_v19 }
 0x357   : > { %v1080_v22 = vcombine.low %v1015_v11, %v1027_v17  ;;  %v1081_v7 = vcombine.high %v1015_v11, %v1027_v17 }
 0x359   : > { %v1088_v25 = vrot.slane %v1080_v22, %v10742_v1  ;;  %v1095_v28 = vrot.slane %v1081_v7, %v10742_v1 }
 0x35a   : > { %v999_v38 = vpop.permute.xlu1 %998  ;;  %v1005_v40 = vpop.permute.xlu0 %1004 }
 0x35b   : > { %v1168_v44 = vcombine.low %v10854_v39, %v999_v38  ;;  %v1184_v46 = vcombine.low %v993_v18, %v1005_v40  ;;  %v1128_v49 = vcombine.low %v1072_v34, %v1088_v25  ;;  %v1129_v50 = vcombine.high %v1072_v34, %v1088_v25 }
 0x35c   : > { %v1144_v51 = vcombine.low %v1079_v37, %v1095_v28  ;;  %v1169_v52 = vcombine.high %v10854_v39, %v999_v38  ;;  %v1185_v53 = vcombine.high %v993_v18, %v1005_v40  ;;  %v1145_v55 = vcombine.high %v1079_v37, %v1095_v28 }
 0x35d   : > { %v1136_v59 = vrot.slane %v1128_v49, %v10756_v19  ;;  %v1143_v61 = vrot.slane %v1129_v50, %v10756_v19  ;;  %v1176_v63 = vrot.slane %v1168_v44, %v10742_v1  ;;  %v1192_v0 = vrot.slane %v1184_v46, %v10742_v1 }
 0x35e   : > { %v1011_v56 = vpop.permute.xlu1 %1010  ;;  %v1017_v58 = vpop.permute.xlu0 %1016  ;;  %v1152_v62 = vrot.slane %v1144_v51, %v10756_v19  ;;  %v1120_v39 = vrot.slane %v1112_v47, %v10756_v19  ;;  %v1183_v8 = vrot.slane %v1169_v52, %v10742_v1  ;;  %v1199_v15 = vrot.slane %v1185_v53, %v10742_v1 }
 0x35f   : > { %v1160_v5 = vcombine.low %v1104_v54, %v1136_v59  ;;  %v1161_v9 = vcombine.high %v1104_v54, %v1136_v59  ;;  %v1162_v11 = vcombine.low %v1111_v60, %v1143_v61  ;;  %v1163_v14 = vcombine.high %v1111_v60, %v1143_v61 }
 0x360   : > { %v1159_v3 = vrot.slane %v1145_v55, %v10756_v19  ;;  %v1164_v6 = vcombine.low %v1120_v39, %v1152_v62  ;;  %v1165_v22 = vcombine.high %v1120_v39, %v1152_v62  ;;  %v1233_v29 = vcombine.high %v1176_v63, %v1192_v0 }
 0x361   : > { %v10130_v17 = vpack.i.bf16 %v1161_v9, %v1160_v5  ;;  %v10151_v18 = vpack.i.bf16 %v1163_v14, %v1162_v11  ;;  %v1232_v34 = vcombine.low %v1176_v63, %v1192_v0  ;;  %v1248_v49 = vcombine.low %v1183_v8, %v1199_v15 }
 0x362   : > { %v1023_v16 = vpop.permute.xlu1 %1022  ;;  %v1029_v10 = vpop.permute.xlu0 %1028  ;;  %v10158_v44 = vpack.i.bf16 %v1165_v22, %v1164_v6  ;;  %v1166_v46 = vcombine.low %v1127_v24, %v1159_v3  ;;  %v1167_v47 = vcombine.high %v1127_v24, %v1159_v3  ;;  %v1247_v54 = vrot.slane %v1233_v29, %v10756_v19 }
 0x363   : > { %v1200_v7 = vcombine.low %v1011_v56, %v1023_v16  ;;  %v1201_v25 = vcombine.high %v1011_v56, %v1023_v16  ;;  %v1216_v28 = vcombine.low %v1017_v58, %v1029_v10  ;;  %v1217_v21 = vcombine.high %v1017_v58, %v1029_v10  ;;  %10131 = vxpose.xlu1.b32.start.end [1/1] (short) (narrow) %v10130_v17, 8 }
 0x364   : > { %10152 = vxpose.xlu0.b32.start.end [1/1] (short) (narrow) %v10151_v18, 8  ;;  %v1249_v55 = vcombine.high %v1183_v8, %v1199_v15  ;;  %v1240_v58 = vrot.slane %v1232_v34, %v10756_v19  ;;  %v10165_v61 = vpack.i.bf16 %v1167_v47, %v1166_v46  ;;  %v1256_v63 = vrot.slane %v1248_v49, %v10756_v19  ;;  %v601_v18 = vld [vmem:[%s13220_s3] sm:$0xf] }
 0x365   : > { %v1208_v37 = vrot.slane %v1200_v7, %v10742_v1  ;;  %v1215_v38 = vrot.slane %v1201_v25, %v10742_v1  ;;  %v1224_v40 = vrot.slane %v1216_v28, %v10742_v1  ;;  %v1231_v42 = vrot.slane %v1217_v21, %v10742_v1  ;;  %10089 = vmatprep.subr.msk.bf16.mxu1 %vm944_vm10, %v601_v18 }
 0x366   : > { %v1263_v9 = vrot.slane %v1249_v55, %v10756_v19  ;;  %v3944_v6 = vmul.f32 %v10867_v41, %v10828_v20  ;;  %v3946_v22 = vmul.f32 %v10826_v4, %v10867_v41  ;;  %v3947_v28 = vmul.f32 %v10830_v12, %v10867_v41  ;;  %v9188_v4 = vld [vmem:[%s13227_s10] ss:$0 sm:$0xff]  ;;  %v10994_v46 = vpop.permute.xlu0 %4049 }
 0x367   : > { %v1265_v50 = vcombine.high %v1208_v37, %v1224_v40  ;;  %v1264_v51 = vcombine.low %v1208_v37, %v1224_v40  ;;  %v1281_v52 = vcombine.high %v1215_v38, %v1231_v42  ;;  %v1280_v53 = vcombine.low %v1215_v38, %v1231_v42 }
 0x368   : > { %10159 = vxpose.xlu0.b32.start.end [1/1] (short) (narrow) %v10158_v44, 8  ;;  %v3983_v7 = vadd.f32 %v10875_v43, %v3944_v6  ;;  %v3985_v25 = vadd.f32 %v10875_v43, %v3946_v22  ;;  %v3986_v21 = vadd.f32 %v10875_v43, %v3947_v28  ;;  %v3949_v20 = vmul.f32 %v10867_v41, %v10834_v13 }
 0x369   : > { %v1279_v56 = vrot.slane %v1265_v50, %v10756_v19  ;;  %v1272_v59 = vrot.slane %v1264_v51, %v10756_v19  ;;  %v1288_v60 = vrot.slane %v1280_v53, %v10756_v19  ;;  %v1295_v62 = vrot.slane %v1281_v52, %v10756_v19 }
 0x36a   : > { %v2529_v19 = vsel %vm944_vm10, %v601_v18, 0  ;;  %v3951_v12 = vmul.f32 %v10832_v23, %v10867_v41  ;;  %v3953_v34 = vmul.f32 %v10867_v41, %v10838_v27  ;;  %v3955_v13 = vmul.f32 %v10836_v26, %v10867_v41  ;;  %v10999_v47 = vpop.permute.xlu0 %4055 }
 0x36b   : > { %v1298_v0 = vcombine.low %v1247_v54, %v1279_v56  ;;  %v1299_v39 = vcombine.high %v1247_v54, %v1279_v56  ;;  %v1296_v2 = vcombine.low %v1240_v58, %v1272_v59  ;;  %v1297_v5 = vcombine.high %v1240_v58, %v1272_v59  ;;  %9695 = vmatpush3.bf16.msra.mxu1 %v2529_v19 }
 0x36c   : > { %10166 = vxpose.xlu0.b32.start.end [1/1] (short) (narrow) %v10165_v61, 8  ;;  %v1300_v8 = vcombine.low %v1256_v63, %v1288_v60  ;;  %v1301_v15 = vcombine.high %v1256_v63, %v1288_v60  ;;  %v1302_v3 = vcombine.low %v1263_v9, %v1295_v62  ;;  %v1303_v16 = vcombine.high %v1263_v9, %v1295_v62 }
 0x36d   : > { %v10172_v11 = vpack.i.bf16 %v1299_v39, %v1298_v0  ;;  %v10137_v14 = vpack.i.bf16 %v1297_v5, %v1296_v2  ;;  %10091 = vmatprep.subr.msk.bf16.mxu1 %vm644_vm0, %v10788_v45  ;;  %v3962_v45 = vmul.f32 %v10844_v33, %v10867_v41  ;;  %v3988_v33 = vadd.f32 %v10875_v43, %v3949_v20  ;;  %vm11654_vm0 = vmand %vm4931_vm14, %vm4938_vm15 }
 0x36e   : > { %v10144_v10 = vpack.i.bf16 %v1301_v15, %v1300_v8  ;;  %v10179_v17 = vpack.i.bf16 %v1303_v16, %v1302_v3  ;;  %v3990_v29 = vadd.f32 %v10875_v43, %v3951_v12  ;;  %v3992_v37 = vadd.f32 %v10875_v43, %v3953_v34  ;;  %v11001_v49 = vpop.permute.xlu0 %4059 }
 0x36f   : > { %10138 = vxpose.xlu1.b32.start.end [1/1] (short) (narrow) %v10137_v14, 8  ;;  %v4001_v24 = vadd.f32 %v10875_v43, %v3962_v45  ;;  %v3994_v23 = vadd.f32 %v10875_v43, %v3955_v13  ;;  %v3957_v38 = vmul.f32 %v10867_v41, %v10842_v32  ;;  %v3959_v40 = vmul.f32 %v10840_v31, %v10867_v41 }
 0x370   : > { %10173 = vxpose.xlu0.b32.start.end [1/1] (short) (narrow) %v10172_v11, 8  ;;  %v3961_v42 = vmul.f32 %v10867_v41, %v10848_v36  ;;  %v3963_v44 = vmul.f32 %v10846_v35, %v10867_v41  ;;  %v10570_v35 = vmov 1966171168  }
 0x371   : > { %v3996_v27 = vadd.f32 %v10875_v43, %v3957_v38  ;;  %v3998_v26 = vadd.f32 %v10875_v43, %v3959_v40  ;;  %v1849_v41 = vunpack.c.l.s4 %v10570_v35 }
 0x372   : > { %v4000_v32 = vadd.f32 %v10875_v43, %v3961_v42  ;;  %v4002_v31 = vadd.f32 %v10875_v43, %v3963_v44  ;;  %v11003_v36 = vpop.permute.xlu0 %4063 }
 0x373   : > { %10145 = vxpose.xlu1.b32.start.end [1/1] (short) (narrow) %v10144_v10, 8  ;;  %v1850_v53 = vunpack.c.0.s8 %v1849_v41 }
 0x374   : > { %10180 = vxpose.xlu0.b32.start.end [1/1] (short) (narrow) %v10179_v17, 8 }
 0x375   : > { %v11014_v43 = vsub.s32 %v1850_v53, %v10733_v57 }
 0x376   : > { %v11005_v50 = vpop.permute.xlu0 %4067 }
 0x37a   : > { %v11007_v51 = vpop.permute.xlu0 %4071 }
 0x37e   : > { %v11009_v52 = vpop.permute.xlu0 %4075 }
 0x382   : > { %v11011_v54 = vpop.permute.xlu0 %4079 }
 0x391   : > { %4047 = vrot.lane.b32.xlu1 %v3983_v7, %s10550_s26 }
 0x395   : > { %4051 = vrot.lane.b32.xlu1 %v3985_v25, %s10550_s26 }
 0x399   : > { %4053 = vrot.lane.b32.xlu1 %v3986_v21, %s10550_s26 }
 0x39d   : > { %4083 = vrot.lane.b32.xlu0 %v4001_v24, %s10550_s26  ;;  %4213 = vrot.lane.b32.xlu1 %v9188_v4, %s10550_s26 }
 0x3a1   : > { %4057 = vrot.lane.b32.xlu1 %v3988_v33, %s10550_s26 }
 0x3a5   : > { %4061 = vrot.lane.b32.xlu1 %v3990_v29, %s10550_s26 }
 0x3a9   : > { %4065 = vrot.lane.b32.xlu1 %v3992_v37, %s10550_s26 }
 0x3ad   : > { %4069 = vrot.lane.b32.xlu1 %v3994_v23, %s10550_s26 }
 0x3b1   : > { %4073 = vrot.lane.b32.xlu1 %v3996_v27, %s10550_s26 }
 0x3b5   : > { %4077 = vrot.lane.b32.xlu1 %v3998_v26, %s10550_s26 }
 0x3b9   : > { %4081 = vrot.lane.b32.xlu1 %v4000_v32, %s10550_s26 }
 0x3bd   : > { %4085 = vrot.lane.b32.xlu1 %v4002_v31, %s10550_s26 }
 0x3e3   : > { %v10132_v55 = vpop.trf.xlu1 }
 0x3e4   : > { %v10153_v56 = vpop.trf.xlu0  ;;  %v10136_v58 = vunpack.i.h.bf16 %v10132_v55  ;;  %v10133_v59 = vunpack.i.l.bf16 %v10132_v55 }
 0x3e5   : > { %v10157_v60 = vunpack.i.h.bf16 %v10153_v56  ;;  %v10154_v61 = vunpack.i.l.bf16 %v10153_v56 }
 0x3e6   : > { %v1817_v62 = vpack.c.bf16 %v10136_v58, %v10136_v58  ;;  %v1816_v63 = vpack.c.bf16 %v10133_v59, %v10133_v59 }
 0x3e7   : > { %v1819_v0 = vpack.c.bf16 %v10157_v60, %v10157_v60  ;;  %v1818_v39 = vpack.c.bf16 %v10154_v61, %v10154_v61 }
 0x3e8   : > { %v10160_v2 = vpop.trf.xlu0  ;;  %v1877_v5 = vrot.slane %v1817_v62, %v11014_v43  ;;  %v1854_v9 = vrot.slane %v1816_v63, %v11014_v43 }
 0x3e9   : > { %v10164_v11 = vunpack.i.h.bf16 %v10160_v2  ;;  %v1923_v14 = vrot.slane %v1819_v0, %v11014_v43  ;;  %v1900_v57 = vrot.slane %v1818_v39, %v11014_v43  ;;  %v10161_v8 = vunpack.i.l.bf16 %v10160_v2 }
 0x3ea   : > { %v1878_v15 = vcombine.high %v1877_v5, %v1877_v5  ;;  %v11021_v3 = vrot.slane %v1877_v5, %v11014_v43  ;;  %v1855_v16 = vcombine.high %v1854_v9, %v1854_v9  ;;  %v11024_v10 = vrot.slane %v1854_v9, %v11014_v43 }
 0x3eb   : > { %v1924_v17 = vcombine.high %v1923_v14, %v1923_v14  ;;  %v1931_v18 = vrot.slane %v1923_v14, %v11014_v43  ;;  %v1901_v19 = vcombine.high %v1900_v57, %v1900_v57  ;;  %v11028_v6 = vrot.slane %v1900_v57, %v11014_v43 }
 0x3ec   : > { %v11031_v22 = vrot.slane %v1878_v15, %v11014_v43  ;;  %v1893_v7 = vcombine.high %v11021_v3, %v11021_v3  ;;  %v11036_v25 = vrot.slane %v1855_v16, %v11014_v43  ;;  %v1870_v28 = vcombine.high %v11024_v10, %v11024_v10  ;;  %v10167_v21 = vpop.trf.xlu0 }
 0x3ed   : > { %v1938_v45 = vrot.slane %v1924_v17, %v11014_v43  ;;  %v1939_v4 = vcombine.high %v1931_v18, %v1931_v18  ;;  %v11042_v20 = vrot.slane %v1901_v19, %v11014_v43  ;;  %v1916_v24 = vcombine.high %v11028_v6, %v11028_v6 }
 0x3ee   : > { %v2216_v12 = vcombine.low %v11024_v10, %v11036_v25  ;;  %v11049_v33 = vcombine.low %v1870_v28, %v11021_v3  ;;  %v1821_v29 = vpack.c.bf16 %v10164_v11, %v10164_v11  ;;  %v1820_v34 = vpack.c.bf16 %v10161_v8, %v10161_v8 }
 0x3ef   : > { %v10139_v13 = vpop.trf.xlu1  ;;  %v11051_v37 = vcombine.low %v1938_v45, %v1939_v4  ;;  %v2219_v23 = vcombine.low %v11028_v6, %v11042_v20  ;;  %v11055_v38 = vcombine.low %v1916_v24, %v1931_v18  ;;  %v10171_v40 = vunpack.i.h.bf16 %v10167_v21 }
 0x3f0   : > { %v1969_v27 = vrot.slane %v1821_v29, %v11014_v43  ;;  %v1946_v26 = vrot.slane %v1820_v34, %v11014_v43  ;;  %v10168_v32 = vunpack.i.l.bf16 %v10167_v21  ;;  %v10143_v31 = vunpack.i.h.bf16 %v10139_v13  ;;  %v10174_v17 = vpop.trf.xlu0 }
 0x3f1   : > { %v2275_v42 = vrot.slane %v11055_v38, %v11014_v43  ;;  %v1823_v44 = vpack.c.bf16 %v10171_v40, %v10171_v40  ;;  %v10140_v14 = vunpack.i.l.bf16 %v10139_v13  ;;  %v10178_v29 = vunpack.i.h.bf16 %v10174_v17 }
 0x3f2   : > { %v1970_v35 = vcombine.high %v1969_v27, %v1969_v27  ;;  %v11062_v41 = vrot.slane %v1969_v27, %v11014_v43  ;;  %v1947_v53 = vcombine.high %v1946_v26, %v1946_v26  ;;  %v1954_v55 = vrot.slane %v1946_v26, %v11014_v43 }
 0x3f3   : > { %v2015_v56 = vrot.slane %v1823_v44, %v11014_v43  ;;  %v1822_v58 = vpack.c.bf16 %v10168_v32, %v10168_v32  ;;  %v1825_v59 = vpack.c.bf16 %v10143_v31, %v10143_v31  ;;  %v1824_v24 = vpack.c.bf16 %v10140_v14, %v10140_v14  ;;  %v10146_v40 = vpop.trf.xlu1 }
 0x3f4   : > { %v11067_v60 = vrot.slane %v1970_v35, %v11014_v43  ;;  %v1985_v61 = vcombine.high %v11062_v41, %v11062_v41  ;;  %v1961_v62 = vrot.slane %v1947_v53, %v11014_v43  ;;  %v1962_v63 = vcombine.high %v1954_v55, %v1954_v55  ;;  %v10181_v31 = vpop.trf.xlu0 }
 0x3f5   : > { %v2016_v0 = vcombine.high %v2015_v56, %v2015_v56  ;;  %v11073_v39 = vrot.slane %v2015_v56, %v11014_v43  ;;  %v1992_v2 = vrot.slane %v1822_v58, %v11014_v43  ;;  %v2061_v5 = vrot.slane %v1825_v59, %v11014_v43 }
 0x3f6   : > { %v2267_v9 = vcombine.low %v1954_v55, %v1961_v62  ;;  %v11078_v11 = vcombine.low %v1962_v63, %v11062_v41  ;;  %v2038_v44 = vrot.slane %v1824_v24, %v11014_v43  ;;  %v1827_v32 = vpack.c.bf16 %v10178_v29, %v10178_v29 }
 0x3f7   : > { %v11081_v57 = vrot.slane %v2016_v0, %v11014_v43  ;;  %v2031_v8 = vcombine.high %v11073_v39, %v11073_v39  ;;  %v1993_v15 = vcombine.high %v1992_v2, %v1992_v2  ;;  %v11086_v16 = vrot.slane %v1992_v2, %v11014_v43 }
 0x3f8   : > { %v11089_v18 = vrot.slane %v2267_v9, %v11014_v43  ;;  %v2296_v19 = vrot.slane %v11078_v11, %v11014_v43  ;;  %v2062_v28 = vcombine.high %v2061_v5, %v2061_v5  ;;  %v11094_v21 = vrot.slane %v2061_v5, %v11014_v43 }
 0x3f9   : > { %v11097_v45 = vrot.slane %v1993_v15, %v11014_v43  ;;  %v2008_v4 = vcombine.high %v11086_v16, %v11086_v16  ;;  %v10175_v35 = vunpack.i.l.bf16 %v10174_v17  ;;  %v10150_v53 = vunpack.i.h.bf16 %v10146_v40 }
 0x3fa   : > { %v11102_v34 = vrot.slane %v2062_v28, %v11014_v43  ;;  %v2039_v55 = vcombine.high %v2038_v44, %v2038_v44  ;;  %v11113_v56 = vrot.slane %v2038_v44, %v11014_v43  ;;  %v2107_v58 = vrot.slane %v1827_v32, %v11014_v43 }
 0x3fb   : > { %v2315_v27 = vcombine.low %v11086_v16, %v11097_v45  ;;  %v11109_v26 = vcombine.low %v2008_v4, %v11073_v39  ;;  %v10147_v59 = vunpack.i.l.bf16 %v10146_v40  ;;  %v1826_v62 = vpack.c.bf16 %v10175_v35, %v10175_v35 }
 0x3fc   : > { %v1829_v63 = vpack.c.bf16 %v10150_v53, %v10150_v53  ;;  %v10185_v0 = vunpack.i.h.bf16 %v10181_v31  ;;  %v11117_v2 = vrot.slane %v2039_v55, %v11014_v43  ;;  %v2054_v5 = vcombine.high %v11113_v56, %v11113_v56 }
 0x3fd   : > { %v2108_v9 = vcombine.high %v2107_v58, %v2107_v58  ;;  %v11122_v14 = vrot.slane %v2107_v58, %v11014_v43  ;;  %v2084_v15 = vrot.slane %v1826_v62, %v11014_v43  ;;  %v1828_v28 = vpack.c.bf16 %v10147_v59, %v10147_v59 }
 0x3fe   : > { %v2153_v17 = vrot.slane %v1829_v63, %v11014_v43  ;;  %v1831_v4 = vpack.c.bf16 %v10185_v0, %v10185_v0  ;;  %v2363_v24 = vcombine.low %v11113_v56, %v11117_v2  ;;  %v11129_v29 = vcombine.low %v2054_v5, %v11094_v21 }
 0x3ff   : > { %v11132_v40 = vrot.slane %v2108_v9, %v11014_v43  ;;  %v2085_v32 = vcombine.high %v2084_v15, %v2084_v15  ;;  %v2092_v35 = vrot.slane %v2084_v15, %v11014_v43  ;;  %v2130_v58 = vrot.slane %v1828_v28, %v11014_v43 }
 0x400   : > { %v2154_v53 = vcombine.high %v2153_v17, %v2153_v17  ;;  %v11138_v55 = vrot.slane %v2153_v17, %v11014_v43  ;;  %v2199_v56 = vrot.slane %v1831_v4, %v11014_v43  ;;  %v10182_v59 = vunpack.i.l.bf16 %v10181_v31 }
 0x401   : > { %v2099_v62 = vrot.slane %v2085_v32, %v11014_v43  ;;  %v2100_v63 = vcombine.high %v2092_v35, %v2092_v35  ;;  %v2131_v5 = vcombine.high %v2130_v58, %v2130_v58  ;;  %v2138_v9 = vrot.slane %v2130_v58, %v11014_v43 }
 0x402   : > { %v2168_v0 = vrot.slane %v2154_v53, %v11014_v43  ;;  %v2169_v2 = vcombine.high %v11138_v55, %v11138_v55  ;;  %v2200_v15 = vcombine.high %v2199_v56, %v2199_v56  ;;  %v2207_v17 = vrot.slane %v2199_v56, %v11014_v43 }
 0x403   : > { %v2366_v30 = vcombine.low %v2092_v35, %v2099_v62  ;;  %v11149_v28 = vcombine.low %v2100_v63, %v11122_v14  ;;  %v1830_v4 = vpack.c.bf16 %v10182_v59, %v10182_v59  ;;  %v2218_v31 = vcombine.low %v11031_v22, %v1893_v7 }
 0x404   : > { %v2145_v32 = vrot.slane %v2131_v5, %v11014_v43  ;;  %v2146_v53 = vcombine.high %v2138_v9, %v2138_v9  ;;  %v2214_v44 = vrot.slane %v2200_v15, %v11014_v43  ;;  %v2215_v13 = vcombine.high %v2207_v17, %v2207_v17 }
 0x405   : > { %v2176_v58 = vrot.slane %v1830_v4, %v11014_v43  ;;  %v2226_v35 = vrot.slane %v2216_v12, %v11014_v43  ;;  %v2233_v56 = vrot.slane %v11049_v33, %v11014_v43  ;;  %v2240_v3 = vrot.slane %v2218_v31, %v11014_v43 }
 0x406   : > { %v2414_v59 = vcombine.low %v2138_v9, %v2145_v32  ;;  %v2415_v22 = vcombine.low %v2146_v53, %v11138_v55  ;;  %v2247_v7 = vrot.slane %v2219_v23, %v11014_v43  ;;  %v2282_v62 = vrot.slane %v11051_v37, %v11014_v43 }
 0x407   : > { %v2177_v63 = vcombine.high %v2176_v58, %v2176_v58  ;;  %v2184_v10 = vrot.slane %v2176_v58, %v11014_v43  ;;  %v2248_v25 = vcombine.low %v2226_v35, %v2233_v56  ;;  %v2298_v12 = vcombine.low %v11089_v18, %v2296_v19 }
 0x408   : > { %v2249_v33 = vcombine.low %v2240_v3, %v2247_v7  ;;  %v2297_v55 = vcombine.low %v2275_v42, %v2282_v62  ;;  %v2314_v6 = vcombine.low %v11067_v60, %v1985_v61  ;;  %v2317_v20 = vcombine.low %v11081_v57, %v2031_v8 }
 0x409   : > { %v2191_v37 = vrot.slane %v2177_v63, %v11014_v43  ;;  %v2192_v23 = vcombine.high %v2184_v10, %v2184_v10  ;;  %v2256_v11 = vrot.slane %v2248_v25, %v11014_v43  ;;  %v2312_v18 = vrot.slane %v2298_v12, %v11014_v43 }
 0x40a   : > { %v2263_v38 = vrot.slane %v2249_v33, %v11014_v43  ;;  %v2305_v42 = vrot.slane %v2297_v55, %v11014_v43  ;;  %v2324_v41 = vrot.slane %v2314_v6, %v11014_v43  ;;  %v2331_v60 = vrot.slane %v2315_v27, %v11014_v43  ;;  %v3632_v55 = vld [vmem:[%s10782_s20 + $0x50] sm:$0xff]  }
 0x40b   : > { %v2462_v61 = vcombine.low %v2184_v10, %v2191_v37  ;;  %v2463_v39 = vcombine.low %v2192_v23, %v2207_v17  ;;  %v2338_v57 = vrot.slane %v11109_v26, %v11014_v43  ;;  %v2345_v8 = vrot.slane %v2317_v20, %v11014_v43  ;;  %v3634_v20 = vld [vmem:[%s10782_s20 + $0x58] sm:$0xff]   ;;  %v3636_v37 = vld [vmem:[%s10782_s20 + $0x60] sm:$0xff]   ;;  %v3638_v23 = vld [vmem:[%s10782_s20 + $0x68] sm:$0xff]  }
 0x40c   : > { %v2264_v19 = vcombine.low %v2256_v11, %v2263_v38  ;;  %v2313_v5 = vcombine.low %v2305_v42, %v2312_v18  ;;  %v2346_v9 = vcombine.low %v2324_v41, %v2331_v60  ;;  %v13244_v15 = vcombine.high %v11094_v21, %v11094_v21  ;;  %v3640_v11 = vld [vmem:[%s10782_s20 + $0x70] sm:$0xff]  }
 0x40d   : > { %v2347_v31 = vcombine.low %v2338_v57, %v2345_v8  ;;  %v2373_v32 = vrot.slane %v2363_v24, %v11014_v43  ;;  %v2380_v16 = vrot.slane %v11129_v29, %v11014_v43  ;;  %v2394_v45 = vrot.slane %v2366_v30, %v11014_v43 }
 0x40e   : > { %v2365_v4 = vcombine.low %v11102_v34, %v13244_v15  ;;  %9696 = vmatprep.mubr.msk.bf16.mxu1 %vm940_vm11, %v2264_v19  ;;  %v2354_v27 = vrot.slane %v2346_v9, %v11014_v43  ;;  %v13245_v17 = vcombine.high %v11122_v14, %v11122_v14  ;;  %v2422_v34 = vrot.slane %v11149_v28, %v11014_v43 }
 0x40f   : > { %9697 = vmatmul.mubr.msk.bf16.vlgmr.msra.gmra.mrb[4].mxu1 %vm940_vm11, %v2313_v5  ;;  %v2361_v24 = vrot.slane %v2347_v31, %v11014_v43  ;;  %v2395_v29 = vcombine.low %v2373_v32, %v2380_v16  ;;  %v2436_v30 = vrot.slane %v2414_v59, %v11014_v43  ;;  %v2443_v53 = vrot.slane %v2415_v22, %v11014_v43 }
 0x410   : > { %v2387_v26 = vrot.slane %v2365_v4, %v11014_v43  ;;  %v2413_v21 = vcombine.low %v11132_v40, %v13245_v17  ;;  %v2461_v56 = vcombine.low %v2168_v0, %v2169_v2  ;;  %v2464_v3 = vcombine.low %v2214_v44, %v2215_v13  ;;  %9959 = vmatpush3.bf16.msra.mxu1 %v10796_v48 }
 0x411   : > { %v2362_v14 = vcombine.low %v2354_v27, %v2361_v24  ;;  %v2403_v40 = vrot.slane %v2395_v29, %v11014_v43  ;;  %v2445_v28 = vcombine.low %v2436_v30, %v2443_v53  ;;  %v2478_v7 = vrot.slane %v2462_v61, %v11014_v43 }
 0x412   : > { %v2396_v58 = vcombine.low %v2387_v26, %v2394_v45  ;;  %v2429_v35 = vrot.slane %v2413_v21, %v11014_v43  ;;  %v2471_v59 = vrot.slane %v2461_v56, %v11014_v43  ;;  %v2485_v22 = vrot.slane %v2463_v39, %v11014_v43 }
 0x413   : > { %9700 = vmatprep.mubr.msk.bf16.mxu1 %vm940_vm11, %v2362_v14  ;;  %v2459_v13 = vrot.slane %v2445_v28, %v11014_v43  ;;  %v2492_v48 = vrot.slane %v2464_v3, %v11014_v43 }
 0x414   : > { %v2410_v62 = vrot.slane %v2396_v58, %v11014_v43  ;;  %v2444_v63 = vcombine.low %v2422_v34, %v2429_v35  ;;  %v2493_v2 = vcombine.low %v2471_v59, %v2478_v7 }
 0x415   : > { %v2494_v10 = vcombine.low %v2485_v22, %v2492_v48 }
 0x416   : > { %v2411_v44 = vcombine.low %v2403_v40, %v2410_v62  ;;  %v2452_v0 = vrot.slane %v2444_v63, %v11014_v43  ;;  %v2501_v12 = vrot.slane %v2493_v2, %v11014_v43 }
 0x417   : > { %v2508_v33 = vrot.slane %v2494_v10, %v11014_v43  ;;  %v3642_v43 = vld [vmem:[%s10782_s20 + $0x78] sm:$0xff]  }
 0x418   : > { %v2460_v25 = vcombine.low %v2452_v0, %v2459_v13  ;;  %9701 = vmatmul.mubr.msk.bf16.gmra.mrb[8].mxu1 %vm940_vm11, %v2411_v44 }
 0x419   : > { %v2509_v6 = vcombine.low %v2501_v12, %v2508_v33 }
 0x41a   : > { %9704 = vmatprep.mubr.msk.bf16.mxu1 %vm940_vm11, %v2460_v25 }
 0x420   : > { %9705 = vmatmul.mubr.msk.bf16.gmra.mrb[12].mxu1 %vm940_vm11, %v2509_v6 }
 0x421   : > { %9730 = vmatprep.mubr.msk.bf16.mxu1 %vm631_vm1, %v3632_v55 }
 0x428   : > { %9731 = vmatmul.mubr.msk.bf16.vlgmr.msra.gmra.mrb[16].mxu1 %vm631_vm1, %v3634_v20 }
 0x429   : > { %9734 = vmatprep.mubr.msk.bf16.mxu1 %vm631_vm1, %v3636_v37 }
 0x430   : > { %9735 = vmatmul.mubr.msk.bf16.gmra.mrb[20].mxu1 %vm631_vm1, %v3638_v23 }
 0x431   : > { %9738 = vmatprep.mubr.msk.bf16.mxu1 %vm631_vm1, %v3640_v11 }
 0x438   : > { %9739 = vmatmul.mubr.msk.bf16.gmra.mrb[24].mxu1 %vm631_vm1, %v3642_v43 }
 0x4e2   : > { %v9698_v18 = vpop.f32.mrb[4].mxu1 }
 0x4e3   : > { %v2658_v38 = vcombine.high %v9698_v18, %v9698_v18  ;;  %v11251_v42 = vrot.slane %v9698_v18, %v10742_v1  ;;  %v2565_v41 = vpop.f32.mrb[5].mxu1 }
 0x4e4   : > { %v2624_v60 = vcombine.high %v2565_v41, %v2565_v41  ;;  %v2631_v61 = vrot.slane %v2565_v41, %v10742_v1  ;;  %v9699_v39 = vpop.f32.mrb[6].mxu1 }
 0x4e5   : > { %v2672_v57 = vrot.slane %v2658_v38, %v10742_v1  ;;  %v2673_v8 = vcombine.high %v11251_v42, %v11251_v42  ;;  %v2675_v19 = vcombine.high %v9699_v39, %v9699_v39  ;;  %v2682_v5 = vrot.slane %v9699_v39, %v10742_v1  ;;  %v2568_v9 = vpop.f32.mrb[7].mxu1 }
 0x4e6   : > { %v2638_v15 = vrot.slane %v2624_v60, %v10742_v1  ;;  %v2639_v4 = vcombine.high %v2631_v61, %v2631_v61  ;;  %v2641_v31 = vcombine.high %v2568_v9, %v2568_v9  ;;  %v2648_v32 = vrot.slane %v2568_v9, %v10742_v1 }
 0x4e7   : > { %v2674_v16 = vcombine.high %v2672_v57, %v2672_v57  ;;  %v2876_v45 = vcombine.low %v2673_v8, %v2672_v57  ;;  %v2689_v27 = vrot.slane %v2675_v19, %v10742_v1  ;;  %v2690_v26 = vcombine.high %v2682_v5, %v2682_v5 }
 0x4e8   : > { %v2828_v17 = vcombine.low %v2631_v61, %v2639_v4  ;;  %v2640_v21 = vcombine.high %v2638_v15, %v2638_v15  ;;  %v2842_v34 = vrot.slane %v2638_v15, %v10742_v1  ;;  %v2655_v24 = vrot.slane %v2641_v31, %v10742_v1 }
 0x4e9   : > { %v2883_v29 = vrot.slane %v2876_v45, %v10742_v1  ;;  %v2892_v53 = vcombine.low %v2682_v5, %v2690_v26  ;;  %v2890_v56 = vrot.slane %v2674_v16, %v10742_v1  ;;  %v2656_v3 = vcombine.high %v2648_v32, %v2648_v32 }
 0x4ea   : > { %v2835_v30 = vrot.slane %v2828_v17, %v10742_v1  ;;  %v2844_v58 = vcombine.low %v2640_v21, %v2648_v32  ;;  %v2691_v7 = vcombine.high %v2689_v27, %v2689_v27  ;;  %v2657_v12 = vcombine.high %v2655_v24, %v2655_v24 }
 0x4eb   : > { %v9702_v35 = vpop.f32.mrb[8].mxu1  ;;  %v2891_v59 = vcombine.low %v2883_v29, %v2890_v56  ;;  %v2899_v55 = vrot.slane %v2892_v53, %v10742_v1  ;;  %v2858_v23 = vrot.slane %v2656_v3, %v10742_v1  ;;  %v2906_v18 = vrot.slane %v2689_v27, %v10742_v1 }
 0x4ec   : > { %v2726_v14 = vcombine.high %v9702_v35, %v9702_v35  ;;  %v2733_v40 = vrot.slane %v9702_v35, %v10742_v1  ;;  %v2581_v28 = vpop.f32.mrb[9].mxu1  ;;  %v2843_v22 = vcombine.low %v2835_v30, %v2842_v34  ;;  %v2851_v37 = vrot.slane %v2844_v58, %v10742_v1 }
 0x4ed   : > { %v2692_v62 = vcombine.high %v2581_v28, %v2581_v28  ;;  %v2699_v63 = vrot.slane %v2581_v28, %v10742_v1  ;;  %v9703_v13 = vpop.f32.mrb[10].mxu1  ;;  %3196 = vxpose.xlu1.b32.start.end [1/1] (short) (narrow) %v2891_v59, 16  ;;  %v2907_v8 = vcombine.low %v2899_v55, %v2906_v18  ;;  %v2860_v9 = vcombine.low %v2655_v24, %v2657_v12 }
 0x4ee   : > { %v11269_v48 = vrot.slane %v2726_v14, %v10742_v1  ;;  %v2743_v44 = vcombine.high %v9703_v13, %v9703_v13  ;;  %v2750_v0 = vrot.slane %v9703_v13, %v10742_v1  ;;  %v2584_v2 = vpop.f32.mrb[11].mxu1  ;;  %3100 = vxpose.xlu0.b32.start.end [1/1] (short) (narrow) %v2843_v22, 16  ;;  %v2741_v6 = vcombine.high %v2733_v40, %v2733_v40 }
 0x4ef   : > { %v2707_v10 = vcombine.high %v2699_v63, %v2699_v63  ;;  %v2908_v25 = vcombine.low %v2691_v7, %v2699_v63  ;;  %v2706_v20 = vrot.slane %v2692_v62, %v10742_v1  ;;  %v2709_v41 = vcombine.high %v2584_v2, %v2584_v2 }
 0x4f0   : > { %v2742_v33 = vcombine.high %v11269_v48, %v11269_v48  ;;  %v11279_v11 = vrot.slane %v2743_v44, %v10742_v1  ;;  %v2859_v60 = vcombine.low %v2851_v37, %v2858_v23  ;;  %v11285_v57 = vrot.slane %v2584_v2, %v10742_v1 }
 0x4f1   : > { %v2915_v38 = vrot.slane %v2908_v25, %v10742_v1  ;;  %v2922_v39 = vrot.slane %v2707_v10, %v10742_v1  ;;  %v2956_v15 = vcombine.low %v2733_v40, %v2741_v6  ;;  %v2758_v4 = vcombine.high %v2750_v0, %v2750_v0 }
 0x4f2   : > { %v2972_v43 = vcombine.low %v2742_v33, %v2750_v0  ;;  %3132 = vxpose.xlu1.b32.start.end [1/1] (short) (narrow) %v2859_v60, 16  ;;  %v2708_v45 = vcombine.high %v2706_v20, %v2706_v20  ;;  %v2759_v27 = vcombine.high %v11279_v11, %v11279_v11  ;;  %v2867_v26 = vrot.slane %v2860_v9, %v10742_v1 }
 0x4f3   : > { %v9706_v61 = vpop.f32.mrb[12].mxu1  ;;  %v2923_v32 = vcombine.low %v2915_v38, %v2922_v39  ;;  %3228 = vxpose.xlu0.b32.start.end [1/1] (short) (narrow) %v2907_v8, 16  ;;  %v2874_v17 = vrot.slane %v11251_v42, %v10742_v1  ;;  %v2723_v34 = vrot.slane %v2709_v41, %v10742_v1  ;;  %v2724_v53 = vcombine.high %v11285_v57, %v11285_v57 }
 0x4f4   : > { %v2794_v19 = vcombine.high %v9706_v61, %v9706_v61  ;;  %v2597_v5 = vpop.f32.mrb[13].mxu1  ;;  %v2801_v58 = vrot.slane %v9706_v61, %v10742_v1  ;;  %v2979_v7 = vrot.slane %v2972_v43, %v10742_v1  ;;  %v2986_v62 = vrot.slane %v2758_v4, %v10742_v1 }
 0x4f5   : > { %v2760_v31 = vcombine.high %v2597_v5, %v2597_v5  ;;  %v9707_v16 = vpop.f32.mrb[14].mxu1  ;;  %v2767_v29 = vrot.slane %v2597_v5, %v10742_v1  ;;  %v2875_v35 = vcombine.low %v2867_v26, %v2874_v17  ;;  %v2963_v63 = vrot.slane %v2956_v15, %v10742_v1 }
 0x4f6   : > { %v2600_v21 = vpop.f32.mrb[15].mxu1  ;;  %v2808_v24 = vrot.slane %v2794_v19, %v10742_v1  ;;  %v2811_v56 = vcombine.high %v9707_v16, %v9707_v16  ;;  %v2818_v28 = vrot.slane %v9707_v16, %v10742_v1  ;;  %v2970_v44 = vrot.slane %v11269_v48, %v10742_v1 }
 0x4f7   : > { %v2777_v30 = vcombine.high %v2600_v21, %v2600_v21  ;;  %v2774_v3 = vrot.slane %v2760_v31, %v10742_v1  ;;  %v2775_v14 = vcombine.high %v2767_v29, %v2767_v29  ;;  %v2784_v42 = vrot.slane %v2600_v21, %v10742_v1  ;;  %3260 = vxpose.xlu1.b32.start.end [1/1] (short) (narrow) %v2923_v32, 16 }
 0x4f8   : > { %v2810_v59 = vcombine.high %v2808_v24, %v2808_v24  ;;  %3164 = vxpose.xlu0.b32.start.end [1/1] (short) (narrow) %v2875_v35, 16  ;;  %v2987_v2 = vcombine.low %v2979_v7, %v2986_v62  ;;  %v2725_v10 = vcombine.high %v2723_v34, %v2723_v34  ;;  %v2940_v25 = vcombine.low %v2724_v53, %v2723_v34 }
 0x4f9   : > { %v2791_v40 = vrot.slane %v2777_v30, %v10742_v1  ;;  %v2792_v22 = vcombine.high %v2784_v42, %v2784_v42  ;;  %v2924_v12 = vcombine.low %v2706_v20, %v2708_v45  ;;  %v2971_v37 = vcombine.low %v2963_v63, %v2970_v44  ;;  %v11346_v44 = vpop.permute.xlu1 %4047 }
 0x4fa   : > { %v2938_v23 = vrot.slane %v11285_v57, %v10742_v1  ;;  %v2947_v18 = vrot.slane %v2940_v25, %v10742_v1  ;;  %v2954_v38 = vrot.slane %v2725_v10, %v10742_v1  ;;  %v2776_v41 = vcombine.high %v2774_v3, %v2774_v3 }
 0x4fb   : > { %v2793_v13 = vcombine.high %v2791_v40, %v2791_v40  ;;  %v11307_v0 = vpop.f32.mrb[16].mxu1  ;;  %v3020_v55 = vcombine.low %v2784_v42, %v2792_v22  ;;  %v2931_v48 = vrot.slane %v2924_v12, %v10742_v1  ;;  %v2809_v61 = vcombine.high %v2801_v58, %v2801_v58  ;;  %v11343_v22 = vld [vmem:[%s13225_s8] ss:$0 sm:$0xff] }
 0x4fc   : > { %v11309_v33 = vpop.f32.mrb[17].mxu1  ;;  %3388 = vxpose.xlu1.b32.start.end [1/1] (short) (narrow) %v2987_v2, 16  ;;  %v3004_v20 = vcombine.low %v2775_v14, %v2774_v3  ;;  %v2988_v39 = vcombine.low %v11279_v11, %v2759_v27  ;;  %v3002_v8 = vrot.slane %v2767_v29, %v10742_v1  ;;  %v3052_v19 = vcombine.low %v2808_v24, %v2810_v59 }
 0x4fd   : > { %v3036_v6 = vcombine.low %v2793_v13, %v2801_v58  ;;  %v9733_v43 = vpop.f32.mrb[18].mxu1  ;;  %v2825_v5 = vrot.slane %v2811_v56, %v10742_v1  ;;  %v2826_v57 = vcombine.high %v2818_v28, %v2818_v28  ;;  %3356 = vxpose.xlu0.b32.start.end [1/1] (short) (narrow) %v2971_v37, 16  ;;  %v2939_v9 = vcombine.low %v2931_v48, %v2938_v23  ;;  %v11355_v25 = vpop.permute.xlu1 %4051 }
 0x4fe   : > { %v3893_v60 = vpop.f32.mrb[19].mxu1  ;;  %v3011_v15 = vrot.slane %v3004_v20, %v10742_v1  ;;  %v3018_v4 = vrot.slane %v2776_v41, %v10742_v1  ;;  %v2995_v31 = vrot.slane %v2988_v39, %v10742_v1  ;;  %v3066_v32 = vrot.slane %v2818_v28, %v10742_v1 }
 0x4ff   : > { %v3027_v16 = vrot.slane %v3020_v55, %v10742_v1  ;;  %v3034_v11 = vrot.slane %v2791_v40, %v10742_v1  ;;  %v2955_v45 = vcombine.low %v2947_v18, %v2954_v38  ;;  %v3050_v27 = vrot.slane %v2809_v61, %v10742_v1  ;;  %v11370_v61 = vpop.permute.xlu0 %4083 }
 0x500   : > { %v3003_v26 = vcombine.low %v2995_v31, %v3002_v8  ;;  %v2827_v21 = vcombine.high %v2825_v5, %v2825_v5  ;;  %v3068_v34 = vcombine.low %v2826_v57, %v2825_v5  ;;  %v3059_v24 = vrot.slane %v3052_v19, %v10742_v1 }
 0x501   : > { %3324 = vxpose.xlu1.b32.start.end [1/1] (short) (narrow) %v2955_v45, 16  ;;  %v3019_v30 = vcombine.low %v3011_v15, %v3018_v4  ;;  %v3043_v53 = vrot.slane %v3036_v6, %v10742_v1  ;;  %v11332_v3 = vcombine.low %v3027_v16, %v3034_v11  ;;  %v3967_v13 = vmul.f32 %v11343_v22, %v9733_v43  ;;  %v4054_v37 = vpop.permute.xlu1 %4053 }
 0x502   : > { %3292 = vxpose.xlu0.b32.start.end [1/1] (short) (narrow) %v2939_v9, 16  ;;  %v3067_v35 = vcombine.low %v3059_v24, %v3066_v32  ;;  %v3075_v42 = vrot.slane %v3068_v34, %v10742_v1  ;;  %v3082_v40 = vrot.slane %v2827_v21, %v10742_v1  ;;  %v11351_v1 = vld [vmem:[%s13226_s9] ss:$0 sm:$0xff]  ;;  %v3965_v10 = vmul.f32 %v11343_v22, %v3893_v60 }
 0x503   : > { %v11326_v17 = vpop.f32.mrb[20].mxu1  ;;  %v3051_v14 = vcombine.low %v3043_v53, %v3050_v27  ;;  %v4006_v2 = vadd.f32 %v11351_v1, %v3967_v13  ;;  %v3966_v12 = vmul.f32 %v11343_v22, %v11307_v0  ;;  %v13246_v16 = vmov 0  }
 0x504   : > { %v11329_v29 = vpop.f32.mrb[21].mxu1  ;;  %v3083_v7 = vcombine.low %v3075_v42, %v3082_v40  ;;  %v4004_v55 = vadd.f32 %v11351_v1, %v3965_v10  ;;  %v3964_v11 = vmul.f32 %v11343_v22, %v11309_v33  ;;  %4929 = vst.msk [vmem:[#allocation2] sm:$0xf] %vm4928_vm13, %v13246_v16  ;;  %4930 = vst.msk [vmem:[#allocation2 + $0x4] sm:$0xf] %vm4928_vm13, %v13246_v16 }
 0x505   : > { %v9737_v58 = vpop.f32.mrb[22].mxu1  ;;  %v4005_v6 = vadd.f32 %v11351_v1, %v3966_v12  ;;  %v11364_v23 = vpop.permute.xlu1 %4213  ;;  %4932 = vst.msk [vmem:[#allocation2 + $0x8] sm:$0x1] %vm4931_vm14, %v13246_v16  ;;  %4936 = vst.msk [vmem:[#allocation2 + $0xd4] sm:$0x1] %vm4931_vm14, %v13246_v16 }
 0x506   : > { %v3909_v56 = vpop.f32.mrb[23].mxu1  ;;  %3452 = vxpose.xlu1.b32.start.end [1/1] (short) (narrow) %v3019_v30, 16  ;;  %v3971_v9 = vmul.f32 %v11343_v22, %v9737_v58  ;;  %v4003_v34 = vadd.f32 %v11351_v1, %v3964_v11  ;;  %4934 = vst.msk [vmem:[#allocation2 + $0xcc] sm:$0xf] %vm4928_vm13, %v13246_v16  ;;  %4935 = vst.msk [vmem:[#allocation2 + $0xd0] sm:$0xf] %vm4928_vm13, %v13246_v16 }
 0x507   : > { %3420 = vxpose.xlu0.b32.start.end [1/1] (short) (narrow) %v3003_v26, 16  ;;  %v3969_v32 = vmul.f32 %v11343_v22, %v3909_v56  ;;  %7064 = vst.msk [vmem:[#allocation3] sm:$0xf] %vm4928_vm13, %v13246_v16  ;;  %7065 = vst.msk [vmem:[#allocation3 + $0x4] sm:$0xf] %vm4928_vm13, %v13246_v16 }
 0x508   : > { %v4010_v4 = vadd.f32 %v11351_v1, %v3971_v9  ;;  %7066 = vst.msk [vmem:[#allocation3 + $0x8] sm:$0x1] %vm4931_vm14, %v13246_v16  ;;  %7070 = vst.msk [vmem:[#allocation3 + $0xd4] sm:$0x1] %vm4931_vm14, %v13246_v16 }
 0x509   : > { %v4058_v43 = vpop.permute.xlu1 %4057  ;;  %v4008_v27 = vadd.f32 %v11351_v1, %v3969_v32  ;;  %7068 = vst.msk [vmem:[#allocation3 + $0xcc] sm:$0xf] %vm4928_vm13, %v13246_v16  ;;  %7069 = vst.msk [vmem:[#allocation3 + $0xd0] sm:$0xf] %vm4928_vm13, %v13246_v16 }
 0x50b   : > { %v11336_v28 = vpop.f32.mrb[24].mxu1  ;;  %3580 = vxpose.xlu1.b32.start.end [1/1] (short) (narrow) %v3083_v7, 16 }
 0x50c   : > { %v11338_v62 = vpop.f32.mrb[25].mxu1 }
 0x50d   : > { %v9741_v63 = vpop.f32.mrb[26].mxu1  ;;  %v4062_v18 = vpop.permute.xlu1 %4061 }
 0x50e   : > { %v3925_v59 = vpop.f32.mrb[27].mxu1  ;;  %v3975_v21 = vmul.f32 %v11343_v22, %v9741_v63 }
 0x50f   : > { %v3973_v33 = vmul.f32 %v11343_v22, %v3925_v59 }
 0x510   : > { %v4014_v24 = vadd.f32 %v11351_v1, %v3975_v21 }
 0x511   : > { %v4066_v38 = vpop.permute.xlu1 %4065 }
 0x515   : > { %v4070_v48 = vpop.permute.xlu1 %4069 }
 0x519   : > { %v11366_v41 = vpop.permute.xlu1 %4073 }
 0x51d   : > { %v11368_v0 = vpop.permute.xlu1 %4077 }
 0x521   : > { %v4082_v60 = vpop.permute.xlu1 %4081 }
 0x525   : > { %v11372_v20 = vpop.permute.xlu1 %4085 }
 0x52d   : > { %4093 = vrot.lane.b32.xlu1 %v4006_v2, %s10550_s26 }
 0x531   : > { %4089 = vrot.lane.b32.xlu1 %v4004_v55, %s10550_s26 }
 0x534   : > { %4091 = vrot.lane.b32.xlu0 %v4005_v6, %s10550_s26 }
 0x552   : > { %3548 = vxpose.xlu0.b32.start.end [1/1] (short) (narrow) %v3067_v35, 16  ;;  %v4012_v35 = vadd.f32 %v11351_v1, %v3973_v33 }
 0x55a   : > { %3516 = vxpose.xlu1.b32.start.end [1/1] (short) (narrow) %v3051_v14, 16 }
 0x56d   : > { %v11374_v39 = vpop.trf.xlu1 }
 0x56e   : > { %v11376_v8 = vpop.trf.xlu0 }
 0x571   : > { %v11378_v19 = vpop.trf.xlu1 }
 0x572   : > { %v11380_v5 = vpop.trf.xlu0  ;;  %v4150_v58 = vadd.f32 %v4062_v18, %v11378_v19 }
 0x573   : > { %v4144_v42 = vadd.f32 %v10994_v46, %v11380_v5 }
 0x574   : > { %v4182_v14 = vmax.f32 %v4150_v58, 0.0 }
 0x575   : > { %v11382_v57 = vpop.trf.xlu1  ;;  %v4176_v59 = vmax.f32 %v4144_v42, 0.0 }
 0x576   : > { %v11385_v15 = vpop.trf.xlu0  ;;  %v4223_v63 = vmul.f32 %v11364_v23, %v4182_v14 }
 0x577   : > { %v4217_v46 = vmul.f32 %v11364_v23, %v4176_v59 }
 0x578   : > { %10186 = vset.pattern.permute.xlu1 %v13246_v16 }
 0x579   : > { %v11388_v31 = vpop.trf.xlu1 }
 0x57a   : > { %v11394_v45 = vpop.trf.xlu0  ;;  %v4146_v12 = vadd.f32 %v4054_v37, %v11388_v31 }
 0x57b   : > { %v4152_v13 = vadd.f32 %v4066_v38, %v11394_v45 }
 0x57c   : > { %4101 = vrot.lane.b32.xlu1 %v4010_v4, %s10550_s26  ;;  %v4178_v18 = vmax.f32 %v4146_v12, 0.0 }
 0x57d   : > { %v11398_v26 = vpop.trf.xlu1  ;;  %v4184_v55 = vmax.f32 %v4152_v13, 0.0 }
 0x57e   : > { %v11408_v53 = vpop.trf.xlu0  ;;  %v4219_v11 = vmul.f32 %v11364_v23, %v4178_v18 }
 0x57f   : > { %4087 = vrot.lane.b32.xlu0 %v4003_v34, %s10550_s26  ;;  %v4225_v9 = vmul.f32 %v11364_v23, %v4184_v55 }
 0x580   : > { %4097 = vrot.lane.b32.xlu1 %v4008_v27, %s10550_s26 }
 0x581   : > { %v11405_v30 = vpop.trf.xlu1 }
 0x582   : > { %v11417_v40 = vpop.trf.xlu0  ;;  %v4154_v37 = vadd.f32 %v4070_v48, %v11405_v30 }
 0x583   : > { %v4148_v38 = vadd.f32 %v4058_v43, %v11417_v40 }
 0x584   : > { %4109 = vrot.lane.b32.xlu1 %v4014_v24, %s10550_s26  ;;  %v4186_v24 = vmax.f32 %v4154_v37, 0.0 }
 0x585   : > { %v11413_v56 = vpop.trf.xlu1  ;;  %v4180_v27 = vmax.f32 %v4148_v38, 0.0 }
 0x586   : > { %v11427_v10 = vpop.trf.xlu0  ;;  %v4227_v48 = vmul.f32 %v11364_v23, %v4186_v24 }
 0x587   : > { %v4221_v43 = vmul.f32 %v11364_v23, %v4180_v27 }
 0x588   : > { %4105 = vrot.lane.b32.xlu1 %v4012_v35, %s10550_s26 }
 0x589   : > { %v11420_v7 = vpop.trf.xlu1 }
 0x58a   : > { %v11436_v4 = vpop.trf.xlu0  ;;  %v4162_v35 = vadd.f32 %v11372_v20, %v11420_v7 }
 0x58b   : > { %v4160_v33 = vadd.f32 %v4082_v60, %v11436_v4 }
 0x58c   : > { %4294 = vrot.lane.b32.xlu1 %v4223_v63, %s10571_s25  ;;  %v4194_v59 = vmax.f32 %v4162_v35, 0.0 }
 0x58d   : > { %v11425_v2 = vpop.trf.xlu1  ;;  %v4192_v14 = vmax.f32 %v4160_v33, 0.0 }
 0x58e   : > { %v11446_v34 = vpop.trf.xlu0 }
 0x58f   : > { %v4233_v60 = vmul.f32 %v11364_v23, %v4192_v14  ;;  %v3968_v14 = vmul.f32 %v11343_v22, %v11329_v29 }
 0x590   : > { %4282 = vrot.lane.b32.xlu1 %v4217_v46, %s10571_s25  ;;  %v4235_v46 = vmul.f32 %v11364_v23, %v4194_v59 }
 0x591   : > { %v11432_v6 = vpop.trf.xlu1  ;;  %v4007_v59 = vadd.f32 %v11351_v1, %v3968_v14 }
 0x592   : > { %v11457_v42 = vpop.trf.xlu0  ;;  %v4158_v20 = vadd.f32 %v11368_v0, %v11432_v6 }
 0x593   : > { %v4156_v13 = vadd.f32 %v11366_v41, %v11457_v42 }
 0x594   : > { %4298 = vrot.lane.b32.xlu1 %v4225_v9, %s10571_s25  ;;  %v4190_v18 = vmax.f32 %v4158_v20, 0.0 }
 0x595   : > { %v11439_v32 = vpop.trf.xlu1  ;;  %v4188_v12 = vmax.f32 %v4156_v13, 0.0  ;;  %v4149_v13 = vadd.f32 %v11001_v49, %v11374_v39  ;;  %v4151_v49 = vadd.f32 %v11003_v36, %v11385_v15 }
 0x596   : > { %v11469_v55 = vpop.trf.xlu0  ;;  %v4231_v37 = vmul.f32 %v11364_v23, %v4190_v18 }
 0x597   : > { %v4229_v9 = vmul.f32 %v11364_v23, %v4188_v12  ;;  %v4181_v29 = vmax.f32 %v4149_v13, 0.0  ;;  %v4183_v18 = vmax.f32 %v4151_v49, 0.0 }
 0x598   : > { %4286 = vrot.lane.b32.xlu1 %v4219_v11, %s10571_s25 }
 0x599   : > { %v11444_v21 = vpop.trf.xlu1 }
 0x59a   : > { %v11475_v41 = vpop.trf.xlu0 }
 0x59c   : > { %4290 = vrot.lane.b32.xlu1 %v4221_v43, %s10571_s25 }
 0x59d   : > { %v11451_v58 = vpop.trf.xlu1  ;;  %3484 = vxpose.xlu0.b32.start.end [1/1] (short) (narrow) %v11332_v3, 16 }
 0x5a0   : > { %4302 = vrot.lane.b32.xlu1 %v4227_v48, %s10571_s25  ;;  %v3970_v48 = vmul.f32 %v11343_v22, %v11326_v17 }
 0x5a1   : > { %v11460_v63 = vpop.trf.xlu1 }
 0x5a2   : > { %v4009_v35 = vadd.f32 %v11351_v1, %v3970_v48 }
 0x5a4   : > { %4314 = vrot.lane.b32.xlu1 %v4233_v60, %s10571_s25  ;;  %v3974_v60 = vmul.f32 %v11343_v22, %v11336_v28  ;;  %v4222_v28 = vmul.f32 %v11364_v23, %v4181_v29  ;;  %v4157_v29 = vadd.f32 %v11009_v52, %v11425_v2 }
 0x5a5   : > { %v4094_v3 = vpop.permute.xlu1 %4093 }
 0x5a6   : > { %v4166_v38 = vadd.f32 %v4094_v3, %v11444_v21  ;;  %v4013_v17 = vadd.f32 %v11351_v1, %v3974_v60  ;;  %v3972_v3 = vmul.f32 %v11343_v22, %v11338_v62  ;;  %v4145_v22 = vadd.f32 %v11355_v25, %v11382_v57 }
 0x5a7   : > { %v4155_v60 = vadd.f32 %v11007_v51, %v11446_v34 }
 0x5a8   : > { %4318 = vrot.lane.b32.xlu1 %v4235_v46, %s10571_s25  ;;  %v4198_v27 = vmax.f32 %v4166_v38, 0.0  ;;  %v4143_v46 = vadd.f32 %v11346_v44, %v11376_v8  ;;  %v4011_v20 = vadd.f32 %v11351_v1, %v3972_v3  ;;  %v4177_v44 = vmax.f32 %v4145_v22, 0.0 }
 0x5a9   : > { %v4090_v11 = vpop.permute.xlu1 %4089  ;;  %v4224_v1 = vmul.f32 %v11364_v23, %v4183_v18 }
 0x5aa   : > { %v4164_v0 = vadd.f32 %v4090_v11, %v11475_v41  ;;  %v4239_v24 = vmul.f32 %v11364_v23, %v4198_v27  ;;  %v4175_v12 = vmax.f32 %v4143_v46, 0.0  ;;  %v4218_v36 = vmul.f32 %v11364_v23, %v4177_v44 }
 0x5ab   : > { %v4153_v11 = vadd.f32 %v11005_v50, %v11398_v26  ;;  %v4187_v46 = vmax.f32 %v4155_v60, 0.0 }
 0x5ac   : > { %4306 = vrot.lane.b32.xlu1 %v4229_v9, %s10571_s25  ;;  %v4196_v43 = vmax.f32 %v4164_v0, 0.0  ;;  %v4216_v62 = vmul.f32 %v11364_v23, %v4175_v12  ;;  %v4147_v9 = vadd.f32 %v10999_v47, %v11408_v53  ;;  %v4159_v0 = vadd.f32 %v11011_v54, %v11427_v10  ;;  %v4092_v47 = vpop.permute.xlu0 %4091 }
 0x5ad   : > { %v4185_v25 = vmax.f32 %v4153_v11, 0.0  ;;  %v4228_v51 = vmul.f32 %v11364_v23, %v4187_v46 }
 0x5ae   : > { %v4237_v33 = vmul.f32 %v11364_v23, %v4196_v43  ;;  %v4191_v50 = vmax.f32 %v4159_v0, 0.0 }
 0x5af   : > { %v4226_v43 = vmul.f32 %v11364_v23, %v4185_v25 }
 0x5b0   : > { %4310 = vrot.lane.b32.xlu1 %v4231_v37, %s10571_s25  ;;  %v4179_v37 = vmax.f32 %v4147_v9, 0.0  ;;  %v4232_v54 = vmul.f32 %v11364_v23, %v4191_v50 }
 0x5b2   : > { %v4220_v27 = vmul.f32 %v11364_v23, %v4179_v37 }
 0x5b4   : > { %4326 = vrot.lane.b32.xlu1 %v4239_v24, %s10571_s25 }
 0x5b8   : > { %4322 = vrot.lane.b32.xlu1 %v4237_v33, %s10571_s25  ;;  %v4161_v33 = vadd.f32 %v11370_v61, %v11413_v56 }
 0x5c6   : > { %10187 = vset.pattern.permute.xlu0 %v13246_v16 }
 0x5ca   : > { %4099 = vrot.lane.b32.xlu0 %v4009_v35, %s10550_s26 }
 0x5ce   : > { %4095 = vrot.lane.b32.xlu0 %v4007_v59, %s10550_s26  ;;  %v4193_v59 = vmax.f32 %v4161_v33, 0.0 }
 0x5d0   : > { %v4234_v3 = vmul.f32 %v11364_v23, %v4193_v59 }
 0x5d2   : > { %4107 = vrot.lane.b32.xlu0 %v4013_v17, %s10550_s26  ;;  %v11532_v48 = vpop.trf.xlu0 }
 0x5d6   : > { %4103 = vrot.lane.b32.xlu0 %v4011_v20, %s10550_s26  ;;  %v11540_v17 = vpop.trf.xlu0  ;;  %v4189_v20 = vmax.f32 %v4157_v29, 0.0 }
 0x5d8   : > { %v4230_v49 = vmul.f32 %v11364_v23, %v4189_v20 }
 0x5da   : > { %4292 = vrot.lane.b32.xlu0 %v4222_v28, %s10571_s25  ;;  %v11517_v38 = vpop.trf.xlu1  ;;  %v4165_v28 = vadd.f32 %v4092_v47, %v11439_v32 }
 0x5de   : > { %4280 = vrot.lane.b32.xlu0 %v4216_v62, %s10571_s25  ;;  %v11526_v24 = vpop.trf.xlu1  ;;  %v4197_v62 = vmax.f32 %v4165_v28, 0.0 }
 0x5e0   : > { %v4238_v52 = vmul.f32 %v11364_v23, %v4197_v62 }
 0x5e2   : > { %4296 = vrot.lane.b32.xlu0 %v4224_v1, %s10571_s25 }
 0x5e6   : > { %4284 = vrot.lane.b32.xlu0 %v4218_v36, %s10571_s25 }
 0x5ea   : > { %4288 = vrot.lane.b32.xlu0 %v4220_v27, %s10571_s25 }
 0x5ee   : > { %4300 = vrot.lane.b32.xlu0 %v4226_v43, %s10571_s25  ;;  %v4102_v35 = vpop.permute.xlu1 %4101 }
 0x5ef   : > { %v4170_v14 = vadd.f32 %v4102_v35, %v11526_v24 }
 0x5f1   : > { %v4202_v13 = vmax.f32 %v4170_v14, 0.0  ;;  %v4088_v12 = vpop.permute.xlu0 %4087 }
 0x5f2   : > { %4312 = vrot.lane.b32.xlu0 %v4232_v54, %s10571_s25  ;;  %v4163_v22 = vadd.f32 %v4088_v12, %v11469_v55  ;;  %v4098_v1 = vpop.permute.xlu1 %4097 }
 0x5f3   : > { %v4243_v61 = vmul.f32 %v11364_v23, %v4202_v13 }
 0x5f4   : > { %v4195_v18 = vmax.f32 %v4163_v22, 0.0 }
 0x5f5   : > { %4334 = vrot.lane.b32.xlu1 %v4243_v61, %s10571_s25 }
 0x5f6   : > { %4316 = vrot.lane.b32.xlu0 %v4234_v3, %s10571_s25  ;;  %v4236_v44 = vmul.f32 %v11364_v23, %v4195_v18  ;;  %v4110_v9 = vpop.permute.xlu1 %4109 }
 0x5f7   : > { %v4174_v37 = vadd.f32 %v4110_v9, %v11460_v63 }
 0x5f9   : > { %v4206_v47 = vmax.f32 %v4174_v37, 0.0 }
 0x5fa   : > { %4304 = vrot.lane.b32.xlu0 %v4228_v51, %s10571_s25  ;;  %v4106_v27 = vpop.permute.xlu1 %4105 }
 0x5fb   : > { %v4172_v43 = vadd.f32 %v4106_v27, %v11540_v17  ;;  %v4247_v50 = vmul.f32 %v11364_v23, %v4206_v47 }
 0x5fd   : > { %v4204_v35 = vmax.f32 %v4172_v43, 0.0 }
 0x5fe   : > { %4308 = vrot.lane.b32.xlu0 %v4230_v49, %s10571_s25 }
 0x5ff   : > { %v4245_v14 = vmul.f32 %v11364_v23, %v4204_v35 }
 0x602   : > { %4324 = vrot.lane.b32.xlu0 %v4238_v52, %s10571_s25 }
 0x606   : > { %4320 = vrot.lane.b32.xlu0 %v4236_v44, %s10571_s25  ;;  %v4295_v44 = vpop.permute.xlu1 %4294 }
 0x60a   : > { %v4283_v37 = vpop.permute.xlu1 %4282 }
 0x60b   : > { %v4380_v27 = vsel %vm4376_vm12, %v4283_v37, 0.0 }
 0x60e   : > { %v4299_v47 = vpop.permute.xlu1 %4298 }
 0x612   : > { %v4287_v35 = vpop.permute.xlu1 %4286 }
 0x61d   : > { %v11558_v36 = vpop.trf.xlu0 }
 0x621   : > { %v11560_v11 = vpop.trf.xlu0 }
 0x622   : > { %v4168_v25 = vadd.f32 %v4098_v1, %v11560_v11 }
 0x624   : > { %v4200_v0 = vmax.f32 %v4168_v25, 0.0 }
 0x626   : > { %v4241_v33 = vmul.f32 %v11364_v23, %v4200_v0 }
 0x628   : > { %4330 = vrot.lane.b32.xlu1 %v4241_v33, %s10571_s25 }
 0x62c   : > { %4342 = vrot.lane.b32.xlu1 %v4247_v50, %s10571_s25 }
 0x630   : > { %4338 = vrot.lane.b32.xlu1 %v4245_v14, %s10571_s25 }
 0x63c   : > { %v4100_v59 = vpop.permute.xlu0 %4099 }
 0x63d   : > { %v4169_v54 = vadd.f32 %v4100_v59, %v11517_v38 }
 0x63f   : > { %v4201_v60 = vmax.f32 %v4169_v54, 0.0  ;;  %v4291_v54 = vpop.permute.xlu1 %4290 }
 0x640   : > { %v4096_v13 = vpop.permute.xlu0 %4095 }
 0x641   : > { %v4242_v61 = vmul.f32 %v11364_v23, %v4201_v60  ;;  %v4167_v3 = vadd.f32 %v4096_v13, %v11558_v36 }
 0x643   : > { %v4199_v29 = vmax.f32 %v4167_v3, 0.0  ;;  %4332 = vrot.lane.b32.xlu0 %v4242_v61, %s10571_s25 }
 0x644   : > { %v4108_v46 = vpop.permute.xlu0 %4107 }
 0x645   : > { %v4240_v20 = vmul.f32 %v11364_v23, %v4199_v29  ;;  %v4173_v51 = vadd.f32 %v4108_v46, %v11451_v58  ;;  %v4303_v46 = vpop.permute.xlu1 %4302 }
 0x647   : > { %v4205_v28 = vmax.f32 %v4173_v51, 0.0  ;;  %4328 = vrot.lane.b32.xlu0 %v4240_v20, %s10571_s25 }
 0x648   : > { %v4104_v12 = vpop.permute.xlu0 %4103 }
 0x649   : > { %v4246_v49 = vmul.f32 %v11364_v23, %v4205_v28  ;;  %v4171_v62 = vadd.f32 %v4104_v12, %v11532_v48  ;;  %v4315_v12 = vpop.permute.xlu1 %4314 }
 0x64b   : > { %v4203_v22 = vmax.f32 %v4171_v62, 0.0  ;;  %4340 = vrot.lane.b32.xlu0 %v4246_v49, %s10571_s25 }
 0x64c   : > { %v4293_v52 = vpop.permute.xlu0 %4292 }
 0x64d   : > { %v4244_v18 = vmul.f32 %v11364_v23, %v4203_v22  ;;  %v4395_v9 = vsel %vm4376_vm12, %v4293_v52, 0.0  ;;  %v4386_v22 = vsel %vm4376_vm12, %v4287_v35, 0.0 }
 0x64f   : > { %4336 = vrot.lane.b32.xlu0 %v4244_v18, %s10571_s25  ;;  %v4392_v18 = vsel %vm4376_vm12, %v4291_v54, 0.0 }
 0x650   : > { %v4281_v1 = vpop.permute.xlu0 %4280 }
 0x651   : > { %v4377_v3 = vsel %vm4376_vm12, %v4281_v1, 0.0  ;;  %v4319_v1 = vpop.permute.xlu1 %4318 }
 0x654   : > { %v4297_v25 = vpop.permute.xlu0 %4296  ;;  %4396 = vadd.xlane.f32.xlu1 %v4395_v9 }
 0x655   : > { %v4401_v50 = vsel %vm4376_vm12, %v4297_v25, 0.0  ;;  %v4398_v25 = vsel %vm4376_vm12, %v4295_v44, 0.0 }
 0x658   : > { %v4285_v0 = vpop.permute.xlu0 %4284  ;;  %4381 = vadd.xlane.f32.xlu1 %v4380_v27  ;;  %v4307_v27 = vpop.permute.xlu1 %4306 }
 0x659   : > { %v4383_v51 = vsel %vm4376_vm12, %v4285_v0, 0.0  ;;  %v4404_v0 = vsel %vm4376_vm12, %v4299_v47, 0.0 }
 0x65c   : > { %v4289_v43 = vpop.permute.xlu0 %4288 }
 0x65d   : > { %v4389_v33 = vsel %vm4376_vm12, %v4289_v43, 0.0  ;;  %v4410_v43 = vsel %vm4376_vm12, %v4303_v46, 0.0 }
 0x65e   : > { %4390 = vadd.xlane.f32.xlu1 %v4389_v33  ;;  %v4311_v33 = vpop.permute.xlu1 %4310 }
 0x65f   : > { %v4422_v35 = vsel %vm4376_vm12, %v4311_v33, 0.0 }
 0x660   : > { %v4301_v23 = vpop.permute.xlu0 %4300 }
 0x661   : > { %v4407_v59 = vsel %vm4376_vm12, %v4301_v23, 0.0  ;;  %v4416_v23 = vsel %vm4376_vm12, %v4307_v27, 0.0 }
 0x662   : > { %4402 = vadd.xlane.f32.xlu1 %v4401_v50  ;;  %v4327_v50 = vpop.permute.xlu1 %4326 }
 0x664   : > { %v4313_v14 = vpop.permute.xlu0 %4312 }
 0x665   : > { %v4425_v13 = vsel %vm4376_vm12, %v4313_v14, 0.0  ;;  %v4428_v14 = vsel %vm4376_vm12, %v4315_v12, 0.0 }
 0x666   : > { %4408 = vadd.xlane.f32.xlu1 %v4407_v59  ;;  %v4323_v44 = vpop.permute.xlu1 %4322  ;;  %v4434_v59 = vsel %vm4376_vm12, %v4319_v1, 0.0 }
 0x667   : > { %v4440_v47 = vsel %vm4376_vm12, %v4323_v44, 0.0 }
 0x668   : > { %v4317_v60 = vpop.permute.xlu0 %4316 }
 0x669   : > { %v4431_v62 = vsel %vm4376_vm12, %v4317_v60, 0.0 }
 0x66a   : > { %4426 = vadd.xlane.f32.xlu1 %v4425_v13  ;;  %v4335_v54 = vpop.permute.xlu1 %4334  ;;  %v4446_v13 = vsel %vm4376_vm12, %v4327_v50, 0.0 }
 0x66c   : > { %v4305_v61 = vpop.permute.xlu0 %4304 }
 0x66d   : > { %v4413_v29 = vsel %vm4376_vm12, %v4305_v61, 0.0 }
 0x66e   : > { %4378 = vadd.xlane.f32.xlu0 %v4377_v3  ;;  %4414 = vadd.xlane.f32.xlu1 %v4413_v29  ;;  %v4458_v29 = vsel %vm4376_vm12, %v4335_v54, 0.0 }
 0x670   : > { %v4309_v20 = vpop.permute.xlu0 %4308 }
 0x671   : > { %v4419_v28 = vsel %vm4376_vm12, %v4309_v20, 0.0 }
 0x672   : > { %4384 = vadd.xlane.f32.xlu0 %v4383_v51  ;;  %4420 = vadd.xlane.f32.xlu1 %v4419_v28 }
 0x674   : > { %v4325_v49 = vpop.permute.xlu0 %4324 }
 0x675   : > { %v4443_v52 = vsel %vm4376_vm12, %v4325_v49, 0.0 }
 0x676   : > { %4432 = vadd.xlane.f32.xlu1 %v4431_v62  ;;  %4387 = vadd.xlane.f32.xlu0 %v4386_v22 }
 0x678   : > { %v4321_v9 = vpop.permute.xlu0 %4320 }
 0x679   : > { %v4437_v37 = vsel %vm4376_vm12, %v4321_v9, 0.0 }
 0x67a   : > { %4444 = vadd.xlane.f32.xlu1 %v4443_v52  ;;  %4393 = vadd.xlane.f32.xlu0 %v4392_v18 }
 0x67e   : > { %4438 = vadd.xlane.f32.xlu1 %v4437_v37  ;;  %4399 = vadd.xlane.f32.xlu0 %v4398_v25  ;;  %v11615_v37 = vld [vmem:[#allocation4] ss:$0 sm:$0xff] }
 0x682   : > { %4405 = vadd.xlane.f32.xlu0 %v4404_v0 }
 0x686   : > { %4411 = vadd.xlane.f32.xlu0 %v4410_v43 }
 0x68a   : > { %4417 = vadd.xlane.f32.xlu0 %v4416_v23 }
 0x68e   : > { %4423 = vadd.xlane.f32.xlu0 %v4422_v35 }
 0x692   : > { %4429 = vadd.xlane.f32.xlu0 %v4428_v14 }
 0x696   : > { %4435 = vadd.xlane.f32.xlu0 %v4434_v59 }
 0x69a   : > { %4441 = vadd.xlane.f32.xlu0 %v4440_v47  ;;  %v4331_v60 = vpop.permute.xlu1 %4330 }
 0x69b   : > { %v4452_v3 = vsel %vm4376_vm12, %v4331_v60, 0.0 }
 0x69e   : > { %4447 = vadd.xlane.f32.xlu0 %v4446_v13  ;;  %v4343_v61 = vpop.permute.xlu1 %4342 }
 0x69f   : > { %v4470_v51 = vsel %vm4376_vm12, %v4343_v61, 0.0 }
 0x6a2   : > { %4453 = vadd.xlane.f32.xlu0 %v4452_v3  ;;  %v4339_v46 = vpop.permute.xlu1 %4338 }
 0x6a3   : > { %v4464_v20 = vsel %vm4376_vm12, %v4339_v46, 0.0 }
 0x6a6   : > { %4459 = vadd.xlane.f32.xlu0 %v4458_v29 }
 0x6aa   : > { %4465 = vadd.xlane.f32.xlu0 %v4464_v20 }
 0x6ae   : > { %4471 = vadd.xlane.f32.xlu0 %v4470_v51 }
 0x6b5   : > { %v4333_v28 = vpop.permute.xlu0 %4332 }
 0x6b6   : > { %v4455_v12 = vsel %vm4376_vm12, %v4333_v28, 0.0 }
 0x6b7   : > { %4456 = vadd.xlane.f32.xlu1 %v4455_v12 }
 0x6b9   : > { %v4329_v49 = vpop.permute.xlu0 %4328 }
 0x6ba   : > { %v4449_v62 = vsel %vm4376_vm12, %v4329_v49, 0.0 }
 0x6bb   : > { %4450 = vadd.xlane.f32.xlu1 %v4449_v62 }
 0x6bd   : > { %v4341_v22 = vpop.permute.xlu0 %4340 }
 0x6be   : > { %v4467_v52 = vsel %vm4376_vm12, %v4341_v22, 0.0 }
 0x6bf   : > { %4468 = vadd.xlane.f32.xlu1 %v4467_v52 }
 0x6c1   : > { %v4337_v18 = vpop.permute.xlu0 %4336 }
 0x6c2   : > { %v4461_v1 = vsel %vm4376_vm12, %v4337_v18, 0.0 }
 0x6c3   : > { %4462 = vadd.xlane.f32.xlu1 %v4461_v1 }
 0x6e1   : > { %v4397_v9 = vpop.xlane.xlu1 %4396 }
 0x6e2   : > { %v4486_v54 = vadd.f32 %v11615_v37, %v4397_v9 }
 0x6e4   : > { %v9196_v29 = vmul.f32 -1.442695, %v4486_v54 }
 0x6e5   : > { %v4382_v25 = vpop.xlane.xlu1 %4381 }
 0x6e6   : > { %v4481_v27 = vadd.f32 %v11615_v37, %v4382_v25 }
 0x6e8   : > { %v9191_v0 = vmul.f32 -1.442695, %v4481_v27 }
 0x6ea   : > { %10389 = vpow2.f32 %v9191_v0 }
 0x6eb   : > { %v4391_v43 = vpop.xlane.xlu1 %4390 }
 0x6ec   : > { %v4484_v0 = vadd.f32 %v11615_v37, %v4391_v43 }
 0x6ef   : > { %v11618_v33 = vpop.xlane.xlu1 %4402 }
 0x6f3   : > { %v4409_v23 = vpop.xlane.xlu1 %4408 }
 0x6f4   : > { %v10390_v50 = vpop.eup %10389  ;;  %v4490_v35 = vadd.f32 %v11615_v37, %v4409_v23 }
 0x6f5   : > { %v4609_v14 = vadd.f32 1.0, %v10390_v50 }
 0x6f6   : > { %v9200_v44 = vmul.f32 -1.442695, %v4490_v35 }
 0x6f7   : > { %10391 = vrcp.f32 %v4609_v14  ;;  %v4427_v59 = vpop.xlane.xlu1 %4426 }
 0x6f8   : > { %10393 = vpow2.f32 %v9200_v44  ;;  %v4496_v47 = vadd.f32 %v11615_v37, %v4427_v59  ;;  %v9194_v44 = vmul.f32 -1.442695, %v4484_v0 }
 0x6fa   : > { %v9206_v51 = vmul.f32 -1.442695, %v4496_v47 }
 0x6fb   : > { %v4379_v60 = vpop.xlane.xlu0 %4378  ;;  %v4415_v13 = vpop.xlane.xlu1 %4414 }
 0x6fc   : > { %v4480_v61 = vadd.f32 %v11615_v37, %v4379_v60  ;;  %v4492_v3 = vadd.f32 %v11615_v37, %v4415_v13 }
 0x6fe   : > { %v9190_v46 = vmul.f32 -1.442695, %v4480_v61  ;;  %v9202_v20 = vmul.f32 -1.442695, %v4492_v3 }
 0x6ff   : > { %v4385_v28 = vpop.xlane.xlu0 %4384  ;;  %v4421_v12 = vpop.xlane.xlu1 %4420 }
 0x700   : > { %10395 = vpow2.f32 %v9190_v46  ;;  %v4482_v49 = vadd.f32 %v11615_v37, %v4385_v28  ;;  %v4494_v62 = vadd.f32 %v11615_v37, %v4421_v12 }
 0x701   : > { %v10392_v22 = vpop.eup %10391  ;;  %10397 = vpow2.f32 %v9196_v29 }
 0x702   : > { %v10394_v52 = vpop.eup %10393  ;;  %10399 = vpow2.f32 %v9202_v20  ;;  %v9192_v18 = vmul.f32 -1.442695, %v4482_v49  ;;  %v9204_v1 = vmul.f32 -1.442695, %v4494_v62  ;;  %4743 = vperm.xlu0 %10187, %v10392_v22  }
 0x703   : > { %v4618_v9 = vadd.f32 1.0, %v10394_v52  ;;  %10401 = vpow2.f32 %v9206_v51  ;;  %v4388_v25 = vpop.xlane.xlu0 %4387  ;;  %v4433_v27 = vpop.xlane.xlu1 %4432 }
 0x704   : > { %10403 = vpow2.f32 %v9192_v18  ;;  %v4498_v23 = vadd.f32 %v11615_v37, %v4433_v27  ;;  %v4483_v43 = vadd.f32 %v11615_v37, %v4388_v25 }
 0x705   : > { %10405 = vrcp.f32 %v4618_v9 }
 0x706   : > { %10407 = vpow2.f32 %v9204_v1  ;;  %v9208_v50 = vmul.f32 -1.442695, %v4498_v23  ;;  %v9193_v9 = vmul.f32 -1.442695, %v4483_v43 }
 0x707   : > { %v4394_v35 = vpop.xlane.xlu0 %4393  ;;  %v4445_v14 = vpop.xlane.xlu1 %4444 }
 0x708   : > { %v4502_v59 = vadd.f32 %v11615_v37, %v4445_v14  ;;  %10409 = vpow2.f32 %v9208_v50  ;;  %v4485_v27 = vadd.f32 %v11615_v37, %v4394_v35 }
 0x709   : > { %10411 = vpow2.f32 %v9194_v44  ;;  %v4488_v44 = vadd.f32 %v11615_v37, %v11618_v33 }
 0x70a   : > { %v10396_v54 = vpop.eup %10395  ;;  %v9212_v47 = vmul.f32 -1.442695, %v4502_v59  ;;  %v9195_v59 = vmul.f32 -1.442695, %v4485_v27 }
 0x70b   : > { %v10398_v60 = vpop.eup %10397  ;;  %v4608_v13 = vadd.f32 1.0, %v10396_v54  ;;  %v4400_v61 = vpop.xlane.xlu0 %4399 }
 0x70c   : > { %v4439_v3 = vpop.xlane.xlu1 %4438  ;;  %v10400_v29 = vpop.eup %10399  ;;  %v4487_v46 = vadd.f32 %v11615_v37, %v4400_v61  ;;  %v4614_v25 = vadd.f32 1.0, %v10398_v60  ;;  %v9198_v60 = vmul.f32 -1.442695, %v4488_v44 }
 0x70d   : > { %v4500_v20 = vadd.f32 %v11615_v37, %v4439_v3  ;;  %v10402_v51 = vpop.eup %10401  ;;  %10413 = vrcp.f32 %v4608_v13  ;;  %v4620_v28 = vadd.f32 1.0, %v10400_v29 }
 0x70e   : > { %v10404_v12 = vpop.eup %10403  ;;  %10415 = vpow2.f32 %v9212_v47  ;;  %v9197_v49 = vmul.f32 -1.442695, %v4487_v46  ;;  %v4624_v23 = vadd.f32 1.0, %v10402_v51 }
 0x70f   : > { %v9210_v62 = vmul.f32 -1.442695, %v4500_v20  ;;  %v10406_v22 = vpop.eup %10405  ;;  %10417 = vrcp.f32 %v4620_v28  ;;  %v4610_v52 = vadd.f32 1.0, %v10404_v12  ;;  %v4406_v18 = vpop.xlane.xlu0 %4405 }
 0x710   : > { %v10408_v1 = vpop.eup %10407  ;;  %10419 = vpow2.f32 %v9197_v49  ;;  %4788 = vperm.xlu0 %10187, %v10406_v22   ;;  %v4489_v3 = vadd.f32 %v11615_v37, %v4406_v18 }
 0x711   : > { %10421 = vrcp.f32 %v4610_v52  ;;  %v4622_v0 = vadd.f32 1.0, %v10408_v1 }
 0x712   : > { %10423 = vpow2.f32 %v9210_v62  ;;  %v10410_v14 = vpop.eup %10409  ;;  %v9199_v28 = vmul.f32 -1.442695, %v4489_v3 }
 0x713   : > { %10425 = vrcp.f32 %v4622_v0  ;;  %v4412_v50 = vpop.xlane.xlu0 %4411  ;;  %v10412_v54 = vpop.eup %10411  ;;  %v4626_v35 = vadd.f32 1.0, %v10410_v14 }
 0x714   : > { %10427 = vpow2.f32 %v9193_v9  ;;  %v4491_v12 = vadd.f32 %v11615_v37, %v4412_v50  ;;  %v4612_v62 = vadd.f32 1.0, %v10412_v54 }
 0x715   : > { %10429 = vrcp.f32 %v4614_v25 }
 0x716   : > { %10431 = vrcp.f32 %v4624_v23  ;;  %v9201_v27 = vmul.f32 -1.442695, %v4491_v12 }
 0x717   : > { %v10414_v47 = vpop.eup %10413  ;;  %v4418_v13 = vpop.xlane.xlu0 %4417  ;;  %10433 = vpow2.f32 %v9195_v59 }
 0x718   : > { %v10416_v61 = vpop.eup %10415  ;;  %4738 = vperm.xlu1 %10186, %v10414_v47   ;;  %10435 = vrcp.f32 %v4626_v35  ;;  %v4493_v25 = vadd.f32 %v11615_v37, %v4418_v13 }
 0x719   : > { %v10418_v29 = vpop.eup %10417  ;;  %10437 = vpow2.f32 %v9198_v60  ;;  %v4630_v1 = vadd.f32 1.0, %v10416_v61 }
 0x71a   : > { %v10420_v43 = vpop.eup %10419  ;;  %4798 = vperm.xlu0 %10187, %v10418_v29   ;;  %v9203_v44 = vmul.f32 -1.442695, %v4493_v25 }
 0x71b   : > { %v10422_v46 = vpop.eup %10421  ;;  %v4615_v33 = vadd.f32 1.0, %v10420_v43  ;;  %v4424_v20 = vpop.xlane.xlu0 %4423 }
 0x71c   : > { %v10424_v51 = vpop.eup %10423  ;;  %4748 = vperm.xlu1 %10186, %v10422_v46   ;;  %v4495_v59 = vadd.f32 %v11615_v37, %v4424_v20 }
 0x71d   : > { %v10426_v49 = vpop.eup %10425  ;;  %10439 = vrcp.f32 %v4615_v33  ;;  %v4628_v22 = vadd.f32 1.0, %v10424_v51 }
 0x71e   : > { %v10428_v52 = vpop.eup %10427  ;;  %4808 = vperm.xlu0 %10187, %v10426_v49   ;;  %v9205_v13 = vmul.f32 -1.442695, %v4495_v59 }
 0x71f   : > { %v10430_v18 = vpop.eup %10429  ;;  %10441 = vrcp.f32 %v4628_v22  ;;  %v4430_v9 = vpop.xlane.xlu0 %4429  ;;  %v4611_v23 = vadd.f32 1.0, %v10428_v52 }
 0x720   : > { %10443 = vpow2.f32 %v9199_v28  ;;  %4768 = vperm.xlu1 %10186, %v10430_v18   ;;  %v10432_v0 = vpop.eup %10431  ;;  %v4497_v3 = vadd.f32 %v11615_v37, %v4430_v9 }
 0x721   : > { %10445 = vrcp.f32 %v4612_v62  ;;  %v10434_v50 = vpop.eup %10433 }
 0x722   : > { %4818 = vperm.xlu0 %10187, %v10432_v0   ;;  %10447 = vrcp.f32 %v4630_v1  ;;  %v10436_v54 = vpop.eup %10435  ;;  %v4613_v47 = vadd.f32 1.0, %v10434_v50  ;;  %v9207_v20 = vmul.f32 -1.442695, %v4497_v3 }
 0x723   : > { %v4436_v14 = vpop.xlane.xlu0 %4435  ;;  %10449 = vpow2.f32 %v9201_v27  ;;  %v10438_v35 = vpop.eup %10437 }
 0x724   : > { %10451 = vrcp.f32 %v4611_v23  ;;  %v4616_v43 = vadd.f32 1.0, %v10438_v35  ;;  %v4499_v28 = vadd.f32 %v11615_v37, %v4436_v14 }
 0x725   : > { %10453 = vpow2.f32 %v9203_v44 }
 0x726   : > { %4828 = vperm.xlu0 %10187, %v10436_v54   ;;  %10455 = vrcp.f32 %v4613_v47  ;;  %v9209_v18 = vmul.f32 -1.442695, %v4499_v28 }
 0x727   : > { %v10440_v61 = vpop.eup %10439  ;;  %v4442_v60 = vpop.xlane.xlu0 %4441  ;;  %10457 = vpow2.f32 %v9205_v13 }
 0x728   : > { %4773 = vperm.xlu1 %10186, %v10440_v61   ;;  %10459 = vrcp.f32 %v4616_v43  ;;  %v4501_v1 = vadd.f32 %v11615_v37, %v4442_v60 }
 0x729   : > { %v10442_v29 = vpop.eup %10441  ;;  %10461 = vpow2.f32 %v9207_v20 }
 0x72a   : > { %v10444_v46 = vpop.eup %10443  ;;  %4838 = vperm.xlu0 %10187, %v10442_v29   ;;  %v9211_v23 = vmul.f32 -1.442695, %v4501_v1 }
 0x72b   : > { %v10446_v33 = vpop.eup %10445  ;;  %v4448_v51 = vpop.xlane.xlu0 %4447  ;;  %v4617_v49 = vadd.f32 1.0, %v10444_v46 }
 0x72c   : > { %4758 = vperm.xlu1 %10186, %v10446_v33   ;;  %v10448_v12 = vpop.eup %10447  ;;  %v4503_v25 = vadd.f32 %v11615_v37, %v4448_v51 }
 0x72d   : > { %v10450_v62 = vpop.eup %10449  ;;  %10463 = vrcp.f32 %v4617_v49 }
 0x72e   : > { %4848 = vperm.xlu0 %10187, %v10448_v12   ;;  %v10452_v22 = vpop.eup %10451  ;;  %v4619_v9 = vadd.f32 1.0, %v10450_v62  ;;  %10465 = vpow2.f32 %v9209_v18  ;;  %v9213_v59 = vmul.f32 -1.442695, %v4503_v25 }
 0x72f   : > { %v4454_v52 = vpop.xlane.xlu0 %4453  ;;  %v10454_v27 = vpop.eup %10453 }
 0x730   : > { %4753 = vperm.xlu1 %10186, %v10452_v22   ;;  %v10456_v0 = vpop.eup %10455  ;;  %10467 = vrcp.f32 %v4619_v9  ;;  %v4621_v50 = vadd.f32 1.0, %v10454_v27  ;;  %v4505_v47 = vadd.f32 %v11615_v37, %v4454_v52 }
 0x731   : > { %v10458_v44 = vpop.eup %10457  ;;  %10469 = vpow2.f32 %v9211_v23 }
 0x732   : > { %v10460_v54 = vpop.eup %10459  ;;  %10471 = vrcp.f32 %v4621_v50  ;;  %v4623_v35 = vadd.f32 1.0, %v10458_v44  ;;  %v9215_v29 = vmul.f32 -1.442695, %v4505_v47 }
 0x733   : > { %v4460_v14 = vpop.xlane.xlu0 %4459  ;;  %v10462_v61 = vpop.eup %10461  ;;  %10473 = vpow2.f32 %v9213_v59 }
 0x734   : > { %4763 = vperm.xlu1 %10186, %v10456_v0   ;;  %v4507_v13 = vadd.f32 %v11615_v37, %v4460_v14  ;;  %10475 = vrcp.f32 %v4623_v35  ;;  %v4625_v43 = vadd.f32 1.0, %v10462_v61 }
 0x735   : > { %10477 = vpow2.f32 %v9215_v29 }
 0x736   : > { %v9217_v51 = vmul.f32 -1.442695, %v4507_v13  ;;  %10479 = vrcp.f32 %v4625_v43 }
 0x737   : > { %v10464_v60 = vpop.eup %10463  ;;  %v4466_v3 = vpop.xlane.xlu0 %4465 }
 0x738   : > { %4778 = vperm.xlu1 %10186, %v10460_v54   ;;  %v10466_v46 = vpop.eup %10465  ;;  %v4509_v20 = vadd.f32 %v11615_v37, %v4466_v3  ;;  %10481 = vpow2.f32 %v9217_v51 }
 0x739   : > { %v4627_v28 = vadd.f32 1.0, %v10466_v46 }
 0x73a   : > { %v10468_v33 = vpop.eup %10467  ;;  %v9219_v52 = vmul.f32 -1.442695, %v4509_v20 }
 0x73b   : > { %v4472_v12 = vpop.xlane.xlu0 %4471  ;;  %v10470_v49 = vpop.eup %10469  ;;  %10483 = vrcp.f32 %v4627_v28 }
 0x73c   : > { %4783 = vperm.xlu1 %10186, %v10464_v60   ;;  %v10472_v62 = vpop.eup %10471  ;;  %v4511_v18 = vadd.f32 %v11615_v37, %v4472_v12  ;;  %v4629_v9 = vadd.f32 1.0, %v10470_v49  ;;  %10485 = vpow2.f32 %v9219_v52 }
 0x73d   : > { %v10474_v22 = vpop.eup %10473 }
 0x73e   : > { %v10476_v25 = vpop.eup %10475  ;;  %v4631_v0 = vadd.f32 1.0, %v10474_v22  ;;  %v9221_v23 = vmul.f32 -1.442695, %v4511_v18  ;;  %10487 = vrcp.f32 %v4629_v9 }
 0x73f   : > { %v10478_v59 = vpop.eup %10477 }
 0x740   : > { %4793 = vperm.xlu1 %10186, %v10468_v33   ;;  %v10480_v54 = vpop.eup %10479  ;;  %10489 = vrcp.f32 %v4631_v0  ;;  %v4633_v60 = vadd.f32 1.0, %v10478_v59 }
 0x741   : > { %10491 = vpow2.f32 %v9221_v23 }
 0x742   : > { %v10482_v61 = vpop.eup %10481 }
 0x743   : > { %v4635_v29 = vadd.f32 1.0, %v10482_v61  ;;  %v4943_v61 = vld [vmem:[#allocation2 + $0xc] sm:$0x1] }
 0x744   : > { %4803 = vperm.xlu1 %10186, %v10472_v62   ;;  %v4457_v1 = vpop.xlane.xlu1 %4456 }
 0x745   : > { %v4506_v27 = vadd.f32 %v11615_v37, %v4457_v1  ;;  %v10484_v3 = vpop.eup %10483 }
 0x746   : > { %v10486_v33 = vpop.eup %10485 }
 0x747   : > { %v9216_v14 = vmul.f32 -1.442695, %v4506_v27  ;;  %v4637_v49 = vadd.f32 1.0, %v10486_v33 }
 0x748   : > { %4813 = vperm.xlu1 %10186, %v10476_v25   ;;  %v4451_v50 = vpop.xlane.xlu1 %4450  ;;  %v10488_v20 = vpop.eup %10487 }
 0x749   : > { %v4504_v44 = vadd.f32 %v11615_v37, %v4451_v50  ;;  %10493 = vpow2.f32 %v9216_v14 }
 0x74a   : > { %v10490_v12 = vpop.eup %10489 }
 0x74b   : > { %v9214_v47 = vmul.f32 -1.442695, %v4504_v44  ;;  %v10492_v62 = vpop.eup %10491 }
 0x74c   : > { %4823 = vperm.xlu1 %10186, %v10480_v54   ;;  %v4469_v35 = vpop.xlane.xlu1 %4468  ;;  %v4639_v18 = vadd.f32 1.0, %v10492_v62  ;;  %v4946_v62 = vld [vmem:[#allocation2 + $0x18] sm:$0x1] }
 0x74d   : > { %10495 = vpow2.f32 %v9214_v47  ;;  %v4510_v13 = vadd.f32 %v11615_v37, %v4469_v35 }
 0x74e   : > { %10497 = vrcp.f32 %v4633_v60 }
 0x74f   : > { %v9220_v51 = vmul.f32 -1.442695, %v4510_v13  ;;  %10499 = vrcp.f32 %v4635_v29  ;;  %v4999_v13 = vld [vmem:[#allocation2 + $0x14] sm:$0x1] }
 0x750   : > { %4833 = vperm.xlu1 %10186, %v10484_v3   ;;  %v4463_v43 = vpop.xlane.xlu1 %4462  ;;  %v4944_v3 = vsel %vm11654_vm0, 0, %v4943_v61 }
 0x751   : > { %v4508_v46 = vadd.f32 %v11615_v37, %v4463_v43  ;;  %4945 = vst [vmem:[#allocation2 + $0xc] sm:$0x1] %v4944_v3  ;;  %v5000_v43 = vsel %vm11686_vm3, 0, %v4999_v13 }
 0x752   : > { %5001 = vst [vmem:[#allocation2 + $0x14] sm:$0x1] %v5000_v43 }
 0x753   : > { %v9218_v28 = vmul.f32 -1.442695, %v4508_v46  ;;  %v10494_v22 = vpop.eup %10493  ;;  %v10519_v46 = vld [vmem:[%s10782_s20] sm:$0xff]  }
 0x754   : > { %4843 = vperm.xlu1 %10186, %v10488_v20   ;;  %v4634_v27 = vadd.f32 1.0, %v10494_v22  ;;  %v4705_v33 = vunpack.c.h.bf16 %v10519_v46  ;;  %v5002_v22 = vld [vmem:[#allocation2 + $0x20] sm:$0x1] }
 0x755   : > { %10501 = vpow2.f32 %v9218_v28 }
 0x756   : > { %10503 = vpow2.f32 %v9220_v51  ;;  %v4704_v51 = vunpack.c.l.bf16 %v10519_v46 }
 0x757   : > { %v10496_v52 = vpop.eup %10495  ;;  %10505 = vrcp.f32 %v4637_v49 }
 0x758   : > { %4853 = vperm.xlu1 %10186, %v10490_v12   ;;  %v4632_v1 = vadd.f32 1.0, %v10496_v52  ;;  %v10498_v9 = vpop.eup %10497  ;;  %v4947_v52 = vsel %vm11654_vm0, 0, %v4946_v62 }
 0x759   : > { %v10500_v37 = vpop.eup %10499  ;;  %4948 = vst [vmem:[#allocation2 + $0x18] sm:$0x1] %v4947_v52 }
 0x75a   : > { %10507 = vrcp.f32 %v4632_v1 }
 0x75b   : > { %10509 = vrcp.f32 %v4639_v18  ;;  %v5003_v18 = vsel %vm11686_vm3, 0, %v5002_v22 }
 0x75c   : > { %4863 = vperm.xlu1 %10186, %v10498_v9   ;;  %10511 = vrcp.f32 %v4634_v27  ;;  %5004 = vst [vmem:[#allocation2 + $0x20] sm:$0x1] %v5003_v18 }
 0x75f   : > { %v10502_v25 = vpop.eup %10501 }
 0x760   : > { %v10504_v0 = vpop.eup %10503  ;;  %v4636_v23 = vadd.f32 1.0, %v10502_v25  ;;  %4873 = vperm.xlu1 %10186, %v10500_v37   ;;  %v10520_v25 = vld [vmem:[%s10782_s20 + $0x8] sm:$0xff]  }
 0x761   : > { %v10506_v50 = vpop.eup %10505  ;;  %v4638_v14 = vadd.f32 1.0, %v10504_v0  ;;  %v4706_v0 = vunpack.c.l.bf16 %v10520_v25 }
 0x762   : > { %10513 = vrcp.f32 %v4636_v23  ;;  %v4707_v23 = vunpack.c.h.bf16 %v10520_v25  ;;  %v4952_v25 = vld [vmem:[#allocation2 + $0x30] sm:$0x1] }
 0x763   : > { %10515 = vrcp.f32 %v4638_v14 }
 0x764   : > { %4883 = vperm.xlu1 %10186, %v10506_v50   ;;  %v10508_v44 = vpop.eup %10507  ;;  %v10521_v50 = vld [vmem:[%s10782_s20 + $0x18] sm:$0xff]  }
 0x765   : > { %4858 = vperm.xlu0 %10187, %v10508_v44   ;;  %v10510_v59 = vpop.eup %10509  ;;  %v4711_v14 = vunpack.c.h.bf16 %v10521_v50  ;;  %v4710_v44 = vunpack.c.l.bf16 %v10521_v50 }
 0x766   : > { %v10512_v54 = vpop.eup %10511 }
 0x768   : > { %4893 = vperm.xlu1 %10186, %v10510_v59  }
 0x769   : > { %4868 = vperm.xlu0 %10187, %v10512_v54  }
 0x76c   : > { %v10514_v47 = vpop.eup %10513 }
 0x76d   : > { %4878 = vperm.xlu0 %10187, %v10514_v47   ;;  %v10516_v35 = vpop.eup %10515  ;;  %v10522_v47 = vld [vmem:[%s10782_s20 + $0x10] sm:$0xff]  }
 0x76e   : > { %v4709_v13 = vunpack.c.h.bf16 %v10522_v47 }
 0x771   : > { %4888 = vperm.xlu0 %10187, %v10516_v35   ;;  %v4708_v35 = vunpack.c.l.bf16 %v10522_v47  ;;  %v4955_v47 = vld [vmem:[#allocation2 + $0x3c] sm:$0x1] }
 0x781   : > { %v4744_v20 = vpop.permute.xlu0 %4743 }
 0x782   : > { %v4897_v28 = vmul.f32 %v4744_v20, %v4705_v33  ;;  %v4949_v20 = vld [vmem:[#allocation2 + $0x24] sm:$0x1] }
 0x78f   : > { %v4789_v46 = vpop.permute.xlu0 %4788 }
 0x797   : > { %v4739_v16 = vpop.permute.xlu1 %4738 }
 0x798   : > { %v4896_v12 = vmul.f32 %v4739_v16, %v4704_v51  ;;  %v5005_v16 = vld [vmem:[#allocation2 + $0x2c] sm:$0x1] }
 0x799   : > { %v5006_v62 = vsel %vm11686_vm3, 0, %v5005_v16  ;;  %v4799_v18 = vpop.permute.xlu0 %4798 }
 0x79a   : > { %v10188_v49 = vpack.i.bf16 %v4897_v28, %v4896_v12  ;;  %5007 = vst [vmem:[#allocation2 + $0x2c] sm:$0x1] %v5006_v62 }
 0x79b   : > { %v4749_v1 = vpop.permute.xlu1 %4748 }
 0x79c   : > { %10189 = vrot.lane.b32.xlu0 %v10188_v49, %s10550_s26  ;;  %v4898_v54 = vmul.f32 %v4749_v1, %v4706_v0  ;;  %v4950_v49 = vsel %vm11654_vm0, 0, %v4949_v20  ;;  %v5008_v0 = vld [vmem:[#allocation2 + $0x38] sm:$0x1] }
 0x79d   : > { %4951 = vst [vmem:[#allocation2 + $0x24] sm:$0x1] %v4950_v49  ;;  %v5009_v50 = vsel %vm11686_vm3, 0, %v5008_v0 }
 0x79e   : > { %5010 = vst [vmem:[#allocation2 + $0x38] sm:$0x1] %v5009_v50 }
 0x79f   : > { %v4769_v9 = vpop.permute.xlu1 %4768 }
 0x7a0   : > { %v4902_v33 = vmul.f32 %v4769_v9, %v4710_v44  ;;  %v10523_v9 = vld [vmem:[%s10782_s20 + $0x20] sm:$0xff]  }
 0x7a7   : > { %v4774_v27 = vpop.permute.xlu1 %4773 }
 0x7a8   : > { %v4903_v3 = vmul.f32 %v4774_v27, %v4711_v14  ;;  %v4712_v27 = vunpack.c.l.bf16 %v10523_v9  ;;  %v10524_v14 = vld [vmem:[%s10782_s20 + $0x28] sm:$0xff]  }
 0x7a9   : > { %v4714_v44 = vunpack.c.l.bf16 %v10524_v14 }
 0x7aa   : > { %v10203_v22 = vpack.i.bf16 %v4903_v3, %v4902_v33  ;;  %v4956_v3 = vsel %vm11654_vm0, 0, %v4955_v47  ;;  %v4809_v33 = vpop.permute.xlu0 %4808 }
 0x7ab   : > { %v4759_v37 = vpop.permute.xlu1 %4758  ;;  %4957 = vst [vmem:[#allocation2 + $0x3c] sm:$0x1] %v4956_v3  ;;  %v4906_v16 = vmul.f32 %v4789_v46, %v4714_v44  ;;  %v10526_v46 = vld [vmem:[%s10782_s20 + $0x38] sm:$0xff]  }
 0x7ac   : > { %v4900_v28 = vmul.f32 %v4759_v37, %v4708_v35  ;;  %v4713_v37 = vunpack.c.h.bf16 %v10523_v9  ;;  %v5011_v35 = vld [vmem:[#allocation2 + $0x44] sm:$0x1] }
 0x7ae   : > { %v4819_v9 = vpop.permute.xlu0 %4818 }
 0x7af   : > { %v4754_v59 = vpop.permute.xlu1 %4753 }
 0x7b0   : > { %v4899_v61 = vmul.f32 %v4754_v59, %v4707_v23  ;;  %v4953_v23 = vsel %vm11654_vm0, 0, %v4952_v25 }
 0x7b1   : > { %4954 = vst [vmem:[#allocation2 + $0x30] sm:$0x1] %v4953_v23  ;;  %v4718_v23 = vunpack.c.l.bf16 %v10526_v46 }
 0x7b2   : > { %v10193_v43 = vpack.i.bf16 %v4899_v61, %v4898_v54  ;;  %v4715_v54 = vunpack.c.h.bf16 %v10524_v14  ;;  %v4719_v14 = vunpack.c.h.bf16 %v10526_v46 }
 0x7b3   : > { %v4764_v51 = vpop.permute.xlu1 %4763 }
 0x7b4   : > { %v4901_v12 = vmul.f32 %v4764_v51, %v4709_v13  ;;  %10194 = vrot.lane.b32.xlu1 %v10193_v43, %s10550_s26  ;;  %v5012_v43 = vsel %vm11686_vm3, 0, %v5011_v35 }
 0x7b5   : > { %5013 = vst [vmem:[#allocation2 + $0x44] sm:$0x1] %v5012_v43 }
 0x7b6   : > { %v10198_v52 = vpack.i.bf16 %v4901_v12, %v4900_v28  ;;  %v10525_v28 = vld [vmem:[%s10782_s20 + $0x30] sm:$0xff]  }
 0x7b7   : > { %v4779_v1 = vpop.permute.xlu1 %4778  ;;  %v4716_v12 = vunpack.c.l.bf16 %v10525_v28  ;;  %v4717_v62 = vunpack.c.h.bf16 %v10525_v28  ;;  %v4964_v28 = vld [vmem:[#allocation2 + $0x60] sm:$0x1] }
 0x7b8   : > { %10204 = vrot.lane.b32.xlu1 %v10203_v22, %s10550_s26  ;;  %10199 = vrot.lane.b32.xlu0 %v10198_v52, %s10550_s26  ;;  %v4904_v61 = vmul.f32 %v4779_v1, %v4712_v27  ;;  %v4958_v52 = vld [vmem:[#allocation2 + $0x48] sm:$0x1]  ;;  %v5014_v1 = vld [vmem:[#allocation2 + $0x50] sm:$0x1] }
 0x7b9   : > { %v5015_v25 = vsel %vm11686_vm3, 0, %v5014_v1  ;;  %v4908_v0 = vmul.f32 %v4799_v18, %v4716_v12  ;;  %v10527_v18 = vld [vmem:[%s10782_s20 + $0x40] sm:$0xff]   ;;  %v5020_v12 = vld [vmem:[#allocation2 + $0x68] sm:$0x1] }
 0x7ba   : > { %5016 = vst [vmem:[#allocation2 + $0x50] sm:$0x1] %v5015_v25  ;;  %v4720_v3 = vunpack.c.l.bf16 %v10527_v18 }
 0x7bb   : > { %v4784_v59 = vpop.permute.xlu1 %4783 }
 0x7bc   : > { %v4905_v13 = vmul.f32 %v4784_v59, %v4713_v37  ;;  %v4959_v37 = vsel %vm11654_vm0, 0, %v4958_v52  ;;  %v4961_v59 = vld [vmem:[#allocation2 + $0x54] sm:$0x1]  ;;  %v10528_v52 = vld [vmem:[%s10782_s20 + $0x48] sm:$0xff]  }
 0x7bd   : > { %4960 = vst [vmem:[#allocation2 + $0x48] sm:$0x1] %v4959_v37  ;;  %v4962_v35 = vsel %vm11654_vm0, 0, %v4961_v59  ;;  %v4722_v1 = vunpack.c.l.bf16 %v10528_v52  ;;  %v4723_v37 = vunpack.c.h.bf16 %v10528_v52 }
 0x7be   : > { %v10208_v51 = vpack.i.bf16 %v4905_v13, %v4904_v61  ;;  %v4910_v13 = vmul.f32 %v4809_v33, %v4718_v23  ;;  %4963 = vst [vmem:[#allocation2 + $0x54] sm:$0x1] %v4962_v35  ;;  %v5021_v33 = vsel %vm11686_vm3, 0, %v5020_v12  ;;  %v5026_v12 = vld [vmem:[#allocation2 + $0x80] sm:$0x1] }
 0x7bf   : > { %v4794_v20 = vpop.permute.xlu1 %4793  ;;  %5022 = vst [vmem:[#allocation2 + $0x68] sm:$0x1] %v5021_v33  ;;  %v5027_v33 = vsel %vm11686_vm3, 0, %v5026_v12 }
 0x7c0   : > { %v4907_v49 = vmul.f32 %v4794_v20, %v4715_v54  ;;  %10209 = vrot.lane.b32.xlu0 %v10208_v51, %s10550_s26  ;;  %v5017_v54 = vld [vmem:[#allocation2 + $0x5c] sm:$0x1]  ;;  %v4721_v51 = vunpack.c.h.bf16 %v10527_v18  ;;  %v4829_v20 = vpop.permute.xlu0 %4828  ;;  %5028 = vst [vmem:[#allocation2 + $0x80] sm:$0x1] %v5027_v33 }
 0x7c1   : > { %v5018_v61 = vsel %vm11686_vm3, 0, %v5017_v54  ;;  %v4914_v23 = vmul.f32 %v4829_v20, %v4722_v1  ;;  %v5023_v54 = vld [vmem:[#allocation2 + $0x74] sm:$0x1] }
 0x7c2   : > { %v10213_v22 = vpack.i.bf16 %v4907_v49, %v4906_v16  ;;  %5019 = vst [vmem:[#allocation2 + $0x5c] sm:$0x1] %v5018_v61  ;;  %v5024_v61 = vsel %vm11686_vm3, 0, %v5023_v54  ;;  %v5032_v54 = vld [vmem:[#allocation2 + $0x98] sm:$0x1] }
 0x7c3   : > { %v4804_v27 = vpop.permute.xlu1 %4803  ;;  %5025 = vst [vmem:[#allocation2 + $0x74] sm:$0x1] %v5024_v61 }
 0x7c4   : > { %v4909_v50 = vmul.f32 %v4804_v27, %v4717_v62  ;;  %10214 = vrot.lane.b32.xlu1 %v10213_v22, %s10550_s26  ;;  %v4965_v62 = vsel %vm11654_vm0, 0, %v4964_v28  ;;  %v4912_v22 = vmul.f32 %v4819_v9, %v4720_v3  ;;  %v4967_v9 = vld [vmem:[#allocation2 + $0x6c] sm:$0x1]  ;;  %v10530_v3 = vld [vmem:[%s10782_s20 + $0x58] sm:$0xff]  }
 0x7c5   : > { %4966 = vst [vmem:[#allocation2 + $0x60] sm:$0x1] %v4965_v62  ;;  %v4968_v35 = vsel %vm11654_vm0, 0, %v4967_v9  ;;  %v4727_v20 = vunpack.c.h.bf16 %v10530_v3  ;;  %v4970_v28 = vld [vmem:[#allocation2 + $0x78] sm:$0x1] }
 0x7c6   : > { %v10218_v44 = vpack.i.bf16 %v4909_v50, %v4908_v0  ;;  %v4839_v0 = vpop.permute.xlu0 %4838  ;;  %v10529_v50 = vld [vmem:[%s10782_s20 + $0x50] sm:$0xff]   ;;  %4969 = vst [vmem:[#allocation2 + $0x6c] sm:$0x1] %v4968_v35  ;;  %v4971_v62 = vsel %vm11654_vm0, 0, %v4970_v28  ;;  %v5033_v35 = vsel %vm11686_vm3, 0, %v5032_v54 }
 0x7c7   : > { %v4814_v47 = vpop.permute.xlu1 %4813  ;;  %v4725_v59 = vunpack.c.h.bf16 %v10529_v50  ;;  %4972 = vst [vmem:[#allocation2 + $0x78] sm:$0x1] %v4971_v62  ;;  %v4976_v9 = vld [vmem:[#allocation2 + $0x90] sm:$0x1]  ;;  %5034 = vst [vmem:[#allocation2 + $0x98] sm:$0x1] %v5033_v35 }
 0x7c8   : > { %v4911_v43 = vmul.f32 %v4814_v47, %v4719_v14  ;;  %10219 = vrot.lane.b32.xlu0 %v10218_v44, %s10550_s26  ;;  %v4724_v14 = vunpack.c.l.bf16 %v10529_v50  ;;  %v10531_v50 = vld [vmem:[%s10782_s20 + $0x60] sm:$0xff]  }
 0x7c9   : > { %v5035_v54 = vld [vmem:[#allocation2 + $0xa4] sm:$0x1] }
 0x7ca   : > { %v10223_v16 = vpack.i.bf16 %v4911_v43, %v4910_v13  ;;  %v4916_v18 = vmul.f32 %v4839_v0, %v4724_v14  ;;  %v4726_v43 = vunpack.c.l.bf16 %v10530_v3  ;;  %v4729_v14 = vunpack.c.h.bf16 %v10531_v50 }
 0x7cb   : > { %v4824_v49 = vpop.permute.xlu1 %4823 }
 0x7cc   : > { %v4913_v27 = vmul.f32 %v4824_v49, %v4721_v51  ;;  %10224 = vrot.lane.b32.xlu1 %v10223_v16, %s10550_s26  ;;  %v4849_v16 = vpop.permute.xlu0 %4848 }
 0x7cd   : > { %v4918_v52 = vmul.f32 %v4849_v16, %v4726_v43 }
 0x7ce   : > { %v10228_v25 = vpack.i.bf16 %v4913_v27, %v4912_v22 }
 0x7cf   : > { %v4834_v46 = vpop.permute.xlu1 %4833 }
 0x7d0   : > { %v4915_v44 = vmul.f32 %v4834_v46, %v4723_v37  ;;  %10229 = vrot.lane.b32.xlu0 %v10228_v25, %s10550_s26  ;;  %v4973_v37 = vld [vmem:[#allocation2 + $0x84] sm:$0x1]  ;;  %v5029_v25 = vld [vmem:[#allocation2 + $0x8c] sm:$0x1] }
 0x7d1   : > { %v4974_v0 = vsel %vm11654_vm0, 0, %v4973_v37  ;;  %v5030_v46 = vsel %vm11686_vm3, 0, %v5029_v25  ;;  %v10534_v37 = vld [vmem:[%s10782_s20 + $0x78] sm:$0xff]  }
 0x7d2   : > { %v10233_v47 = vpack.i.bf16 %v4915_v44, %v4914_v23  ;;  %4975 = vst [vmem:[#allocation2 + $0x84] sm:$0x1] %v4974_v0  ;;  %5031 = vst [vmem:[#allocation2 + $0x8c] sm:$0x1] %v5030_v46  ;;  %v4728_v44 = vunpack.c.l.bf16 %v10531_v50  ;;  %v4735_v25 = vunpack.c.h.bf16 %v10534_v37  ;;  %v4734_v46 = vunpack.c.l.bf16 %v10534_v37 }
 0x7d3   : > { %v4844_v13 = vpop.permute.xlu1 %4843 }
 0x7d4   : > { %v4917_v51 = vmul.f32 %v4844_v13, %v4725_v59  ;;  %10234 = vrot.lane.b32.xlu1 %v10233_v47, %s10550_s26  ;;  %v4977_v47 = vsel %vm11654_vm0, 0, %v4976_v9  ;;  %v4979_v9 = vld [vmem:[#allocation2 + $0x9c] sm:$0x1] }
 0x7d5   : > { %4978 = vst [vmem:[#allocation2 + $0x90] sm:$0x1] %v4977_v47  ;;  %v4980_v35 = vsel %vm11654_vm0, 0, %v4979_v9 }
 0x7d6   : > { %v10238_v49 = vpack.i.bf16 %v4917_v51, %v4916_v18  ;;  %v10532_v18 = vld [vmem:[%s10782_s20 + $0x68] sm:$0xff]   ;;  %4981 = vst [vmem:[#allocation2 + $0x9c] sm:$0x1] %v4980_v35 }
 0x7d7   : > { %v4854_v22 = vpop.permute.xlu1 %4853  ;;  %v4731_v3 = vunpack.c.h.bf16 %v10532_v18  ;;  %v4730_v51 = vunpack.c.l.bf16 %v10532_v18  ;;  %v5038_v18 = vld [vmem:[#allocation2 + $0xb0] sm:$0x1] }
 0x7d8   : > { %v4919_v1 = vmul.f32 %v4854_v22, %v4727_v20  ;;  %10239 = vrot.lane.b32.xlu0 %v10238_v49, %s10550_s26  ;;  %v10533_v49 = vld [vmem:[%s10782_s20 + $0x70] sm:$0xff]  }
 0x7d9   : > { %v4733_v62 = vunpack.c.h.bf16 %v10533_v49  ;;  %v4732_v22 = vunpack.c.l.bf16 %v10533_v49 }
 0x7da   : > { %v10243_v27 = vpack.i.bf16 %v4919_v1, %v4918_v52 }
 0x7db   : > { %v4864_v23 = vpop.permute.xlu1 %4863 }
 0x7dc   : > { %10244 = vrot.lane.b32.xlu1 %v10243_v27, %s10550_s26  ;;  %v4921_v13 = vmul.f32 %v4864_v23, %v4729_v14 }
 0x7df   : > { %v4874_v59 = vpop.permute.xlu1 %4873 }
 0x7e0   : > { %v4923_v12 = vmul.f32 %v4874_v59, %v4731_v3 }
 0x7e3   : > { %v4884_v16 = vpop.permute.xlu1 %4883 }
 0x7e4   : > { %v4859_v61 = vpop.permute.xlu0 %4858  ;;  %v4925_v27 = vmul.f32 %v4884_v16, %v4733_v62  ;;  %v5044_v62 = vld [vmem:[#allocation2 + $0xc8] sm:$0x1] }
 0x7e5   : > { %v4920_v43 = vmul.f32 %v4859_v61, %v4728_v44  ;;  %v5036_v61 = vsel %vm11686_vm3, 0, %v5035_v54  ;;  %v5635_v54 = vld [vmem:[#allocation2 + $0x14] sm:$0x1] }
 0x7e6   : > { %5037 = vst [vmem:[#allocation2 + $0xa4] sm:$0x1] %v5036_v61 }
 0x7e7   : > { %v10248_v20 = vpack.i.bf16 %v4921_v13, %v4920_v43  ;;  %v4894_v23 = vpop.permute.xlu1 %4893  ;;  %v4982_v13 = vld [vmem:[#allocation2 + $0xa8] sm:$0x1]  ;;  %v5039_v43 = vsel %vm11686_vm3, 0, %v5038_v18 }
 0x7e8   : > { %v4869_v28 = vpop.permute.xlu0 %4868  ;;  %v4927_v44 = vmul.f32 %v4894_v23, %v4735_v25  ;;  %v4983_v3 = vsel %vm11654_vm0, 0, %v4982_v13  ;;  %5040 = vst [vmem:[#allocation2 + $0xb0] sm:$0x1] %v5039_v43 }
 0x7e9   : > { %v4922_v33 = vmul.f32 %v4869_v28, %v4730_v51  ;;  %10249 = vrot.lane.b32.xlu0 %v10248_v20, %s10550_s26  ;;  %4984 = vst [vmem:[#allocation2 + $0xa8] sm:$0x1] %v4983_v3  ;;  %v4985_v51 = vld [vmem:[#allocation2 + $0xb4] sm:$0x1]  ;;  %v5041_v20 = vld [vmem:[#allocation2 + $0xbc] sm:$0x1] }
 0x7ea   : > { %v4986_v16 = vsel %vm11654_vm0, 0, %v4985_v51  ;;  %v5042_v28 = vsel %vm11686_vm3, 0, %v5041_v20 }
 0x7eb   : > { %v10253_v52 = vpack.i.bf16 %v4923_v12, %v4922_v33  ;;  %4987 = vst [vmem:[#allocation2 + $0xb4] sm:$0x1] %v4986_v16  ;;  %5043 = vst [vmem:[#allocation2 + $0xbc] sm:$0x1] %v5042_v28  ;;  %v4988_v12 = vld [vmem:[#allocation2 + $0xc0] sm:$0x1] }
 0x7ec   : > { %v4879_v1 = vpop.permute.xlu0 %4878  ;;  %v4989_v49 = vsel %vm11654_vm0, 0, %v4988_v12  ;;  %v5045_v33 = vsel %vm11686_vm3, 0, %v5044_v62  ;;  %v4940_v28 = vld [vmem:[#allocation2] sm:$0x1] }
 0x7ed   : > { %v4924_v0 = vmul.f32 %v4879_v1, %v4732_v22  ;;  %10254 = vrot.lane.b32.xlu1 %v10253_v52, %s10550_s26  ;;  %4990 = vst [vmem:[#allocation2 + $0xc0] sm:$0x1] %v4989_v49  ;;  %5046 = vst [vmem:[#allocation2 + $0xc8] sm:$0x1] %v5045_v33  ;;  %v4941_v62 = vsel %vm11654_vm0, 0, %v4940_v28 }
 0x7ee   : > { %v4996_v33 = vld [vmem:[#allocation2 + $0x8] sm:$0x1]  ;;  %4942 = vst [vmem:[#allocation2] sm:$0x1] %v4941_v62 }
 0x7ef   : > { %v10258_v50 = vpack.i.bf16 %v4925_v27, %v4924_v0 }
 0x7f0   : > { %v4889_v14 = vpop.permute.xlu0 %4888 }
 0x7f1   : > { %v4926_v59 = vmul.f32 %v4889_v14, %v4734_v46  ;;  %10259 = vrot.lane.b32.xlu0 %v10258_v50, %s10550_s26 }
 0x7f3   : > { %v10263_v47 = vpack.i.bf16 %v4927_v44, %v4926_v59 }
 0x7f5   : > { %10264 = vrot.lane.b32.xlu1 %v10263_v47, %s10550_s26  ;;  %s9474_s26 = sshll.u32 %s13256_s30, 8 }
 0x7f6   : > { %s13088_s19 = scalar_lea.vmem %s13235_s18, %s9474_s26 }
 0x80e   : > { %v10190_v22 = vpop.permute.xlu0 %10189 }
 0x80f   : > { %v10192_v52 = vunpack.i.h.bf16 %v10190_v22  ;;  %v10191_v1 = vunpack.i.l.bf16 %v10190_v22 }
 0x811   : > { %v5179_v27 = vsel %vm631_vm1, %v11380_v5, %v10192_v52  ;;  %v5178_v37 = vsel %vm631_vm1, %v11376_v8, %v10191_v1  ;;  %v5631_v8 = vld [vmem:[#allocation2 + $0xc] sm:$0xf] }
 0x812   : > { %v9476_v25 = vpack.c.bf16 %v5179_v27, %v5179_v27  ;;  %v9475_v0 = vpack.c.bf16 %v5178_v37, %v5178_v37  ;;  %v4997_v37 = vsel %vm11686_vm3, 0, %v4996_v33 }
 0x813   : > { %4998 = vst [vmem:[#allocation2 + $0x8] sm:$0x1] %v4997_v37 }
 0x814   : > { %v5317_v46 = vshrl.u32 %v9476_v25, 16  ;;  %v5309_v23 = vshrl.u32 %v9475_v0, 16  ;;  %v5320_v44 = vshll.u32 %v9476_v25, 16  ;;  %v5312_v9 = vshll.u32 %v9475_v0, 16 }
 0x816   : > { %v5319_v14 = vrot.slane %v5317_v46, 7  ;;  %v5311_v59 = vrot.slane %v5309_v23, 7 }
 0x818   : > { %v5322_v47 = vor.u32 %v5320_v44, %v5319_v14  ;;  %v5324_v35 = vrot.slane %v5319_v14, 4  ;;  %v5314_v61 = vor.u32 %v5312_v9, %v5311_v59  ;;  %v5315_v13 = vrot.slane %v5311_v59, 4  ;;  %v10323_v14 = vld [vmem:[%s13229_s12 + $0xc] sm:$0xff]  }
 0x819   : > { %9742 = vmatprep.subr.bf16.mxu1 %v10323_v14 }
 0x81a   : > { %v5636_v18 = vsel %vm11654_vm0, %v5324_v35, %v5635_v54  ;;  %v5323_v3 = vsel %vm11789_vm5, %v5315_v13, %v5322_v47  ;;  %v5632_v43 = vsel %vm11795_vm7, %v5314_v61, %v5631_v8  ;;  %9743 = vmatpush3.bf16.msra.mxu1 %v10323_v14 }
 0x81b   : > { %5637 = vst [vmem:[#allocation2 + $0x14] sm:$0x1] %v5636_v18  ;;  %5633 = vst [vmem:[#allocation2 + $0xc] sm:$0xf] %v5632_v43 }
 0x81c   : > { %5634 = vst.msk [vmem:[#allocation2 + $0x10] sm:$0xf] %vm4928_vm13, %v5323_v3 }
 0x822   : > { %v10290_v20 = vld [vmem:[#allocation2 + $0x14] ss:$0 sps:$4 sm:$0x11]  }
 0x823   : > { %v10289_v51 = vld [vmem:[#allocation2 + $0xc] sm:$0xff]   ;;  %v5964_v49 = vshll.u32 %v10290_v20, 16  ;;  %v6201_v23 = vrot.slane %v10290_v20, 1 }
 0x824   : > { %v5959_v16 = vshll.u32 %v10289_v51, 16  ;;  %v5957_v27 = vshrl.u32 %v10289_v51, 16  ;;  %v6200_v46 = vrot.slane %v10289_v51, 1 }
 0x825   : > { %v5966_v47 = vrot.slane %v5964_v49, 1 }
 0x826   : > { %v10195_v12 = vpop.permute.xlu1 %10194  ;;  %v5961_v1 = vrot.slane %v5959_v16, 1 }
 0x827   : > { %v10197_v22 = vunpack.i.h.bf16 %v10195_v12  ;;  %v10196_v52 = vunpack.i.l.bf16 %v10195_v12 }
 0x828   : > { %v5962_v54 = vor.u32 %v5961_v1, %v5957_v27 }
 0x829   : > { %v5181_v25 = vsel %vm631_vm1, %v11388_v31, %v10197_v22  ;;  %v5180_v0 = vsel %vm631_vm1, %v11382_v57, %v10196_v52  ;;  %v5638_v22 = vld [vmem:[#allocation2 + $0x18] sm:$0xf]  ;;  %v5642_v52 = vld [vmem:[#allocation2 + $0x20] sm:$0x1] }
 0x82a   : > { %v9478_v44 = vpack.c.bf16 %v5181_v25, %v5181_v25  ;;  %v9477_v59 = vpack.c.bf16 %v5180_v0, %v5180_v0  ;;  %v10200_v9 = vpop.permute.xlu0 %10199  ;;  %v10205_v8 = vpop.permute.xlu1 %10204  ;;  %v5967_v37 = vsel %vm5943_vm8, %v5962_v54, %v5966_v47 }
 0x82b   : > { %v10202_v35 = vunpack.i.h.bf16 %v10200_v9  ;;  %v10201_v61 = vunpack.i.l.bf16 %v10200_v9  ;;  %v10207_v13 = vunpack.i.h.bf16 %v10205_v8  ;;  %v10206_v31 = vunpack.i.l.bf16 %v10205_v8  ;;  %6162 = vrot.lane.b32.xlu0 %v5967_v37, %s10572_s27 }
 0x82c   : > { %v5334_v18 = vshrl.u32 %v9478_v44, 16  ;;  %v5337_v57 = vshll.u32 %v9478_v44, 16  ;;  %v5326_v3 = vshrl.u32 %v9477_v59, 16  ;;  %v5329_v43 = vshll.u32 %v9477_v59, 16 }
 0x82d   : > { %v5183_v51 = vsel %vm631_vm1, %v11417_v40, %v10202_v35  ;;  %v5182_v20 = vsel %vm631_vm1, %v11408_v53, %v10201_v61  ;;  %v5185_v16 = vsel %vm631_vm1, %v11378_v19, %v10207_v13  ;;  %v5184_v28 = vsel %vm631_vm1, %v11374_v39, %v10206_v31  ;;  %v5645_v31 = vld [vmem:[#allocation2 + $0x24] sm:$0xf] }
 0x82e   : > { %v5336_v12 = vrot.slane %v5334_v18, 7  ;;  %v5328_v49 = vrot.slane %v5326_v3, 7  ;;  %v9480_v62 = vpack.c.bf16 %v5183_v51, %v5183_v51  ;;  %v9479_v33 = vpack.c.bf16 %v5182_v20, %v5182_v20  ;;  %v5649_v18 = vld [vmem:[#allocation2 + $0x2c] sm:$0x1] }
 0x82f   : > { %v9482_v1 = vpack.c.bf16 %v5185_v16, %v5185_v16  ;;  %v9481_v27 = vpack.c.bf16 %v5184_v28, %v5184_v28  ;;  %v6202_v40 = vsel %vm6196_vm9, %v6200_v46, %v6201_v23 }
 0x830   : > { %v5339_v25 = vor.u32 %v5337_v57, %v5336_v12  ;;  %v5341_v53 = vrot.slane %v5336_v12, 4  ;;  %v5331_v0 = vor.u32 %v5329_v43, %v5328_v49  ;;  %v5332_v14 = vrot.slane %v5328_v49, 4  ;;  %6253 = vrot.lane.b32.xlu0 %v6202_v40, %s10573_s28  ;;  %v5656_v49 = vld [vmem:[#allocation2 + $0x38] sm:$0x1] }
 0x831   : > { %v5351_v39 = vshrl.u32 %v9480_v62, 16  ;;  %v5354_v19 = vshll.u32 %v9480_v62, 16  ;;  %v5343_v44 = vshrl.u32 %v9479_v33, 16  ;;  %v5346_v59 = vshll.u32 %v9479_v33, 16 }
 0x832   : > { %v5643_v9 = vsel %vm11654_vm0, %v5341_v53, %v5642_v52  ;;  %v5340_v8 = vsel %vm11789_vm5, %v5332_v14, %v5339_v25  ;;  %v5639_v46 = vsel %vm11795_vm7, %v5331_v0, %v5638_v22  ;;  %v5368_v23 = vshrl.u32 %v9482_v1, 16  ;;  %v10210_v54 = vpop.permute.xlu0 %10209  ;;  %v5652_v25 = vld [vmem:[#allocation2 + $0x30] sm:$0xf] }
 0x833   : > { %5644 = vst [vmem:[#allocation2 + $0x20] sm:$0x1] %v5643_v9  ;;  %5640 = vst [vmem:[#allocation2 + $0x18] sm:$0xf] %v5639_v46  ;;  %v5353_v47 = vrot.slane %v5351_v39, 7  ;;  %v5345_v35 = vrot.slane %v5343_v44, 7  ;;  %v10212_v43 = vunpack.i.h.bf16 %v10210_v54  ;;  %v10211_v51 = vunpack.i.l.bf16 %v10210_v54 }
 0x834   : > { %5641 = vst.msk [vmem:[#allocation2 + $0x1c] sm:$0xf] %vm4928_vm13, %v5340_v8  ;;  %v5371_v61 = vshll.u32 %v9482_v1, 16  ;;  %v5360_v13 = vshrl.u32 %v9481_v27, 16  ;;  %v5370_v57 = vrot.slane %v5368_v23, 7  ;;  %v5363_v3 = vshll.u32 %v9481_v27, 16 }
 0x835   : > { %v5356_v20 = vor.u32 %v5354_v19, %v5353_v47  ;;  %v5358_v16 = vrot.slane %v5353_v47, 4  ;;  %v5348_v28 = vor.u32 %v5346_v59, %v5345_v35  ;;  %v5349_v12 = vrot.slane %v5345_v35, 4 }
 0x836   : > { %v5373_v62 = vor.u32 %v5371_v61, %v5370_v57  ;;  %v5375_v33 = vrot.slane %v5370_v57, 4  ;;  %v5362_v22 = vrot.slane %v5360_v13, 7  ;;  %v5187_v52 = vsel %vm631_vm1, %v11394_v45, %v10212_v43  ;;  %v10215_v1 = vpop.permute.xlu1 %10214  ;;  %v5663_v13 = vld [vmem:[#allocation2 + $0x44] sm:$0x1] }
 0x837   : > { %v5650_v27 = vsel %vm11654_vm0, %v5358_v16, %v5649_v18  ;;  %v5357_v37 = vsel %vm11789_vm5, %v5349_v12, %v5356_v20  ;;  %v5646_v40 = vsel %vm11795_vm7, %v5348_v28, %v5645_v31  ;;  %v9484_v53 = vpack.c.bf16 %v5187_v52, %v5187_v52  ;;  %v5659_v28 = vld [vmem:[#allocation2 + $0x3c] sm:$0xf] }
 0x838   : > { %5651 = vst [vmem:[#allocation2 + $0x2c] sm:$0x1] %v5650_v27  ;;  %5647 = vst [vmem:[#allocation2 + $0x24] sm:$0xf] %v5646_v40  ;;  %v5657_v0 = vsel %vm11654_vm0, %v5375_v33, %v5656_v49  ;;  %v5365_v45 = vor.u32 %v5363_v3, %v5362_v22  ;;  %v5366_v14 = vrot.slane %v5362_v22, 4  ;;  %v5186_v39 = vsel %vm631_vm1, %v11385_v15, %v10211_v51 }
 0x839   : > { %5648 = vst.msk [vmem:[#allocation2 + $0x28] sm:$0xf] %vm4928_vm13, %v5357_v37  ;;  %5658 = vst [vmem:[#allocation2 + $0x38] sm:$0x1] %v5657_v0  ;;  %v5385_v19 = vshrl.u32 %v9484_v53, 16  ;;  %v5388_v44 = vshll.u32 %v9484_v53, 16  ;;  %v9483_v59 = vpack.c.bf16 %v5186_v39, %v5186_v39  ;;  %v10217_v9 = vunpack.i.h.bf16 %v10215_v1 }
 0x83a   : > { %v5374_v8 = vsel %vm11789_vm5, %v5366_v14, %v5373_v62  ;;  %v5653_v46 = vsel %vm11795_vm7, %v5365_v45, %v5652_v25  ;;  %v10216_v23 = vunpack.i.l.bf16 %v10215_v1  ;;  %v10220_v54 = vpop.permute.xlu0 %10219  ;;  %v5666_v27 = vld [vmem:[#allocation2 + $0x48] sm:$0xf] }
 0x83b   : > { %5654 = vst [vmem:[#allocation2 + $0x30] sm:$0xf] %v5653_v46  ;;  %5655 = vst.msk [vmem:[#allocation2 + $0x34] sm:$0xf] %vm4928_vm13, %v5374_v8  ;;  %v5387_v47 = vrot.slane %v5385_v19, 7  ;;  %v5377_v35 = vshrl.u32 %v9483_v59, 16  ;;  %v5189_v15 = vsel %vm631_vm1, %v11405_v30, %v10217_v9  ;;  %v10222_v57 = vunpack.i.h.bf16 %v10220_v54 }
 0x83c   : > { %v5380_v61 = vshll.u32 %v9483_v59, 16  ;;  %v9486_v31 = vpack.c.bf16 %v5189_v15, %v5189_v15  ;;  %v5188_v18 = vsel %vm631_vm1, %v11398_v26, %v10216_v23  ;;  %v10221_v3 = vunpack.i.l.bf16 %v10220_v54 }
 0x83d   : > { %v5390_v43 = vor.u32 %v5388_v44, %v5387_v47  ;;  %v5392_v51 = vrot.slane %v5387_v47, 4  ;;  %v5379_v20 = vrot.slane %v5377_v35, 7  ;;  %v9485_v16 = vpack.c.bf16 %v5188_v18, %v5188_v18  ;;  %v5677_v18 = vld [vmem:[#allocation2 + $0x5c] sm:$0x1] }
 0x83e   : > { %v5402_v12 = vshrl.u32 %v9486_v31, 16  ;;  %v5405_v49 = vshll.u32 %v9486_v31, 16  ;;  %v5191_v62 = vsel %vm631_vm1, %v11457_v42, %v10222_v57  ;;  %v5190_v30 = vsel %vm631_vm1, %v11446_v34, %v10221_v3  ;;  %v10225_v33 = vpop.permute.xlu1 %10224  ;;  %v5670_v34 = vld [vmem:[#allocation2 + $0x50] sm:$0x1] }
 0x83f   : > { %v5664_v22 = vsel %vm11654_vm0, %v5392_v51, %v5663_v13  ;;  %v5382_v26 = vor.u32 %v5380_v61, %v5379_v20  ;;  %v5383_v52 = vrot.slane %v5379_v20, 4  ;;  %v5394_v1 = vshrl.u32 %v9485_v16, 16 }
 0x840   : > { %5665 = vst [vmem:[#allocation2 + $0x44] sm:$0x1] %v5664_v22  ;;  %v5404_v37 = vrot.slane %v5402_v12, 7  ;;  %v5397_v40 = vshll.u32 %v9485_v16, 16  ;;  %v9488_v25 = vpack.c.bf16 %v5191_v62, %v5191_v62  ;;  %v9487_v53 = vpack.c.bf16 %v5190_v30, %v5190_v30 }
 0x841   : > { %v5391_v0 = vsel %vm11789_vm5, %v5383_v52, %v5390_v43  ;;  %v5660_v42 = vsel %vm11795_vm7, %v5382_v26, %v5659_v28  ;;  %v5396_v45 = vrot.slane %v5394_v1, 7  ;;  %v10227_v14 = vunpack.i.h.bf16 %v10225_v33  ;;  %v5673_v43 = vld [vmem:[#allocation2 + $0x54] sm:$0xf]  ;;  %v11880_v28 = vld [vmem:[#allocation2 + $0x18] sm:$0xff]  }
 0x842   : > { %5661 = vst [vmem:[#allocation2 + $0x3c] sm:$0xf] %v5660_v42  ;;  %5662 = vst.msk [vmem:[#allocation2 + $0x40] sm:$0xf] %vm4928_vm13, %v5391_v0  ;;  %v5407_v39 = vor.u32 %v5405_v49, %v5404_v37  ;;  %v5409_v19 = vrot.slane %v5404_v37, 4  ;;  %v5419_v44 = vshrl.u32 %v9488_v25, 16  ;;  %v10230_v54 = vpop.permute.xlu0 %10229  ;;  %v10226_v15 = vunpack.i.l.bf16 %v10225_v33 }
 0x843   : > { %v5422_v59 = vshll.u32 %v9488_v25, 16  ;;  %v5399_v9 = vor.u32 %v5397_v40, %v5396_v45  ;;  %v5400_v8 = vrot.slane %v5396_v45, 4  ;;  %v5411_v46 = vshrl.u32 %v9487_v53, 16  ;;  %v11886_v1 = vld [vmem:[#allocation2 + $0x20] ss:$0 sps:$4 sm:$0x11]  }
 0x844   : > { %v5414_v23 = vshll.u32 %v9487_v53, 16  ;;  %v5671_v47 = vsel %vm11654_vm0, %v5409_v19, %v5670_v34  ;;  %v5421_v35 = vrot.slane %v5419_v44, 7  ;;  %v5193_v61 = vsel %vm631_vm1, %v11432_v6, %v10227_v14  ;;  %v5680_v14 = vld [vmem:[#allocation2 + $0x60] sm:$0xf] }
 0x845   : > { %5672 = vst [vmem:[#allocation2 + $0x50] sm:$0x1] %v5671_v47  ;;  %v5408_v13 = vsel %vm11789_vm5, %v5400_v8, %v5407_v39  ;;  %v5667_v31 = vsel %vm11795_vm7, %v5399_v9, %v5666_v27  ;;  %v5413_v57 = vrot.slane %v5411_v46, 7  ;;  %v9490_v3 = vpack.c.bf16 %v5193_v61, %v5193_v61 }
 0x846   : > { %5668 = vst [vmem:[#allocation2 + $0x48] sm:$0xf] %v5667_v31  ;;  %5669 = vst.msk [vmem:[#allocation2 + $0x4c] sm:$0xf] %vm4928_vm13, %v5408_v13  ;;  %v5424_v51 = vor.u32 %v5422_v59, %v5421_v35  ;;  %v5426_v20 = vrot.slane %v5421_v35, 4  ;;  %v5192_v6 = vsel %vm631_vm1, %v11425_v2, %v10226_v15  ;;  %v10232_v16 = vunpack.i.h.bf16 %v10230_v54  ;;  %v10235_v45 = vpop.permute.xlu1 %10234 }
 0x847   : > { %v5416_v12 = vor.u32 %v5414_v23, %v5413_v57  ;;  %v5417_v49 = vrot.slane %v5413_v57, 4  ;;  %v5436_v62 = vshrl.u32 %v9490_v3, 16  ;;  %v5439_v30 = vshll.u32 %v9490_v3, 16  ;;  %v11891_v2 = vld [vmem:[%s13229_s12 + $0x14] ss:$0 sps:$4 sm:$0xff]   ;;  %v11907_v57 = vld [vmem:[#allocation2 + $0x24] sm:$0xff]  }
 0x848   : > { %v5678_v33 = vsel %vm11654_vm0, %v5426_v20, %v5677_v18  ;;  %v9489_v22 = vpack.c.bf16 %v5192_v6, %v5192_v6  ;;  %v5195_v26 = vsel %vm631_vm1, %v11436_v4, %v10232_v16  ;;  %v10231_v52 = vunpack.i.l.bf16 %v10230_v54  ;;  %v5684_v4 = vld [vmem:[#allocation2 + $0x68] sm:$0x1]  ;;  %10092 = vmatprep.subr.msk.bf16.mxu1 %vm944_vm10, %v11891_v2  ;;  %v5691_v13 = vld [vmem:[#allocation2 + $0x74] sm:$0x1] }
 0x849   : > { %5679 = vst [vmem:[#allocation2 + $0x5c] sm:$0x1] %v5678_v33  ;;  %v5425_v27 = vsel %vm11789_vm5, %v5417_v49, %v5424_v51  ;;  %v5674_v37 = vsel %vm11795_vm7, %v5416_v12, %v5673_v43  ;;  %v5438_v40 = vrot.slane %v5436_v62, 7  ;;  %v9492_v25 = vpack.c.bf16 %v5195_v26, %v5195_v26  ;;  %v11915_v62 = vld [vmem:[#allocation2 + $0x2c] ss:$0 sps:$4 sm:$0x11]  }
 0x84a   : > { %5675 = vst [vmem:[#allocation2 + $0x54] sm:$0xf] %v5674_v37  ;;  %5676 = vst.msk [vmem:[#allocation2 + $0x58] sm:$0xf] %vm4928_vm13, %v5425_v27  ;;  %v5428_v53 = vshrl.u32 %v9489_v22, 16  ;;  %v5431_v0 = vshll.u32 %v9489_v22, 16  ;;  %v5194_v42 = vsel %vm631_vm1, %v11427_v10, %v10231_v52  ;;  %v10237_v47 = vunpack.i.h.bf16 %v10235_v45 }
 0x84b   : > { %v5969_v34 = vshrl.u32 %v11880_v28, 16  ;;  %v5441_v39 = vor.u32 %v5439_v30, %v5438_v40  ;;  %v5443_v19 = vrot.slane %v5438_v40, 4  ;;  %v5453_v44 = vshrl.u32 %v9492_v25, 16  ;;  %v5687_v30 = vld [vmem:[#allocation2 + $0x6c] sm:$0xf] }
 0x84c   : > { %v5456_v59 = vshll.u32 %v9492_v25, 16  ;;  %v5430_v9 = vrot.slane %v5428_v53, 7  ;;  %v9491_v8 = vpack.c.bf16 %v5194_v42, %v5194_v42  ;;  %v5971_v46 = vshll.u32 %v11880_v28, 16  ;;  %v10240_v42 = vpop.permute.xlu0 %10239 }
 0x84d   : > { %v5976_v23 = vshll.u32 %v11886_v1, 16  ;;  %v5685_v10 = vsel %vm11654_vm0, %v5443_v19, %v5684_v4  ;;  %v5455_v54 = vrot.slane %v5453_v44, 7  ;;  %v10236_v35 = vunpack.i.l.bf16 %v10235_v45 }
 0x84e   : > { %5686 = vst [vmem:[#allocation2 + $0x68] sm:$0x1] %v5685_v10  ;;  %v5433_v61 = vor.u32 %v5431_v0, %v5430_v9  ;;  %v5434_v15 = vrot.slane %v5430_v9, 4  ;;  %v5445_v31 = vshrl.u32 %v9491_v8, 16  ;;  %v5448_v18 = vshll.u32 %v9491_v8, 16 }
 0x84f   : > { %v5458_v3 = vor.u32 %v5456_v59, %v5455_v54  ;;  %v5460_v43 = vrot.slane %v5455_v54, 4  ;;  %v5973_v51 = vrot.slane %v5971_v46, 1  ;;  %v5978_v20 = vrot.slane %v5976_v23, 1  ;;  %v5694_v9 = vld [vmem:[#allocation2 + $0x78] sm:$0xf] }
 0x850   : > { %v5442_v6 = vsel %vm11789_vm5, %v5434_v15, %v5441_v39  ;;  %v5681_v16 = vsel %vm11795_vm7, %v5433_v61, %v5680_v14  ;;  %v5447_v12 = vrot.slane %v5445_v31, 7  ;;  %v5197_v49 = vsel %vm631_vm1, %v11420_v7, %v10237_v47  ;;  %v5698_v8 = vld [vmem:[#allocation2 + $0x80] sm:$0x1]  ;;  %v11936_v31 = vld [vmem:[#allocation2 + $0x38] ss:$0 sps:$4 sm:$0x11]  }
 0x851   : > { %5682 = vst [vmem:[#allocation2 + $0x60] sm:$0xf] %v5681_v16  ;;  %5683 = vst.msk [vmem:[#allocation2 + $0x64] sm:$0xf] %vm4928_vm13, %v5442_v6  ;;  %v5692_v33 = vsel %vm11654_vm0, %v5460_v43, %v5691_v13  ;;  %v5974_v22 = vor.u32 %v5973_v51, %v5969_v34  ;;  %v9494_v26 = vpack.c.bf16 %v5197_v49, %v5197_v49  ;;  %v5981_v7 = vshrl.u32 %v11907_v57, 16  ;;  %v11934_v13 = vld [vmem:[#allocation2 + $0x30] sm:$0xff]  }
 0x852   : > { %v5196_v52 = vsel %vm631_vm1, %v11413_v56, %v10236_v35  ;;  %5693 = vst [vmem:[#allocation2 + $0x74] sm:$0x1] %v5692_v33  ;;  %v5450_v27 = vor.u32 %v5448_v18, %v5447_v12  ;;  %v5451_v37 = vrot.slane %v5447_v12, 4  ;;  %v5983_v0 = vshll.u32 %v11907_v57, 16  ;;  %v11953_v33 = vld [vmem:[#allocation2 + $0x3c] sm:$0xff]  }
 0x853   : > { %v9493_v40 = vpack.c.bf16 %v5196_v52, %v5196_v52  ;;  %v5979_v25 = vsel %vm5943_vm8, %v5974_v22, %v5978_v20  ;;  %v5470_v4 = vshrl.u32 %v9494_v26, 16  ;;  %v5473_v53 = vshll.u32 %v9494_v26, 16 }
 0x854   : > { %v5459_v34 = vsel %vm11789_vm5, %v5451_v37, %v5458_v3  ;;  %v5688_v45 = vsel %vm11795_vm7, %v5450_v27, %v5687_v30  ;;  %6164 = vrot.lane.b32.xlu1 %v5979_v25, %s10572_s27  ;;  %v5985_v19 = vrot.slane %v5983_v0, 1  ;;  %v5988_v44 = vshll.u32 %v11915_v62, 16  ;;  %v10245_v30 = vpop.permute.xlu1 %10244 }
 0x855   : > { %v5462_v56 = vshrl.u32 %v9493_v40, 16  ;;  %v5465_v14 = vshll.u32 %v9493_v40, 16  ;;  %5689 = vst [vmem:[#allocation2 + $0x6c] sm:$0xf] %v5688_v45  ;;  %5690 = vst.msk [vmem:[#allocation2 + $0x70] sm:$0xf] %vm4928_vm13, %v5459_v34  ;;  %v10242_v10 = vunpack.i.h.bf16 %v10240_v42  ;;  %v10241_v54 = vunpack.i.l.bf16 %v10240_v42 }
 0x856   : > { %v5472_v39 = vrot.slane %v5470_v4, 7  ;;  %v6203_v59 = vrot.slane %v11880_v28, 1  ;;  %v6204_v23 = vrot.slane %v11886_v1, 1  ;;  %v5986_v61 = vor.u32 %v5985_v19, %v5981_v7  ;;  %v10298_v42 = vld [vmem:[#allocation2 + $0x44] ss:$0 sps:$4 sm:$0x11]  }
 0x857   : > { %v5464_v46 = vrot.slane %v5462_v56, 7  ;;  %v5990_v15 = vrot.slane %v5988_v44, 1  ;;  %v5199_v28 = vsel %vm631_vm1, %v11475_v41, %v10242_v10  ;;  %v5198_v6 = vsel %vm631_vm1, %v11469_v55, %v10241_v54  ;;  %v5705_v34 = vld [vmem:[#allocation2 + $0x8c] sm:$0x1] }
 0x858   : > { %v5475_v47 = vor.u32 %v5473_v53, %v5472_v39  ;;  %v5477_v35 = vrot.slane %v5472_v39, 4  ;;  %v6205_v43 = vsel %vm6196_vm9, %v6203_v59, %v6204_v23  ;;  %v9496_v20 = vpack.c.bf16 %v5199_v28, %v5199_v28  ;;  %v5701_v39 = vld [vmem:[#allocation2 + $0x84] sm:$0xf]  ;;  %v5712_v28 = vld [vmem:[#allocation2 + $0x98] sm:$0x1] }
 0x859   : > { %v5467_v18 = vor.u32 %v5465_v14, %v5464_v46  ;;  %v5468_v3 = vrot.slane %v5464_v46, 4  ;;  %v5991_v51 = vsel %vm5943_vm8, %v5986_v61, %v5990_v15  ;;  %6255 = vrot.lane.b32.xlu1 %v6205_v43, %s10573_s28  ;;  %v9495_v41 = vpack.c.bf16 %v5198_v6, %v5198_v6  ;;  %v10300_v43 = vld [vmem:[#allocation2 + $0x50] ss:$0 sps:$4 sm:$0x11]  }
 0x85a   : > { %v5699_v1 = vsel %vm11654_vm0, %v5477_v35, %v5698_v8  ;;  %6166 = vrot.lane.b32.xlu0 %v5991_v51, %s10572_s27  ;;  %v6206_v49 = vrot.slane %v11907_v57, 1  ;;  %v5487_v22 = vshrl.u32 %v9496_v20, 16  ;;  %v5490_v55 = vshll.u32 %v9496_v20, 16 }
 0x85b   : > { %5700 = vst [vmem:[#allocation2 + $0x80] sm:$0x1] %v5699_v1  ;;  %v5476_v16 = vsel %vm11789_vm5, %v5468_v3, %v5475_v47  ;;  %v5695_v12 = vsel %vm11795_vm7, %v5467_v18, %v5694_v9  ;;  %v6207_v26 = vrot.slane %v11915_v62, 1  ;;  %v5993_v52 = vshrl.u32 %v11934_v13, 16  ;;  %v11975_v3 = vld [vmem:[#allocation2 + $0x48] sm:$0xff]  }
 0x85c   : > { %5696 = vst [vmem:[#allocation2 + $0x78] sm:$0xf] %v5695_v12  ;;  %5697 = vst.msk [vmem:[#allocation2 + $0x7c] sm:$0xf] %vm4928_vm13, %v5476_v16  ;;  %v5479_v27 = vshrl.u32 %v9495_v41, 16  ;;  %v5482_v37 = vshll.u32 %v9495_v41, 16  ;;  %v10247_v53 = vunpack.i.h.bf16 %v10245_v30  ;;  %v10246_v0 = vunpack.i.l.bf16 %v10245_v30 }
 0x85d   : > { %v5995_v40 = vshll.u32 %v11934_v13, 16  ;;  %v6000_v7 = vshll.u32 %v11936_v31, 16  ;;  %v5489_v25 = vrot.slane %v5487_v22, 7  ;;  %v6208_v4 = vsel %vm6196_vm9, %v6206_v49, %v6207_v26  ;;  %v11981_v30 = vld [vmem:[#allocation2 + $0x54] sm:$0xff]  }
 0x85e   : > { %v5481_v45 = vrot.slane %v5479_v27, 7  ;;  %6257 = vrot.lane.b32.xlu0 %v6208_v4, %s10573_s28  ;;  %v6005_v14 = vshrl.u32 %v11953_v33, 16  ;;  %v5201_v59 = vsel %vm631_vm1, %v11444_v21, %v10247_v53  ;;  %v5200_v9 = vsel %vm631_vm1, %v11439_v32, %v10246_v0  ;;  %v10302_v27 = vld [vmem:[#allocation2 + $0x5c] ss:$0 sps:$4 sm:$0x11]  }
 0x85f   : > { %v5997_v56 = vrot.slane %v5995_v40, 1  ;;  %v6002_v62 = vrot.slane %v6000_v7, 1  ;;  %v5492_v19 = vor.u32 %v5490_v55, %v5489_v25  ;;  %v5494_v44 = vrot.slane %v5489_v25, 4 }
 0x860   : > { %v5484_v8 = vor.u32 %v5482_v37, %v5481_v45  ;;  %v5485_v46 = vrot.slane %v5481_v45, 4  ;;  %v9498_v10 = vpack.c.bf16 %v5201_v59, %v5201_v59  ;;  %v9497_v47 = vpack.c.bf16 %v5200_v9, %v5200_v9  ;;  %v5708_v37 = vld [vmem:[#allocation2 + $0x90] sm:$0xf]  ;;  %v11999_v9 = vld [vmem:[#allocation2 + $0x60] sm:$0xff]  }
 0x861   : > { %v5998_v23 = vor.u32 %v5997_v56, %v5993_v52  ;;  %v5706_v54 = vsel %vm11654_vm0, %v5494_v44, %v5705_v34  ;;  %v6007_v35 = vshll.u32 %v11953_v33, 16  ;;  %v6012_v61 = vshll.u32 %v10298_v42, 16 }
 0x862   : > { %5707 = vst [vmem:[#allocation2 + $0x8c] sm:$0x1] %v5706_v54  ;;  %v5493_v15 = vsel %vm11789_vm5, %v5485_v46, %v5492_v19  ;;  %v5702_v21 = vsel %vm11795_vm7, %v5484_v8, %v5701_v39  ;;  %v5504_v18 = vshrl.u32 %v9498_v10, 16  ;;  %v5507_v1 = vshll.u32 %v9498_v10, 16 }
 0x863   : > { %v6003_v32 = vsel %vm5943_vm8, %v5998_v23, %v6002_v62  ;;  %5703 = vst [vmem:[#allocation2 + $0x84] sm:$0xf] %v5702_v21  ;;  %5704 = vst.msk [vmem:[#allocation2 + $0x88] sm:$0xf] %vm4928_vm13, %v5493_v15  ;;  %v5496_v51 = vshrl.u32 %v9497_v47, 16  ;;  %v5499_v20 = vshll.u32 %v9497_v47, 16 }
 0x864   : > { %6168 = vrot.lane.b32.xlu1 %v6003_v32, %s10572_s27  ;;  %v6009_v6 = vrot.slane %v6007_v35, 1  ;;  %v5506_v16 = vrot.slane %v5504_v18, 7  ;;  %v6014_v12 = vrot.slane %v6012_v61, 1  ;;  %v6209_v41 = vrot.slane %v11934_v13, 1 }
 0x865   : > { %v6210_v49 = vrot.slane %v11936_v31, 1  ;;  %v5498_v22 = vrot.slane %v5496_v51, 7  ;;  %v6212_v26 = vrot.slane %v11953_v33, 1  ;;  %v6213_v52 = vrot.slane %v10298_v42, 1 }
 0x866   : > { %v6010_v55 = vor.u32 %v6009_v6, %v6005_v14  ;;  %v5509_v40 = vor.u32 %v5507_v1, %v5506_v16  ;;  %v5511_v7 = vrot.slane %v5506_v16, 4  ;;  %v6017_v4 = vshrl.u32 %v11975_v3, 16  ;;  %v10250_v14 = vpop.permute.xlu0 %10249  ;;  %v12001_v8 = vld [vmem:[#allocation2 + $0x68] ss:$0 sps:$4 sm:$0x11]   ;;  %v10255_v1 = vpop.permute.xlu1 %10254 }
 0x867   : > { %v6211_v25 = vsel %vm6196_vm9, %v6209_v41, %v6210_v49  ;;  %v5501_v53 = vor.u32 %v5499_v20, %v5498_v22  ;;  %v5502_v0 = vrot.slane %v5498_v22, 4  ;;  %v6214_v31 = vsel %vm6196_vm9, %v6212_v26, %v6213_v52  ;;  %v12015_v22 = vld [vmem:[#allocation2 + $0x6c] sm:$0xff]  }
 0x868   : > { %v6015_v34 = vsel %vm5943_vm8, %v6010_v55, %v6014_v12  ;;  %6259 = vrot.lane.b32.xlu1 %v6211_v25, %s10573_s28  ;;  %v5713_v45 = vsel %vm11654_vm0, %v5511_v7, %v5712_v28  ;;  %v6019_v42 = vshll.u32 %v11975_v3, 16  ;;  %v6024_v56 = vshll.u32 %v10300_v43, 16 }
 0x869   : > { %6170 = vrot.lane.b32.xlu0 %v6015_v34, %s10572_s27  ;;  %v6029_v62 = vshrl.u32 %v11981_v30, 16  ;;  %5714 = vst [vmem:[#allocation2 + $0x98] sm:$0x1] %v5713_v45  ;;  %v5510_v39 = vsel %vm11789_vm5, %v5502_v0, %v5509_v40  ;;  %v5709_v19 = vsel %vm11795_vm7, %v5501_v53, %v5708_v37  ;;  %v6031_v44 = vshll.u32 %v11981_v30, 16 }
 0x86a   : > { %v6036_v59 = vshll.u32 %v10302_v27, 16  ;;  %5710 = vst [vmem:[#allocation2 + $0x90] sm:$0xf] %v5709_v19  ;;  %5711 = vst.msk [vmem:[#allocation2 + $0x94] sm:$0xf] %vm4928_vm13, %v5510_v39  ;;  %v6021_v46 = vrot.slane %v6019_v42, 1  ;;  %v10252_v61 = vunpack.i.h.bf16 %v10250_v14  ;;  %v10251_v15 = vunpack.i.l.bf16 %v10250_v14 }
 0x86b   : > { %v6026_v23 = vrot.slane %v6024_v56, 1  ;;  %v6215_v10 = vrot.slane %v11975_v3, 1  ;;  %v6216_v54 = vrot.slane %v10300_v43, 1  ;;  %v6033_v47 = vrot.slane %v6031_v44, 1  ;;  %v5715_v56 = vld [vmem:[#allocation2 + $0x9c] sm:$0xf] }
 0x86c   : > { %v6038_v35 = vrot.slane %v6036_v59, 1  ;;  %v6022_v21 = vor.u32 %v6021_v46, %v6017_v4  ;;  %v6218_v18 = vrot.slane %v11981_v30, 1  ;;  %v6219_v28 = vrot.slane %v10302_v27, 1 }
 0x86d   : > { %6261 = vrot.lane.b32.xlu0 %v6214_v31, %s10573_s28  ;;  %v6217_v32 = vsel %vm6196_vm9, %v6215_v10, %v6216_v54  ;;  %v6034_v51 = vor.u32 %v6033_v47, %v6029_v62  ;;  %v5203_v20 = vsel %vm631_vm1, %v11560_v11, %v10252_v61  ;;  %v5202_v43 = vsel %vm631_vm1, %v11558_v36, %v10251_v15  ;;  %v12021_v36 = vld [vmem:[#allocation2 + $0x74] ss:$0 sps:$4 sm:$0x11]   ;;  %v5719_v62 = vld [vmem:[#allocation2 + $0xa4] sm:$0x1]  ;;  %v10260_v61 = vpop.permute.xlu0 %10259 }
 0x86e   : > { %v6041_v6 = vshrl.u32 %v11999_v9, 16  ;;  %v6027_v16 = vsel %vm5943_vm8, %v6022_v21, %v6026_v23  ;;  %v9500_v12 = vpack.c.bf16 %v5203_v20, %v5203_v20  ;;  %v9499_v41 = vpack.c.bf16 %v5202_v43, %v5202_v43  ;;  %v5726_v20 = vld [vmem:[#allocation2 + $0xb0] sm:$0x1] }
 0x86f   : > { %v6220_v49 = vsel %vm6196_vm9, %v6218_v18, %v6219_v28  ;;  %6172 = vrot.lane.b32.xlu1 %v6027_v16, %s10572_s27  ;;  %v6039_v55 = vsel %vm5943_vm8, %v6034_v51, %v6038_v35  ;;  %v6043_v26 = vshll.u32 %v11999_v9, 16  ;;  %v6048_v11 = vshll.u32 %v12001_v8, 16 }
 0x870   : > { %v10257_v52 = vunpack.i.h.bf16 %v10255_v1  ;;  %v5521_v27 = vshrl.u32 %v9500_v12, 16  ;;  %v5524_v37 = vshll.u32 %v9500_v12, 16  ;;  %v5513_v40 = vshrl.u32 %v9499_v41, 16 }
 0x871   : > { %6174 = vrot.lane.b32.xlu0 %v6039_v55, %s10572_s27  ;;  %v5516_v7 = vshll.u32 %v9499_v41, 16  ;;  %v6045_v25 = vrot.slane %v6043_v26, 1  ;;  %v6050_v4 = vrot.slane %v6048_v11, 1  ;;  %v10256_v0 = vunpack.i.l.bf16 %v10255_v1  ;;  %v12044_v41 = vld [vmem:[#allocation2 + $0x78] sm:$0xff]  }
 0x872   : > { %v5205_v53 = vsel %vm631_vm1, %v11526_v24, %v10257_v52  ;;  %v5523_v34 = vrot.slane %v5521_v27, 7  ;;  %v5515_v31 = vrot.slane %v5513_v40, 7  ;;  %v6053_v42 = vshrl.u32 %v12015_v22, 16  ;;  %v5722_v52 = vld [vmem:[#allocation2 + $0xa8] sm:$0xf] }
 0x873   : > { %v9502_v45 = vpack.c.bf16 %v5205_v53, %v5205_v53  ;;  %6263 = vrot.lane.b32.xlu1 %v6217_v32, %s10573_s28  ;;  %v6046_v14 = vor.u32 %v6045_v25, %v6041_v6  ;;  %v5204_v39 = vsel %vm631_vm1, %v11517_v38, %v10256_v0  ;;  %v6055_v19 = vshll.u32 %v12015_v22, 16  ;;  %v12051_v25 = vld [vmem:[#allocation2 + $0x80] ss:$0 sps:$4 sm:$0x11]  }
 0x874   : > { %v6060_v44 = vshll.u32 %v12021_v36, 16  ;;  %v5526_v59 = vor.u32 %v5524_v37, %v5523_v34  ;;  %v5528_v24 = vrot.slane %v5523_v34, 4  ;;  %v5518_v46 = vor.u32 %v5516_v7, %v5515_v31 }
 0x875   : > { %v5519_v23 = vrot.slane %v5515_v31, 4  ;;  %6265 = vrot.lane.b32.xlu0 %v6220_v49, %s10573_s28  ;;  %v6051_v10 = vsel %vm5943_vm8, %v6046_v14, %v6050_v4  ;;  %v5538_v54 = vshrl.u32 %v9502_v45, 16  ;;  %v5541_v47 = vshll.u32 %v9502_v45, 16  ;;  %v10265_v45 = vpop.permute.xlu1 %10264 }
 0x876   : > { %v9501_v35 = vpack.c.bf16 %v5204_v39, %v5204_v39  ;;  %v5720_v15 = vsel %vm11654_vm0, %v5528_v24, %v5719_v62  ;;  %v5716_v21 = vsel %vm11795_vm7, %v5518_v46, %v5715_v56  ;;  %v6057_v32 = vrot.slane %v6055_v19, 1  ;;  %v12066_v39 = vld [vmem:[#allocation2 + $0x8c] ss:$0 sps:$4 sm:$0x11]  }
 0x877   : > { %v5527_v38 = vsel %vm11789_vm5, %v5519_v23, %v5526_v59  ;;  %5721 = vst [vmem:[#allocation2 + $0xa4] sm:$0x1] %v5720_v15  ;;  %5717 = vst [vmem:[#allocation2 + $0x9c] sm:$0xf] %v5716_v21  ;;  %6176 = vrot.lane.b32.xlu1 %v6051_v10, %s10572_s27  ;;  %v5540_v18 = vrot.slane %v5538_v54, 7  ;;  %v6062_v51 = vrot.slane %v6060_v44, 1  ;;  %v10262_v12 = vunpack.i.h.bf16 %v10260_v61 }
 0x878   : > { %5718 = vst.msk [vmem:[#allocation2 + $0xa0] sm:$0xf] %vm4928_vm13, %v5527_v38  ;;  %v5530_v28 = vshrl.u32 %v9501_v35, 16  ;;  %v5533_v1 = vshll.u32 %v9501_v35, 16  ;;  %v6058_v43 = vor.u32 %v6057_v32, %v6053_v42  ;;  %v6221_v6 = vrot.slane %v11999_v9, 1  ;;  %v12072_v10 = vld [vmem:[#allocation2 + $0x84] sm:$0xff]  }
 0x879   : > { %v6222_v16 = vrot.slane %v12001_v8, 1  ;;  %v5543_v49 = vor.u32 %v5541_v47, %v5540_v18  ;;  %v5545_v55 = vrot.slane %v5540_v18, 4  ;;  %v10261_v11 = vunpack.i.l.bf16 %v10260_v61  ;;  %v5733_v54 = vld [vmem:[#allocation2 + $0xbc] sm:$0x1] }
 0x87a   : > { %v5532_v26 = vrot.slane %v5530_v28, 7  ;;  %v6063_v27 = vsel %vm5943_vm8, %v6058_v43, %v6062_v51  ;;  %v5207_v40 = vsel %vm631_vm1, %v11540_v17, %v10262_v12  ;;  %v6224_v7 = vrot.slane %v12015_v22, 1  ;;  %v5729_v43 = vld [vmem:[#allocation2 + $0xb4] sm:$0xf] }
 0x87b   : > { %v6223_v37 = vsel %vm6196_vm9, %v6221_v6, %v6222_v16  ;;  %v5727_v8 = vsel %vm11654_vm0, %v5545_v55, %v5726_v20  ;;  %6178 = vrot.lane.b32.xlu0 %v6063_v27, %s10572_s27  ;;  %v9504_v0 = vpack.c.bf16 %v5207_v40, %v5207_v40  ;;  %v5206_v34 = vsel %vm631_vm1, %v11532_v48, %v10261_v11 }
 0x87c   : > { %v5535_v4 = vor.u32 %v5533_v1, %v5532_v26  ;;  %v5536_v53 = vrot.slane %v5532_v26, 4  ;;  %6267 = vrot.lane.b32.xlu1 %v6223_v37, %s10573_s28  ;;  %5728 = vst [vmem:[#allocation2 + $0xb0] sm:$0x1] %v5727_v8  ;;  %v6225_v17 = vrot.slane %v12021_v36, 1  ;;  %v6067_v31 = vshll.u32 %v12044_v41, 16 }
 0x87d   : > { %v5555_v62 = vshrl.u32 %v9504_v0, 16  ;;  %v6065_v14 = vshrl.u32 %v12044_v41, 16  ;;  %v9503_v48 = vpack.c.bf16 %v5206_v34, %v5206_v34  ;;  %v6072_v44 = vshll.u32 %v12051_v25, 16  ;;  %v12085_v26 = vld [vmem:[#allocation2 + $0x98] ss:$0 sps:$4 sm:$0x11]  }
 0x87e   : > { %v5544_v42 = vsel %vm11789_vm5, %v5536_v53, %v5543_v49  ;;  %v5723_v56 = vsel %vm11795_vm7, %v5535_v4, %v5722_v52  ;;  %v6226_v36 = vsel %vm6196_vm9, %v6224_v7, %v6225_v17  ;;  %v6069_v19 = vrot.slane %v6067_v31, 1  ;;  %v5736_v8 = vld [vmem:[#allocation2 + $0xc0] sm:$0xf]  ;;  %v5740_v34 = vld [vmem:[#allocation2 + $0xc8] sm:$0x1] }
 0x87f   : > { %5724 = vst [vmem:[#allocation2 + $0xa8] sm:$0xf] %v5723_v56  ;;  %5725 = vst.msk [vmem:[#allocation2 + $0xac] sm:$0xf] %vm4928_vm13, %v5544_v42  ;;  %v5557_v59 = vrot.slane %v5555_v62, 7  ;;  %v5558_v24 = vshll.u32 %v9504_v0, 16  ;;  %6269 = vrot.lane.b32.xlu0 %v6226_v36, %s10573_s28  ;;  %v10267_v46 = vunpack.i.h.bf16 %v10265_v45  ;;  %v10266_v23 = vunpack.i.l.bf16 %v10265_v45 }
 0x880   : > { %v5547_v47 = vshrl.u32 %v9503_v48, 16  ;;  %v5550_v35 = vshll.u32 %v9503_v48, 16  ;;  %v6070_v61 = vor.u32 %v6069_v19, %v6065_v14  ;;  %v6074_v15 = vrot.slane %v6072_v44, 1  ;;  %v12093_v0 = vld [vmem:[#allocation2 + $0x90] sm:$0xff]   ;;  %v12098_v36 = vld [vmem:[#allocation2 + $0x9c] sm:$0xff]  }
 0x881   : > { %v5560_v38 = vor.u32 %v5558_v24, %v5557_v59  ;;  %v5562_v21 = vrot.slane %v5557_v59, 4  ;;  %v5209_v32 = vsel %vm631_vm1, %v11460_v63, %v10267_v46  ;;  %v5208_v18 = vsel %vm631_vm1, %v11451_v58, %v10266_v23  ;;  %v10314_v19 = vld [vmem:[#allocation2 + $0xa4] ss:$0 sps:$4 sm:$0x11]  }
 0x882   : > { %v5549_v28 = vrot.slane %v5547_v47, 7  ;;  %v6075_v1 = vsel %vm5943_vm8, %v6070_v61, %v6074_v15  ;;  %v9506_v51 = vpack.c.bf16 %v5209_v32, %v5209_v32  ;;  %v9505_v20 = vpack.c.bf16 %v5208_v18, %v5208_v18 }
 0x883   : > { %v5734_v6 = vsel %vm11654_vm0, %v5562_v21, %v5733_v54  ;;  %6180 = vrot.lane.b32.xlu1 %v6075_v1, %s10572_s27  ;;  %v6079_v16 = vshll.u32 %v12072_v10, 16  ;;  %v6084_v12 = vshll.u32 %v12066_v39, 16  ;;  %v6227_v58 = vrot.slane %v12044_v41, 1  ;;  %v12114_v15 = vld [vmem:[#allocation2 + $0xb0] ss:$0 sps:$4 sm:$0x11]  }
 0x884   : > { %5735 = vst [vmem:[#allocation2 + $0xbc] sm:$0x1] %v5734_v6  ;;  %v5552_v63 = vor.u32 %v5550_v35, %v5549_v28  ;;  %v5553_v49 = vrot.slane %v5549_v28, 4  ;;  %v5572_v55 = vshrl.u32 %v9506_v51, 16  ;;  %v5575_v11 = vshll.u32 %v9506_v51, 16 }
 0x885   : > { %v5564_v52 = vshrl.u32 %v9505_v20, 16  ;;  %v6077_v27 = vshrl.u32 %v12072_v10, 16  ;;  %v6081_v37 = vrot.slane %v6079_v16, 1  ;;  %v6228_v53 = vrot.slane %v12051_v25, 1 }
 0x886   : > { %v5561_v40 = vsel %vm11789_vm5, %v5553_v49, %v5560_v38  ;;  %v5730_v7 = vsel %vm11795_vm7, %v5552_v63, %v5729_v43  ;;  %v5574_v4 = vrot.slane %v5572_v55, 7  ;;  %v5567_v31 = vshll.u32 %v9505_v20, 16  ;;  %v12108_v47 = vld [vmem:[#allocation2 + $0xa8] sm:$0xff]  }
 0x887   : > { %5731 = vst [vmem:[#allocation2 + $0xb4] sm:$0xf] %v5730_v7  ;;  %5732 = vst.msk [vmem:[#allocation2 + $0xb8] sm:$0xf] %vm4928_vm13, %v5561_v40  ;;  %v5566_v17 = vrot.slane %v5564_v52, 7  ;;  %v6082_v45 = vor.u32 %v6081_v37, %v6077_v27  ;;  %v6086_v42 = vrot.slane %v6084_v12, 1  ;;  %v6229_v14 = vsel %vm6196_vm9, %v6227_v58, %v6228_v53 }
 0x888   : > { %v5577_v56 = vor.u32 %v5575_v11, %v5574_v4  ;;  %v5579_v62 = vrot.slane %v5574_v4, 4  ;;  %v6230_v48 = vrot.slane %v12072_v10, 1  ;;  %6271 = vrot.lane.b32.xlu1 %v6229_v14, %s10573_s28  ;;  %v6231_v24 = vrot.slane %v12066_v39, 1  ;;  %v12132_v37 = vld [vmem:[#allocation2] sm:$0xff]  }
 0x889   : > { %v5569_v25 = vor.u32 %v5567_v31, %v5566_v17  ;;  %v5570_v44 = vrot.slane %v5566_v17, 4  ;;  %v6087_v59 = vsel %vm5943_vm8, %v6082_v45, %v6086_v42  ;;  %v6091_v23 = vshll.u32 %v12093_v0, 16  ;;  %v10322_v17 = vld [vmem:[#allocation2 + $0x8] ss:$0 sps:$4 sm:$0x11]  }
 0x88a   : > { %v5741_v46 = vsel %vm11654_vm0, %v5579_v62, %v5740_v34  ;;  %6182 = vrot.lane.b32.xlu0 %v6087_v59, %s10572_s27  ;;  %v6096_v54 = vshll.u32 %v12085_v26, 16  ;;  %v6089_v39 = vshrl.u32 %v12093_v0, 16  ;;  %v6103_v21 = vshll.u32 %v12098_v36, 16 }
 0x88b   : > { %5742 = vst [vmem:[#allocation2 + $0xc8] sm:$0x1] %v5741_v46  ;;  %v5578_v35 = vsel %vm11789_vm5, %v5570_v44, %v5577_v56  ;;  %v5737_v61 = vsel %vm11795_vm7, %v5569_v25, %v5736_v8  ;;  %v6093_v38 = vrot.slane %v6091_v23, 1  ;;  %v6108_v32 = vshll.u32 %v10314_v19, 16 }
 0x88c   : > { %5738 = vst [vmem:[#allocation2 + $0xc0] sm:$0xf] %v5737_v61  ;;  %5739 = vst.msk [vmem:[#allocation2 + $0xc4] sm:$0xf] %vm4928_vm13, %v5578_v35  ;;  %v6232_v18 = vsel %vm6196_vm9, %v6230_v48, %v6231_v24  ;;  %v6101_v28 = vshrl.u32 %v12098_v36, 16  ;;  %v6098_v20 = vrot.slane %v6096_v54, 1 }
 0x88d   : > { %v12121_v1 = vld [vmem:[#allocation2 + $0xbc] ss:$0 sps:$4 sm:$0x11]   ;;  %v6094_v51 = vor.u32 %v6093_v38, %v6089_v39  ;;  %v6105_v43 = vrot.slane %v6103_v21, 1  ;;  %v6115_v6 = vshll.u32 %v12108_v47, 16  ;;  %v6233_v12 = vrot.slane %v12093_v0, 1 }
 0x88e   : > { %6273 = vrot.lane.b32.xlu0 %v6232_v18, %s10573_s28  ;;  %v12125_v16 = vld [vmem:[#allocation2 + $0xb4] sm:$0xff]   ;;  %v6234_v63 = vrot.slane %v12085_v26, 1  ;;  %v6110_v49 = vrot.slane %v6108_v32, 1  ;;  %v6113_v55 = vshrl.u32 %v12108_v47, 16  ;;  %v6120_v27 = vshll.u32 %v12114_v15, 16  ;;  %v12157_v61 = vld [vmem:[%s13229_s12] sm:$0xff]  }
 0x88f   : > { %v6099_v58 = vsel %vm5943_vm8, %v6094_v51, %v6098_v20  ;;  %v6106_v11 = vor.u32 %v6105_v43, %v6101_v28  ;;  %v6117_v52 = vrot.slane %v6115_v6, 1  ;;  %v6236_v40 = vrot.slane %v12098_v36, 1 }
 0x890   : > { %6184 = vrot.lane.b32.xlu1 %v6099_v58, %s10572_s27  ;;  %v6237_v7 = vrot.slane %v10314_v19, 1  ;;  %v6127_v8 = vshll.u32 %v12125_v16, 16  ;;  %v6125_v53 = vshrl.u32 %v12125_v16, 16  ;;  %v6132_v34 = vshll.u32 %v12121_v1, 16 }
 0x891   : > { %v6111_v26 = vsel %vm5943_vm8, %v6106_v11, %v6110_v49  ;;  %v6118_v4 = vor.u32 %v6117_v52, %v6113_v55  ;;  %v6235_v42 = vsel %vm6196_vm9, %v6233_v12, %v6234_v63  ;;  %v6122_v56 = vrot.slane %v6120_v27, 1  ;;  %v5047_v52 = vld [vmem:[#allocation2 + $0xd4] sm:$0x1] }
 0x892   : > { %6186 = vrot.lane.b32.xlu0 %v6111_v26, %s10572_s27  ;;  %v6129_v31 = vrot.slane %v6127_v8, 1  ;;  %v10320_v62 = vld [vmem:[#allocation2 + $0xc8] ss:$0 sps:$4 sm:$0x11]   ;;  %v5947_v14 = vshll.u32 %v12132_v37, 16  ;;  %v6238_v25 = vsel %vm6196_vm9, %v6236_v40, %v6237_v7  ;;  %v6134_v59 = vrot.slane %v6132_v34, 1 }
 0x893   : > { %v12141_v45 = vld [vmem:[#allocation2 + $0xc0] sm:$0xff]   ;;  %v6123_v44 = vsel %vm5943_vm8, %v6118_v4, %v6122_v56  ;;  %v6239_v24 = vrot.slane %v12108_v47, 1  ;;  %v6240_v46 = vrot.slane %v12114_v15, 1  ;;  %v5945_v35 = vshrl.u32 %v12132_v37, 16 }
 0x894   : > { %6275 = vrot.lane.b32.xlu1 %v6235_v42, %s10573_s28  ;;  %v6130_v48 = vor.u32 %v6129_v31, %v6125_v53  ;;  %v6139_v19 = vshll.u32 %v12141_v45, 16  ;;  %v6137_v23 = vshrl.u32 %v12141_v45, 16  ;;  %v6144_v38 = vshll.u32 %v10320_v62, 16  ;;  %v10535_v53 = vld [vmem:[#allocation2 + $0xc] sm:$0xff]  }
 0x895   : > { %v5949_v21 = vrot.slane %v5947_v14, 1  ;;  %v5952_v32 = vshll.u32 %v10322_v17, 16  ;;  %v6411_v15 = vsel %vm944_vm10, %v11891_v2, 0  ;;  %v6242_v18 = vrot.slane %v12125_v16, 1 }
 0x896   : > { %6277 = vrot.lane.b32.xlu0 %v6238_v25, %s10573_s28  ;;  %v6141_v54 = vrot.slane %v6139_v19, 1  ;;  %v6135_v39 = vsel %vm5943_vm8, %v6130_v48, %v6134_v59  ;;  %v6243_v28 = vrot.slane %v12121_v1, 1  ;;  %9745 = vmatpush3.bf16.msra.mxu1 %v6411_v15  ;;  %v6241_v20 = vsel %vm6196_vm9, %v6239_v24, %v6240_v46  ;;  %v4991_v1 = vld [vmem:[#allocation2 + $0xcc] sm:$0x1] }
 0x897   : > { %9778 = vmatprep.subr.bf16.mxu1 %v12157_v61  ;;  %v6146_v43 = vrot.slane %v6144_v38, 1  ;;  %v5950_v6 = vor.u32 %v5949_v21, %v5945_v35  ;;  %v5954_v12 = vrot.slane %v5952_v32, 1  ;;  %v6245_v49 = vrot.slane %v12141_v45, 1  ;;  %v10536_v35 = vld [vmem:[#allocation2 + $0x18] sm:$0xff]   ;;  %v10326_v21 = vld [vmem:[%s13229_s12 + $0x8] ss:$0 sps:$4 sm:$0xff]  }
 0x898   : > { %6188 = vrot.lane.b32.xlu1 %v6123_v44, %s10572_s27  ;;  %v6142_v51 = vor.u32 %v6141_v54, %v6137_v23  ;;  %v6244_v63 = vsel %vm6196_vm9, %v6242_v18, %v6243_v28  ;;  %v6246_v55 = vrot.slane %v10320_v62, 1  ;;  %v4992_v11 = vsel %vm11654_vm0, 0, %v4991_v1  ;;  %v12215_v28 = vld [vmem:[%s13229_s12 + $0x18] sm:$0xff]  }
 0x899   : > { %v5955_v58 = vsel %vm5943_vm8, %v5950_v6, %v5954_v12  ;;  %4993 = vst [vmem:[#allocation2 + $0xcc] sm:$0x1] %v4992_v11  ;;  %v6197_v27 = vrot.slane %v12132_v37, 1  ;;  %v6198_v40 = vrot.slane %v10322_v17, 1  ;;  %v5048_v8 = vsel %vm11686_vm3, 0, %v5047_v52 }
 0x89a   : > { %6190 = vrot.lane.b32.xlu0 %v6135_v39, %s10572_s27  ;;  %v6147_v2 = vsel %vm5943_vm8, %v6142_v51, %v6146_v43  ;;  %5049 = vst [vmem:[#allocation2 + $0xd4] sm:$0x1] %v5048_v8  ;;  %v6247_v26 = vsel %vm6196_vm9, %v6245_v49, %v6246_v55  ;;  %vm6323_vm1 = vcmask 130048   ;;  %v6586_v18 = vsel %vm944_vm10, %v10326_v21, 0 }
 0x89b   : > { %v6199_v4 = vsel %vm6196_vm9, %v6197_v27, %v6198_v40 }
 0x89c   : > { %6279 = vrot.lane.b32.xlu1 %v6241_v20, %s10573_s28 }
 0x89d   : > { %v6163_v7 = vpop.permute.xlu0 %6162 }
 0x89e   : > { %6281 = vrot.lane.b32.xlu0 %v6244_v63, %s10573_s28  ;;  %v6290_v34 = vsel %vm940_vm11, %v10535_v53, %v6163_v7 }
 0x8a0   : > { %6192 = vrot.lane.b32.xlu1 %v6147_v2, %s10572_s27  ;;  %v12190_v42 = vld [vmem:[#allocation2 + $0xcc] sm:$0xff]  }
 0x8a1   : > { %v10329_v56 = vld [vmem:[#allocation2 + $0xd4] ss:$0 sps:$4 sm:$0x11]   ;;  %v6149_v62 = vshrl.u32 %v12190_v42, 16  ;;  %v6151_v14 = vshll.u32 %v12190_v42, 16  ;;  %v6248_v48 = vrot.slane %v12190_v42, 1 }
 0x8a2   : > { %6160 = vrot.lane.b32.xlu0 %v5955_v58, %s10572_s27  ;;  %v6254_v31 = vpop.permute.xlu0 %6253  ;;  %v6156_v19 = vshll.u32 %v10329_v56, 16  ;;  %v6249_v25 = vrot.slane %v10329_v56, 1 }
 0x8a3   : > { %v12186_v17 = vsel %vm6323_vm1, %v6290_v34, %v6254_v31  ;;  %v6153_v44 = vrot.slane %v6151_v14, 1 }
 0x8a4   : > { %6283 = vrot.lane.b32.xlu1 %v6247_v26, %s10573_s28  ;;  %9746 = vmatprep.mubr.msk.bf16.mxu1 %vm923_vm6, %v12186_v17  ;;  %v6158_v59 = vrot.slane %v6156_v19, 1  ;;  %v6250_v24 = vsel %vm6196_vm9, %v6248_v48, %v6249_v25 }
 0x8a5   : > { %v6154_v46 = vor.u32 %v6153_v44, %v6149_v62 }
 0x8a7   : > { %v6159_v23 = vsel %vm5943_vm8, %v6154_v46, %v6158_v59 }
 0x8a8   : > { %6251 = vrot.lane.b32.xlu1 %v6199_v4, %s10573_s28  ;;  %6194 = vrot.lane.b32.xlu0 %v6159_v23, %s10572_s27 }
 0x8ac   : > { %6285 = vrot.lane.b32.xlu1 %v6250_v24, %s10573_s28 }
 0x8c6   : > { %v6165_v54 = vpop.permute.xlu1 %6164 }
 0x8c7   : > { %v6292_v39 = vsel %vm940_vm11, %v10536_v35, %v6165_v54 }
 0x8cb   : > { %v6256_v38 = vpop.permute.xlu1 %6255 }
 0x8cc   : > { %v6167_v32 = vpop.permute.xlu0 %6166  ;;  %v12205_v15 = vsel %vm6323_vm1, %v6292_v39, %v6256_v38 }
 0x8cd   : > { %9747 = vmatmul.mubr.msk.bf16.vlgmr.msra.gmra.mrb[28].mxu1 %vm923_vm6, %v12205_v15  ;;  %v6294_v51 = vsel %vm940_vm11, %v11907_v57, %v6167_v32 }
 0x8ce   : > { %9779 = vmatpush3.bf16.msra.mxu1 %v12157_v61 }
 0x8cf   : > { %10093 = vmatprep.subr.msk.bf16.mxu1 %vm944_vm10, %v10326_v21 }
 0x8d0   : > { %v6258_v20 = vpop.permute.xlu0 %6257 }
 0x8d1   : > { %v12220_v43 = vsel %vm6323_vm1, %v6294_v51, %v6258_v20 }
 0x8d2   : > { %9750 = vmatprep.mubr.msk.bf16.mxu1 %vm923_vm6, %v12220_v43  ;;  %9781 = vmatpush3.bf16.msra.mxu1 %v6586_v18 }
 0x8d3   : > { %9814 = vmatprep.subr.bf16.mxu1 %v12215_v28 }
 0x8d6   : > { %v6169_v61 = vpop.permute.xlu1 %6168 }
 0x8d7   : > { %v6296_v6 = vsel %vm940_vm11, %v11934_v13, %v6169_v61 }
 0x8da   : > { %v6260_v12 = vpop.permute.xlu1 %6259 }
 0x8db   : > { %v6171_v63 = vpop.permute.xlu0 %6170  ;;  %v12228_v2 = vsel %vm6323_vm1, %v6296_v6, %v6260_v12 }
 0x8dc   : > { %9751 = vmatmul.mubr.msk.bf16.gmra.mrb[32].mxu1 %vm923_vm6, %v12228_v2  ;;  %v6298_v57 = vsel %vm940_vm11, %v11953_v33, %v6171_v63  ;;  %v10330_v63 = vld [vmem:[%s13229_s12 + $0x20] ss:$0 sps:$4 sm:$0xff]  }
 0x8df   : > { %v6262_v1 = vpop.permute.xlu0 %6261 }
 0x8e0   : > { %v12235_v49 = vsel %vm6323_vm1, %v6298_v57, %v6262_v1  ;;  %v7074_v57 = vld [vmem:[#allocation3 + $0xc] sm:$0x1] }
 0x8e1   : > { %9754 = vmatprep.mubr.msk.bf16.mxu1 %vm923_vm6, %v12235_v49  ;;  %v6173_v55 = vpop.permute.xlu1 %6172  ;;  %v7075_v1 = vsel %vm11654_vm0, 0, %v7074_v57  ;;  %v7170_v57 = vld [vmem:[#allocation3 + $0xbc] sm:$0x1] }
 0x8e2   : > { %v6300_v58 = vsel %vm940_vm11, %v11975_v3, %v6173_v55  ;;  %7076 = vst [vmem:[#allocation3 + $0xc] sm:$0x1] %v7075_v1  ;;  %v7171_v1 = vsel %vm11686_vm3, 0, %v7170_v57 }
 0x8e3   : > { %v6175_v13 = vpop.permute.xlu0 %6174  ;;  %7172 = vst [vmem:[#allocation3 + $0xbc] sm:$0x1] %v7171_v1 }
 0x8e4   : > { %v6302_v52 = vsel %vm940_vm11, %v11981_v30, %v6175_v13 }
 0x8e5   : > { %v6264_v11 = vpop.permute.xlu1 %6263 }
 0x8e6   : > { %v12244_v27 = vsel %vm6323_vm1, %v6300_v58, %v6264_v11  ;;  %v7083_v58 = vld [vmem:[#allocation3 + $0x30] sm:$0x1] }
 0x8e7   : > { %v6266_v33 = vpop.permute.xlu0 %6265  ;;  %9755 = vmatmul.mubr.msk.bf16.gmra.mrb[36].mxu1 %vm923_vm6, %v12244_v27  ;;  %v7084_v11 = vsel %vm11654_vm0, 0, %v7083_v58 }
 0x8e8   : > { %v12249_v40 = vsel %vm6323_vm1, %v6302_v52, %v6266_v33  ;;  %7085 = vst [vmem:[#allocation3 + $0x30] sm:$0x1] %v7084_v11  ;;  %v7080_v52 = vld [vmem:[#allocation3 + $0x24] sm:$0x1]  ;;  %v7137_v33 = vld [vmem:[#allocation3 + $0x38] sm:$0x1] }
 0x8e9   : > { %9758 = vmatprep.mubr.msk.bf16.mxu1 %vm923_vm6, %v12249_v40  ;;  %v6177_v7 = vpop.permute.xlu1 %6176 }
 0x8ea   : > { %v6304_v3 = vsel %vm940_vm11, %v11999_v9, %v6177_v7  ;;  %v7134_v7 = vld [vmem:[#allocation3 + $0x2c] sm:$0x1] }
 0x8ed   : > { %v6179_v8 = vpop.permute.xlu0 %6178 }
 0x8ee   : > { %v6268_v26 = vpop.permute.xlu1 %6267  ;;  %v6306_v4 = vsel %vm940_vm11, %v12015_v22, %v6179_v8  ;;  %v7089_v8 = vld [vmem:[#allocation3 + $0x48] sm:$0x1] }
 0x8ef   : > { %v12256_v30 = vsel %vm6323_vm1, %v6304_v3, %v6268_v26  ;;  %v7135_v3 = vsel %vm11686_vm3, 0, %v7134_v7  ;;  %v7090_v26 = vsel %vm11654_vm0, 0, %v7089_v8 }
 0x8f0   : > { %9759 = vmatmul.mubr.msk.bf16.gmra.mrb[40].mxu1 %vm923_vm6, %v12256_v30  ;;  %7136 = vst [vmem:[#allocation3 + $0x2c] sm:$0x1] %v7135_v3  ;;  %7091 = vst [vmem:[#allocation3 + $0x48] sm:$0x1] %v7090_v26 }
 0x8f1   : > { %v6270_v53 = vpop.permute.xlu0 %6269 }
 0x8f2   : > { %v12263_v34 = vsel %vm6323_vm1, %v6306_v4, %v6270_v53  ;;  %v7143_v4 = vld [vmem:[#allocation3 + $0x50] sm:$0x1] }
 0x8f3   : > { %9762 = vmatprep.mubr.msk.bf16.mxu1 %vm923_vm6, %v12263_v34 }
 0x8f5   : > { %v6181_v31 = vpop.permute.xlu1 %6180 }
 0x8f6   : > { %v6308_v9 = vsel %vm940_vm11, %v12044_v41, %v6181_v31  ;;  %v7140_v31 = vld [vmem:[#allocation3 + $0x44] sm:$0x1] }
 0x8fa   : > { %v6272_v56 = vpop.permute.xlu1 %6271 }
 0x8fb   : > { %v12270_v14 = vsel %vm6323_vm1, %v6308_v9, %v6272_v56  ;;  %v7141_v9 = vsel %vm11686_vm3, 0, %v7140_v31  ;;  %v7095_v56 = vld [vmem:[#allocation3 + $0x60] sm:$0x1] }
 0x8fc   : > { %v6183_v62 = vpop.permute.xlu0 %6182  ;;  %9763 = vmatmul.mubr.msk.bf16.gmra.mrb[44].mxu1 %vm923_vm6, %v12270_v14  ;;  %7142 = vst [vmem:[#allocation3 + $0x44] sm:$0x1] %v7141_v9 }
 0x8fd   : > { %v6310_v22 = vsel %vm940_vm11, %v12072_v10, %v6183_v62  ;;  %v7096_v62 = vsel %vm11654_vm0, 0, %v7095_v56 }
 0x8fe   : > { %7097 = vst [vmem:[#allocation3 + $0x60] sm:$0x1] %v7096_v62 }
 0x900   : > { %v6274_v48 = vpop.permute.xlu0 %6273 }
 0x901   : > { %v6347_v19 = vsel %vm6323_vm1, %v6310_v22, %v6274_v48  ;;  %v7149_v48 = vld [vmem:[#allocation3 + $0x68] sm:$0x1] }
 0x902   : > { %9766 = vmatprep.mubr.msk.bf16.mxu1 %vm923_vm6, %v6347_v19  ;;  %v6185_v25 = vpop.permute.xlu1 %6184 }
 0x903   : > { %v6312_v41 = vsel %vm940_vm11, %v12093_v0, %v6185_v25  ;;  %v7150_v25 = vsel %vm11686_vm3, 0, %v7149_v48 }
 0x904   : > { %v6187_v44 = vpop.permute.xlu0 %6186  ;;  %7151 = vst [vmem:[#allocation3 + $0x68] sm:$0x1] %v7150_v25 }
 0x905   : > { %v6314_v46 = vsel %vm940_vm11, %v12098_v36, %v6187_v44 }
 0x906   : > { %v6276_v59 = vpop.permute.xlu1 %6275 }
 0x907   : > { %v6349_v24 = vsel %vm6323_vm1, %v6312_v41, %v6276_v59  ;;  %v7101_v41 = vld [vmem:[#allocation3 + $0x78] sm:$0x1] }
 0x908   : > { %9767 = vmatmul.mubr.msk.bf16.gmra.mrb[48].mxu1 %vm923_vm6, %v6349_v24  ;;  %v6278_v23 = vpop.permute.xlu0 %6277  ;;  %v7102_v59 = vsel %vm11654_vm0, 0, %v7101_v41 }
 0x909   : > { %v6351_v10 = vsel %vm6323_vm1, %v6314_v46, %v6278_v23  ;;  %7103 = vst [vmem:[#allocation3 + $0x78] sm:$0x1] %v7102_v59  ;;  %v7155_v23 = vld [vmem:[#allocation3 + $0x80] sm:$0x1] }
 0x90a   : > { %v6189_v54 = vpop.permute.xlu1 %6188  ;;  %9770 = vmatprep.mubr.msk.bf16.mxu1 %vm923_vm6, %v6351_v10 }
 0x90b   : > { %v6316_v39 = vsel %vm940_vm11, %v12108_v47, %v6189_v54  ;;  %v7152_v54 = vld [vmem:[#allocation3 + $0x74] sm:$0x1] }
 0x90c   : > { %v6191_v35 = vpop.permute.xlu0 %6190 }
 0x90d   : > { %v6318_v21 = vsel %vm940_vm11, %v12125_v16, %v6191_v35  ;;  %v7153_v35 = vsel %vm11686_vm3, 0, %v7152_v54 }
 0x90e   : > { %v6280_v38 = vpop.permute.xlu1 %6279  ;;  %7154 = vst [vmem:[#allocation3 + $0x74] sm:$0x1] %v7153_v35 }
 0x90f   : > { %v6353_v0 = vsel %vm6323_vm1, %v6316_v39, %v6280_v38  ;;  %v7107_v39 = vld [vmem:[#allocation3 + $0x90] sm:$0x1] }
 0x910   : > { %9771 = vmatmul.mubr.msk.bf16.gmra.mrb[52].mxu1 %vm923_vm6, %v6353_v0  ;;  %v6282_v32 = vpop.permute.xlu0 %6281  ;;  %v7108_v38 = vsel %vm11654_vm0, 0, %v7107_v39 }
 0x911   : > { %v6355_v36 = vsel %vm6323_vm1, %v6318_v21, %v6282_v32  ;;  %7109 = vst [vmem:[#allocation3 + $0x90] sm:$0x1] %v7108_v38  ;;  %v7161_v32 = vld [vmem:[#allocation3 + $0x98] sm:$0x1] }
 0x912   : > { %v6193_v18 = vpop.permute.xlu1 %6192  ;;  %9774 = vmatprep.mubr.msk.bf16.mxu1 %vm923_vm6, %v6355_v36 }
 0x913   : > { %v6320_v20 = vsel %vm940_vm11, %v12141_v45, %v6193_v18  ;;  %v7162_v18 = vsel %vm11686_vm3, 0, %v7161_v32 }
 0x914   : > { %v6161_v51 = vpop.permute.xlu0 %6160  ;;  %7163 = vst [vmem:[#allocation3 + $0x98] sm:$0x1] %v7162_v18 }
 0x915   : > { %v6288_v16 = vsel %vm940_vm11, %v12132_v37, %v6161_v51  ;;  %v6761_v37 = vsel %vm944_vm10, %v10330_v63, 0 }
 0x916   : > { %v6284_v61 = vpop.permute.xlu1 %6283 }
 0x917   : > { %v6357_v47 = vsel %vm6323_vm1, %v6320_v20, %v6284_v61  ;;  %v7113_v20 = vld [vmem:[#allocation3 + $0xa8] sm:$0x1] }
 0x918   : > { %9775 = vmatmul.mubr.msk.bf16.gmra.mrb[56].mxu1 %vm923_vm6, %v6357_v47  ;;  %v7114_v61 = vsel %vm11654_vm0, 0, %v7113_v20 }
 0x919   : > { %7115 = vst [vmem:[#allocation3 + $0xa8] sm:$0x1] %v7114_v61 }
 0x91a   : > { %v6252_v6 = vpop.permute.xlu1 %6251  ;;  %v6195_v45 = vpop.permute.xlu0 %6194 }
 0x91b   : > { %v6325_v12 = vsel %vm6323_vm1, %v6288_v16, %v6252_v6  ;;  %v7167_v16 = vld [vmem:[#allocation3 + $0xb0] sm:$0x1] }
 0x91c   : > { %9782 = vmatprep.mubr.msk.bf16.mxu1 %vm923_vm6, %v6325_v12  ;;  %v7168_v12 = vsel %vm11686_vm3, 0, %v7167_v16 }
 0x91d   : > { %7169 = vst [vmem:[#allocation3 + $0xb0] sm:$0x1] %v7168_v12 }
 0x920   : > { %9783 = vmatmul.mubr.msk.bf16.vlgmr.msra.gmra.mrb[28].mxu1 %vm923_vm6, %v12186_v17  ;;  %v6322_v17 = vsel %vm940_vm11, %v12190_v42, %v6195_v45  ;;  %v7128_v42 = vld [vmem:[#allocation3 + $0x14] sm:$0x1]  ;;  %v7119_v45 = vld [vmem:[#allocation3 + $0xc0] sm:$0x1] }
 0x921   : > { %9815 = vmatpush3.bf16.msra.mxu1 %v12215_v28  ;;  %9786 = vmatprep.mubr.msk.bf16.mxu1 %vm923_vm6, %v12205_v15  ;;  %v7129_v13 = vsel %vm11686_vm3, 0, %v7128_v42 }
 0x922   : > { %10094 = vmatprep.subr.msk.bf16.mxu1 %vm944_vm10, %v10330_v63  ;;  %7130 = vst [vmem:[#allocation3 + $0x14] sm:$0x1] %v7129_v13  ;;  %v7164_v63 = vld [vmem:[#allocation3 + $0xa4] sm:$0x1] }
 0x925   : > { %9817 = vmatpush3.bf16.msra.mxu1 %v6761_v37  ;;  %v7165_v37 = vsel %vm11686_vm3, 0, %v7164_v63 }
 0x926   : > { %7166 = vst [vmem:[#allocation3 + $0xa4] sm:$0x1] %v7165_v37 }
 0x928   : > { %9787 = vmatmul.mubr.msk.bf16.gmra.mrb[32].mxu1 %vm923_vm6, %v12220_v43 }
 0x929   : > { %9790 = vmatprep.mubr.msk.bf16.mxu1 %vm923_vm6, %v12228_v2 }
 0x930   : > { %9791 = vmatmul.mubr.msk.bf16.gmra.mrb[36].mxu1 %vm923_vm6, %v12235_v49 }
 0x931   : > { %9794 = vmatprep.mubr.msk.bf16.mxu1 %vm923_vm6, %v12244_v27 }
 0x938   : > { %9795 = vmatmul.mubr.msk.bf16.gmra.mrb[40].mxu1 %vm923_vm6, %v12249_v40 }
 0x939   : > { %9798 = vmatprep.mubr.msk.bf16.mxu1 %vm923_vm6, %v12256_v30 }
 0x940   : > { %9799 = vmatmul.mubr.msk.bf16.gmra.mrb[44].mxu1 %vm923_vm6, %v12263_v34 }
 0x941   : > { %9802 = vmatprep.mubr.msk.bf16.mxu1 %vm923_vm6, %v12270_v14 }
 0x948   : > { %9803 = vmatmul.mubr.msk.bf16.gmra.mrb[48].mxu1 %vm923_vm6, %v6347_v19 }
 0x949   : > { %9806 = vmatprep.mubr.msk.bf16.mxu1 %vm923_vm6, %v6349_v24 }
 0x950   : > { %9807 = vmatmul.mubr.msk.bf16.gmra.mrb[52].mxu1 %vm923_vm6, %v6351_v10 }
 0x951   : > { %9810 = vmatprep.mubr.msk.bf16.mxu1 %vm923_vm6, %v6353_v0 }
 0x958   : > { %9811 = vmatmul.mubr.msk.bf16.gmra.mrb[56].mxu1 %vm923_vm6, %v6355_v36 }
 0x959   : > { %9818 = vmatprep.mubr.msk.bf16.mxu1 %vm923_vm6, %v12205_v15  ;;  %v6286_v15 = vpop.permute.xlu1 %6285 }
 0x95a   : > { %v6359_v28 = vsel %vm6323_vm1, %v6322_v17, %v6286_v15  ;;  %v7120_v17 = vsel %vm11654_vm0, 0, %v7119_v45  ;;  %v7116_v15 = vld [vmem:[#allocation3 + $0xb4] sm:$0x1] }
 0x95b   : > { %7121 = vst [vmem:[#allocation3 + $0xc0] sm:$0x1] %v7120_v17 }
 0x960   : > { %9819 = vmatmul.mubr.msk.bf16.vlgmr.msra.gmra.mrb[28].mxu1 %vm923_vm6, %v12220_v43  ;;  %v7077_v43 = vld [vmem:[#allocation3 + $0x18] sm:$0x1] }
 0x961   : > { %9822 = vmatprep.mubr.msk.bf16.mxu1 %vm923_vm6, %v12228_v2  ;;  %v7078_v2 = vsel %vm11654_vm0, 0, %v7077_v43  ;;  %v7117_v43 = vsel %vm11654_vm0, 0, %v7116_v15  ;;  %v7600_v15 = vld [vmem:[#allocation3 + $0x14] sm:$0x1] }
 0x962   : > { %7079 = vst [vmem:[#allocation3 + $0x18] sm:$0x1] %v7078_v2  ;;  %7118 = vst [vmem:[#allocation3 + $0xb4] sm:$0x1] %v7117_v43 }
 0x968   : > { %9823 = vmatmul.mubr.msk.bf16.gmra.mrb[32].mxu1 %vm923_vm6, %v12235_v49  ;;  %v7131_v49 = vld [vmem:[#allocation3 + $0x20] sm:$0x1] }
 0x969   : > { %9826 = vmatprep.mubr.msk.bf16.mxu1 %vm923_vm6, %v12244_v27  ;;  %v7132_v55 = vsel %vm11686_vm3, 0, %v7131_v49  ;;  %v7081_v27 = vsel %vm11654_vm0, 0, %v7080_v52  ;;  %v12428_v49 = vld [vmem:[%s13230_s13] ss:$0 sm:$0xff]  ;;  %v7603_v39 = vld [vmem:[#allocation3 + $0x18] sm:$0xf] }
 0x96a   : > { %7133 = vst [vmem:[#allocation3 + $0x20] sm:$0x1] %v7132_v55  ;;  %7082 = vst [vmem:[#allocation3 + $0x24] sm:$0x1] %v7081_v27  ;;  %v12433_v55 = vld [vmem:[%s13231_s14] ss:$0 sm:$0xff] }
 0x970   : > { %9827 = vmatmul.mubr.msk.bf16.gmra.mrb[36].mxu1 %vm923_vm6, %v12249_v40  ;;  %v7138_v40 = vsel %vm11686_vm3, 0, %v7137_v33 }
 0x971   : > { %9830 = vmatprep.mubr.msk.bf16.mxu1 %vm923_vm6, %v12256_v30  ;;  %7139 = vst [vmem:[#allocation3 + $0x38] sm:$0x1] %v7138_v40  ;;  %v7086_v30 = vld [vmem:[#allocation3 + $0x3c] sm:$0x1] }
 0x972   : > { %v7087_v53 = vsel %vm11654_vm0, 0, %v7086_v30 }
 0x973   : > { %7088 = vst [vmem:[#allocation3 + $0x3c] sm:$0x1] %v7087_v53 }
 0x978   : > { %9831 = vmatmul.mubr.msk.bf16.gmra.mrb[40].mxu1 %vm923_vm6, %v12263_v34  ;;  %v7144_v34 = vsel %vm11686_vm3, 0, %v7143_v4 }
 0x979   : > { %9834 = vmatprep.mubr.msk.bf16.mxu1 %vm923_vm6, %v12270_v14  ;;  %7145 = vst [vmem:[#allocation3 + $0x50] sm:$0x1] %v7144_v34  ;;  %v7092_v14 = vld [vmem:[#allocation3 + $0x54] sm:$0x1] }
 0x97a   : > { %v7093_v22 = vsel %vm11654_vm0, 0, %v7092_v14 }
 0x97b   : > { %7094 = vst [vmem:[#allocation3 + $0x54] sm:$0x1] %v7093_v22 }
 0x980   : > { %9835 = vmatmul.mubr.msk.bf16.gmra.mrb[44].mxu1 %vm923_vm6, %v6347_v19  ;;  %v7146_v19 = vld [vmem:[#allocation3 + $0x5c] sm:$0x1] }
 0x981   : > { %9838 = vmatprep.mubr.msk.bf16.mxu1 %vm923_vm6, %v6349_v24  ;;  %v7147_v44 = vsel %vm11686_vm3, 0, %v7146_v19  ;;  %v7098_v24 = vld [vmem:[#allocation3 + $0x6c] sm:$0x1] }
 0x982   : > { %7148 = vst [vmem:[#allocation3 + $0x5c] sm:$0x1] %v7147_v44  ;;  %v7099_v46 = vsel %vm11654_vm0, 0, %v7098_v24 }
 0x983   : > { %7100 = vst [vmem:[#allocation3 + $0x6c] sm:$0x1] %v7099_v46 }
 0x988   : > { %9839 = vmatmul.mubr.msk.bf16.gmra.mrb[48].mxu1 %vm923_vm6, %v6351_v10  ;;  %v7156_v10 = vsel %vm11686_vm3, 0, %v7155_v23 }
 0x989   : > { %9842 = vmatprep.mubr.msk.bf16.mxu1 %vm923_vm6, %v6353_v0  ;;  %7157 = vst [vmem:[#allocation3 + $0x80] sm:$0x1] %v7156_v10  ;;  %v7104_v0 = vld [vmem:[#allocation3 + $0x84] sm:$0x1] }
 0x98a   : > { %v7105_v21 = vsel %vm11654_vm0, 0, %v7104_v0 }
 0x98b   : > { %7106 = vst [vmem:[#allocation3 + $0x84] sm:$0x1] %v7105_v21 }
 0x990   : > { %9843 = vmatmul.mubr.msk.bf16.gmra.mrb[52].mxu1 %vm923_vm6, %v6355_v36  ;;  %v7158_v36 = vld [vmem:[#allocation3 + $0x8c] sm:$0x1] }
 0x991   : > { %9846 = vmatprep.mubr.msk.bf16.mxu1 %vm923_vm6, %v6357_v47  ;;  %v7159_v51 = vsel %vm11686_vm3, 0, %v7158_v36  ;;  %v7110_v47 = vld [vmem:[#allocation3 + $0x9c] sm:$0x1] }
 0x992   : > { %7160 = vst [vmem:[#allocation3 + $0x8c] sm:$0x1] %v7159_v51  ;;  %v7111_v6 = vsel %vm11654_vm0, 0, %v7110_v47  ;;  %v7596_v51 = vld [vmem:[#allocation3 + $0xc] sm:$0xf] }
 0x993   : > { %7112 = vst [vmem:[#allocation3 + $0x9c] sm:$0x1] %v7111_v6  ;;  %v7607_v6 = vld [vmem:[#allocation3 + $0x20] sm:$0x1] }
 0x998   : > { %9847 = vmatmul.mubr.msk.bf16.gmra.mrb[56].mxu1 %vm923_vm6, %v6359_v28  ;;  %v7173_v28 = vld [vmem:[#allocation3 + $0xc8] sm:$0x1] }
 0x999   : > { %v7174_v2 = vsel %vm11686_vm3, 0, %v7173_v28 }
 0x99a   : > { %7175 = vst [vmem:[#allocation3 + $0xc8] sm:$0x1] %v7174_v2 }
 0xa33   : > { %v9820_v42 = vpop.f32.mrb[28].mxu1 }
 0xa34   : > { %v6964_v13 = vmul.f32 %v9820_v42, %v12428_v49  ;;  %v6797_v58 = vpop.f32.mrb[29].mxu1 }
 0xa35   : > { %v6962_v11 = vmul.f32 %v12428_v49, %v6797_v58  ;;  %v9821_v52 = vpop.f32.mrb[30].mxu1 }
 0xa36   : > { %v7002_v27 = vadd.f32 %v12433_v55, %v6964_v13  ;;  %v6965_v33 = vmul.f32 %v9821_v52, %v12428_v49  ;;  %v6800_v40 = vpop.f32.mrb[31].mxu1 }
 0xa37   : > { %v7000_v7 = vadd.f32 %v12433_v55, %v6962_v11  ;;  %v6963_v3 = vmul.f32 %v12428_v49, %v6800_v40 }
 0xa38   : > { %v7034_v8 = vmax.f32 %v7002_v27, 0.0  ;;  %v7003_v26 = vadd.f32 %v12433_v55, %v6965_v33 }
 0xa39   : > { %v7032_v30 = vmax.f32 %v7000_v7, 0.0  ;;  %v7001_v4 = vadd.f32 %v12433_v55, %v6963_v3 }
 0xa3a   : > { %v9509_v53 = vpack.c.bf16 %v7034_v8, %v7034_v8  ;;  %v7035_v34 = vmax.f32 %v7003_v26, 0.0 }
 0xa3b   : > { %v9507_v31 = vpack.c.bf16 %v7032_v30, %v7032_v30  ;;  %v7033_v9 = vmax.f32 %v7001_v4, 0.0  ;;  %v9824_v56 = vpop.f32.mrb[32].mxu1 }
 0xa3c   : > { %v7293_v62 = vshrl.u32 %v9509_v53, 16  ;;  %v7296_v14 = vshll.u32 %v9509_v53, 16  ;;  %v9510_v22 = vpack.c.bf16 %v7035_v34, %v7035_v34  ;;  %v6968_v48 = vmul.f32 %v9824_v56, %v12428_v49  ;;  %v6813_v19 = vpop.f32.mrb[33].mxu1 }
 0xa3d   : > { %v7276_v25 = vshrl.u32 %v9507_v31, 16  ;;  %v7279_v44 = vshll.u32 %v9507_v31, 16  ;;  %v9508_v41 = vpack.c.bf16 %v7033_v9, %v7033_v9  ;;  %v6966_v59 = vmul.f32 %v12428_v49, %v6813_v19  ;;  %v9825_v24 = vpop.f32.mrb[34].mxu1  ;;  %v7617_v31 = vld [vmem:[#allocation3 + $0x30] sm:$0xf] }
 0xa3e   : > { %v7295_v46 = vrot.slane %v7293_v62, 7  ;;  %v7301_v23 = vshrl.u32 %v9510_v22, 16  ;;  %v7304_v10 = vshll.u32 %v9510_v22, 16  ;;  %v7006_v54 = vadd.f32 %v12433_v55, %v6968_v48  ;;  %v6816_v35 = vpop.f32.mrb[35].mxu1  ;;  %v7610_v19 = vld [vmem:[#allocation3 + $0x24] sm:$0xf] }
 0xa3f   : > { %v7278_v38 = vrot.slane %v7276_v25, 7  ;;  %v7284_v0 = vshrl.u32 %v9508_v41, 16  ;;  %v7287_v21 = vshll.u32 %v9508_v41, 16  ;;  %v7004_v32 = vadd.f32 %v12433_v55, %v6966_v59  ;;  %v10365_v41 = vld [vmem:[%s13232_s15 + $0xc] sm:$0xff]   ;;  %v10366_v59 = vld [vmem:[%s13232_s15 + $0x14] ss:$0 sps:$4 sm:$0xff]  }
 0xa40   : > { %v7298_v36 = vor.u32 %v7296_v14, %v7295_v46  ;;  %v7299_v18 = vrot.slane %v7295_v46, 4  ;;  %v7303_v20 = vrot.slane %v7301_v23, 7  ;;  %v7038_v61 = vmax.f32 %v7006_v54, 0.0  ;;  %9850 = vmatprep.subr.bf16.mxu0 %v10365_v41 }
 0xa41   : > { %v7281_v47 = vor.u32 %v7279_v44, %v7278_v38  ;;  %v7282_v16 = vrot.slane %v7278_v38, 4  ;;  %v7286_v12 = vrot.slane %v7284_v0, 7  ;;  %v7036_v63 = vmax.f32 %v7004_v32, 0.0  ;;  %9851 = vmatpush3.bf16.msra.mxu0 %v10365_v41 }
 0xa42   : > { %v7604_v37 = vsel %vm11795_vm7, %v7298_v36, %v7603_v39  ;;  %v7306_v45 = vor.u32 %v7304_v10, %v7303_v20  ;;  %v7308_v17 = vrot.slane %v7303_v20, 4  ;;  %v9513_v28 = vpack.c.bf16 %v7038_v61, %v7038_v61  ;;  %10095 = vmatprep.subr.msk.bf16.mxu0 %vm944_vm10, %v10366_v59 }
 0xa43   : > { %7605 = vst [vmem:[#allocation3 + $0x18] sm:$0xf] %v7604_v37  ;;  %v7597_v43 = vsel %vm11795_vm7, %v7281_v47, %v7596_v51  ;;  %v7289_v2 = vor.u32 %v7287_v21, %v7286_v12  ;;  %v7291_v57 = vrot.slane %v7286_v12, 4  ;;  %v9511_v1 = vpack.c.bf16 %v7036_v63, %v7036_v63  ;;  %v9828_v42 = vpop.f32.mrb[36].mxu1 }
 0xa44   : > { %7598 = vst [vmem:[#allocation3 + $0xc] sm:$0xf] %v7597_v43  ;;  %v7307_v13 = vsel %vm11789_vm5, %v7299_v18, %v7306_v45  ;;  %v7608_v58 = vsel %vm11654_vm0, %v7308_v17, %v7607_v6  ;;  %v7327_v11 = vshrl.u32 %v9513_v28, 16  ;;  %v7330_v52 = vshll.u32 %v9513_v28, 16  ;;  %v6829_v27 = vpop.f32.mrb[37].mxu1 }
 0xa45   : > { %7606 = vst.msk [vmem:[#allocation3 + $0x1c] sm:$0xf] %vm4928_vm13, %v7307_v13  ;;  %7609 = vst [vmem:[#allocation3 + $0x20] sm:$0x1] %v7608_v58  ;;  %v7290_v33 = vsel %vm11789_vm5, %v7282_v16, %v7289_v2  ;;  %v7601_v40 = vsel %vm11654_vm0, %v7291_v57, %v7600_v15  ;;  %v7310_v7 = vshrl.u32 %v9511_v1, 16  ;;  %v7313_v3 = vshll.u32 %v9511_v1, 16 }
 0xa46   : > { %v9829_v8 = vpop.f32.mrb[38].mxu1  ;;  %7599 = vst.msk [vmem:[#allocation3 + $0x10] sm:$0xf] %vm4928_vm13, %v7290_v33  ;;  %7602 = vst [vmem:[#allocation3 + $0x14] sm:$0x1] %v7601_v40  ;;  %v12461_v26 = vrot.slane %v7327_v11, 7  ;;  %v6969_v30 = vmul.f32 %v9825_v24, %v12428_v49  ;;  %v6967_v4 = vmul.f32 %v12428_v49, %v6816_v35  ;;  %v6972_v53 = vmul.f32 %v9828_v42, %v12428_v49 }
 0xa47   : > { %v6832_v34 = vpop.f32.mrb[39].mxu1  ;;  %v12466_v9 = vrot.slane %v7310_v7, 7  ;;  %v6970_v56 = vmul.f32 %v12428_v49, %v6829_v27  ;;  %v6973_v62 = vmul.f32 %v9829_v8, %v12428_v49  ;;  %v7621_v11 = vld [vmem:[#allocation3 + $0x38] sm:$0x1]  ;;  %v7614_v40 = vld [vmem:[#allocation3 + $0x2c] sm:$0x1] }
 0xa48   : > { %v6971_v14 = vmul.f32 %v12428_v49, %v6832_v34  ;;  %v7332_v22 = vor.u32 %v7330_v52, %v12461_v26  ;;  %v7333_v48 = vrot.slane %v12461_v26, 4  ;;  %v7007_v25 = vadd.f32 %v12433_v55, %v6969_v30 }
 0xa49   : > { %v7005_v44 = vadd.f32 %v12433_v55, %v6967_v4  ;;  %v7315_v24 = vor.u32 %v7313_v3, %v12466_v9  ;;  %v7316_v46 = vrot.slane %v12466_v9, 4  ;;  %v7010_v23 = vadd.f32 %v12433_v55, %v6972_v53  ;;  %v7631_v3 = vld [vmem:[#allocation3 + $0x48] sm:$0xf] }
 0xa4a   : > { %v7008_v10 = vadd.f32 %v12433_v55, %v6970_v56  ;;  %v7618_v54 = vsel %vm11795_vm7, %v7332_v22, %v7617_v31  ;;  %v7039_v35 = vmax.f32 %v7007_v25, 0.0  ;;  %v7011_v38 = vadd.f32 %v12433_v55, %v6973_v62  ;;  %v7624_v56 = vld [vmem:[#allocation3 + $0x3c] sm:$0xf] }
 0xa4b   : > { %v7037_v39 = vmax.f32 %v7005_v44, 0.0  ;;  %7619 = vst [vmem:[#allocation3 + $0x30] sm:$0xf] %v7618_v54  ;;  %v7611_v0 = vsel %vm11795_vm7, %v7315_v24, %v7610_v19  ;;  %v7042_v21 = vmax.f32 %v7010_v23, 0.0  ;;  %v7009_v36 = vadd.f32 %v12433_v55, %v6971_v14  ;;  %v9832_v18 = vpop.f32.mrb[40].mxu1 }
 0xa4c   : > { %v7040_v32 = vmax.f32 %v7008_v10, 0.0  ;;  %7612 = vst [vmem:[#allocation3 + $0x24] sm:$0xf] %v7611_v0  ;;  %v9514_v51 = vpack.c.bf16 %v7039_v35, %v7039_v35  ;;  %v7043_v61 = vmax.f32 %v7011_v38, 0.0  ;;  %v6976_v47 = vmul.f32 %v9832_v18, %v12428_v49  ;;  %v6845_v16 = vpop.f32.mrb[41].mxu1 }
 0xa4d   : > { %v9512_v20 = vpack.c.bf16 %v7037_v39, %v7037_v39  ;;  %v9517_v6 = vpack.c.bf16 %v7042_v21, %v7042_v21  ;;  %v7041_v63 = vmax.f32 %v7009_v36, 0.0  ;;  %v6974_v37 = vmul.f32 %v12428_v49, %v6845_v16  ;;  %v9833_v45 = vpop.f32.mrb[42].mxu1 }
 0xa4e   : > { %v9515_v12 = vpack.c.bf16 %v7040_v32, %v7040_v32  ;;  %v7335_v17 = vshrl.u32 %v9514_v51, 16  ;;  %v7338_v15 = vshll.u32 %v9514_v51, 16  ;;  %v6848_v2 = vpop.f32.mrb[43].mxu1  ;;  %v9518_v27 = vpack.c.bf16 %v7043_v61, %v7043_v61 }
 0xa4f   : > { %v7318_v28 = vshrl.u32 %v9512_v20, 16  ;;  %v7321_v43 = vshll.u32 %v9512_v20, 16  ;;  %v7361_v57 = vshrl.u32 %v9517_v6, 16  ;;  %v7364_v1 = vshll.u32 %v9517_v6, 16  ;;  %v7635_v20 = vld [vmem:[#allocation3 + $0x50] sm:$0x1] }
 0xa50   : > { %v7344_v42 = vshrl.u32 %v9515_v12, 16  ;;  %v7347_v13 = vshll.u32 %v9515_v12, 16  ;;  %v7337_v58 = vrot.slane %v7335_v17, 7  ;;  %v9516_v33 = vpack.c.bf16 %v7041_v63, %v7041_v63 }
 0xa51   : > { %v7320_v52 = vrot.slane %v7318_v28, 7  ;;  %v7363_v7 = vrot.slane %v7361_v57, 7  ;;  %v7014_v30 = vadd.f32 %v12433_v55, %v6976_v47  ;;  %v7012_v4 = vadd.f32 %v12433_v55, %v6974_v37  ;;  %v7628_v37 = vld [vmem:[#allocation3 + $0x44] sm:$0x1] }
 0xa52   : > { %v7346_v8 = vrot.slane %v7344_v42, 7  ;;  %v7340_v53 = vor.u32 %v7338_v15, %v7337_v58  ;;  %v7342_v34 = vrot.slane %v7337_v58, 4  ;;  %v7369_v10 = vshrl.u32 %v9518_v27, 16  ;;  %v7645_v42 = vld [vmem:[#allocation3 + $0x60] sm:$0xf] }
 0xa53   : > { %v7323_v31 = vor.u32 %v7321_v43, %v7320_v52  ;;  %v7325_v9 = vrot.slane %v7320_v52, 4  ;;  %v7366_v62 = vor.u32 %v7364_v1, %v7363_v7  ;;  %v7367_v14 = vrot.slane %v7363_v7, 4  ;;  %v9836_v25 = vpop.f32.mrb[44].mxu1 }
 0xa54   : > { %v7349_v22 = vor.u32 %v7347_v13, %v7346_v8  ;;  %v7350_v19 = vrot.slane %v7346_v8, 4  ;;  %v7341_v44 = vsel %vm11789_vm5, %v7333_v48, %v7340_v53  ;;  %v7622_v41 = vsel %vm11654_vm0, %v7342_v34, %v7621_v11  ;;  %v6861_v23 = vpop.f32.mrb[45].mxu1 }
 0xa55   : > { %v7324_v59 = vsel %vm11789_vm5, %v7316_v46, %v7323_v31  ;;  %v7615_v24 = vsel %vm11654_vm0, %v7325_v9, %v7614_v40  ;;  %7620 = vst.msk [vmem:[#allocation3 + $0x34] sm:$0xf] %vm4928_vm13, %v7341_v44  ;;  %7623 = vst [vmem:[#allocation3 + $0x38] sm:$0x1] %v7622_v41  ;;  %v7632_v26 = vsel %vm11795_vm7, %v7366_v62, %v7631_v3  ;;  %v7372_v54 = vshll.u32 %v9518_v27, 16  ;;  %v9837_v35 = vpop.f32.mrb[46].mxu1 }
 0xa56   : > { %7613 = vst.msk [vmem:[#allocation3 + $0x28] sm:$0xf] %vm4928_vm13, %v7324_v59  ;;  %7616 = vst [vmem:[#allocation3 + $0x2c] sm:$0x1] %v7615_v24  ;;  %v7625_v48 = vsel %vm11795_vm7, %v7349_v22, %v7624_v56  ;;  %v7352_v46 = vshrl.u32 %v9516_v33, 16  ;;  %v7355_v39 = vshll.u32 %v9516_v33, 16  ;;  %v6977_v36 = vmul.f32 %v9833_v45, %v12428_v49 }
 0xa57   : > { %7633 = vst [vmem:[#allocation3 + $0x48] sm:$0xf] %v7632_v26  ;;  %7626 = vst [vmem:[#allocation3 + $0x3c] sm:$0xf] %v7625_v48  ;;  %v7046_v38 = vmax.f32 %v7014_v30, 0.0  ;;  %v7044_v0 = vmax.f32 %v7012_v4, 0.0  ;;  %v6975_v18 = vmul.f32 %v12428_v49, %v6848_v2  ;;  %v6980_v51 = vmul.f32 %v9836_v25, %v12428_v49 }
 0xa58   : > { %v12512_v21 = vpop.f32.mrb[47].mxu1  ;;  %v7371_v32 = vrot.slane %v7369_v10, 7  ;;  %v7354_v61 = vrot.slane %v7352_v46, 7  ;;  %v6978_v6 = vmul.f32 %v12428_v49, %v6861_v23  ;;  %v7015_v17 = vadd.f32 %v12433_v55, %v6977_v36  ;;  %v7638_v9 = vld [vmem:[#allocation3 + $0x54] sm:$0xf] }
 0xa59   : > { %v9521_v47 = vpack.c.bf16 %v7046_v38, %v7046_v38  ;;  %v9519_v16 = vpack.c.bf16 %v7044_v0, %v7044_v0  ;;  %v7013_v15 = vadd.f32 %v12433_v55, %v6975_v18  ;;  %v7018_v30 = vadd.f32 %v12433_v55, %v6980_v51  ;;  %v7642_v38 = vld [vmem:[#allocation3 + $0x5c] sm:$0x1] }
 0xa5a   : > { %v7374_v12 = vor.u32 %v7372_v54, %v7371_v32  ;;  %v7376_v63 = vrot.slane %v7371_v32, 4  ;;  %v7357_v28 = vor.u32 %v7355_v39, %v7354_v61  ;;  %v7359_v43 = vrot.slane %v7354_v61, 4  ;;  %v7649_v39 = vld [vmem:[#allocation3 + $0x68] sm:$0x1] }
 0xa5b   : > { %v7395_v45 = vshrl.u32 %v9521_v47, 16  ;;  %v7398_v57 = vshll.u32 %v9521_v47, 16  ;;  %v7378_v13 = vshrl.u32 %v9519_v16, 16  ;;  %v7381_v58 = vshll.u32 %v9519_v16, 16  ;;  %v12524_v11 = vpop.f32.mrb[48].mxu1  ;;  %v12552_v16 = vld [vmem:[#allocation3 + $0xc] sm:$0xff]  }
 0xa5c   : > { %v7375_v2 = vsel %vm11789_vm5, %v7367_v14, %v7374_v12  ;;  %v7636_v1 = vsel %vm11654_vm0, %v7376_v63, %v7635_v20  ;;  %v7358_v52 = vsel %vm11789_vm5, %v7350_v19, %v7357_v28  ;;  %v7629_v27 = vsel %vm11654_vm0, %v7359_v43, %v7628_v37  ;;  %v12531_v7 = vpop.f32.mrb[49].mxu1  ;;  %v12539_v14 = vld [vmem:[#allocation3 + $0x18] sm:$0xff]   ;;  %v12549_v61 = vld [vmem:[#allocation3 + $0x20] ss:$0 sps:$4 sm:$0x11]  }
 0xa5d   : > { %7634 = vst.msk [vmem:[#allocation3 + $0x4c] sm:$0xf] %vm4928_vm13, %v7375_v2  ;;  %7637 = vst [vmem:[#allocation3 + $0x50] sm:$0x1] %v7636_v1  ;;  %v7397_v33 = vrot.slane %v7395_v45, 7  ;;  %v7047_v40 = vmax.f32 %v7015_v17, 0.0  ;;  %v7016_v4 = vadd.f32 %v12433_v55, %v6978_v6  ;;  %v6981_v62 = vmul.f32 %v9837_v35, %v12428_v49 }
 0xa5e   : > { %7627 = vst.msk [vmem:[#allocation3 + $0x40] sm:$0xf] %vm4928_vm13, %v7358_v52  ;;  %7630 = vst [vmem:[#allocation3 + $0x44] sm:$0x1] %v7629_v27  ;;  %v7380_v3 = vrot.slane %v7378_v13, 7  ;;  %v7045_v8 = vmax.f32 %v7013_v15, 0.0 }
 0xa5f   : > { %v12536_v53 = vpop.f32.mrb[50].mxu1  ;;  %v7400_v34 = vor.u32 %v7398_v57, %v7397_v33  ;;  %v7401_v31 = vrot.slane %v7397_v33, 4  ;;  %v9522_v56 = vpack.c.bf16 %v7047_v40, %v7047_v40  ;;  %v7050_v41 = vmax.f32 %v7018_v30, 0.0  ;;  %v7659_v37 = vld [vmem:[#allocation3 + $0x78] sm:$0xf] }
 0xa60   : > { %v12541_v22 = vpop.f32.mrb[51].mxu1  ;;  %v7383_v19 = vor.u32 %v7381_v58, %v7380_v3  ;;  %v7384_v25 = vrot.slane %v7380_v3, 4  ;;  %v9520_v44 = vpack.c.bf16 %v7045_v8, %v7045_v8  ;;  %v7048_v26 = vmax.f32 %v7016_v4, 0.0  ;;  %v7652_v2 = vld [vmem:[#allocation3 + $0x6c] sm:$0xf] }
 0xa61   : > { %v7646_v59 = vsel %vm11795_vm7, %v7400_v34, %v7645_v42  ;;  %v7403_v24 = vshrl.u32 %v9522_v56, 16  ;;  %v7406_v23 = vshll.u32 %v9522_v56, 16  ;;  %v9525_v35 = vpack.c.bf16 %v7050_v41, %v7050_v41  ;;  %v10334_v33 = vld [vmem:[#allocation3 + $0x14] ss:$0 sps:$4 sm:$0x11]  }
 0xa62   : > { %7647 = vst [vmem:[#allocation3 + $0x60] sm:$0xf] %v7646_v59  ;;  %v7639_v48 = vsel %vm11795_vm7, %v7383_v19, %v7638_v9  ;;  %v7386_v10 = vshrl.u32 %v9520_v44, 16  ;;  %v7389_v54 = vshll.u32 %v9520_v44, 16  ;;  %v9523_v0 = vpack.c.bf16 %v7048_v26, %v7048_v26 }
 0xa63   : > { %7640 = vst [vmem:[#allocation3 + $0x54] sm:$0xf] %v7639_v48  ;;  %v7405_v46 = vrot.slane %v7403_v24, 7  ;;  %v7019_v32 = vadd.f32 %v12433_v55, %v6981_v62  ;;  %v7933_v36 = vshrl.u32 %v12539_v14, 16  ;;  %v7429_v51 = vshrl.u32 %v9525_v35, 16  ;;  %v12554_v6 = vpop.f32.mrb[52].mxu1 }
 0xa64   : > { %v7388_v18 = vrot.slane %v7386_v10, 7  ;;  %v7432_v20 = vshll.u32 %v9525_v35, 16  ;;  %v7935_v47 = vshll.u32 %v12539_v14, 16  ;;  %v7412_v17 = vshrl.u32 %v9523_v0, 16  ;;  %v12556_v28 = vpop.f32.mrb[53].mxu1 }
 0xa65   : > { %v7408_v12 = vor.u32 %v7406_v23, %v7405_v46  ;;  %v7410_v63 = vrot.slane %v7405_v46, 4  ;;  %v7415_v15 = vshll.u32 %v9523_v0, 16  ;;  %v7431_v57 = vrot.slane %v7429_v51, 7  ;;  %v12558_v42 = vpop.f32.mrb[54].mxu1 }
 0xa66   : > { %v7391_v43 = vor.u32 %v7389_v54, %v7388_v18  ;;  %v7393_v45 = vrot.slane %v7388_v18, 4  ;;  %v7051_v1 = vmax.f32 %v7019_v32, 0.0  ;;  %v12564_v52 = vrot.slane %v7412_v17, 7  ;;  %v12566_v40 = vpop.f32.mrb[55].mxu1 }
 0xa67   : > { %v7409_v13 = vsel %vm11789_vm5, %v7401_v31, %v7408_v12  ;;  %v7650_v58 = vsel %vm11654_vm0, %v7410_v63, %v7649_v39  ;;  %v7937_v27 = vrot.slane %v7935_v47, 1  ;;  %v7434_v30 = vor.u32 %v7432_v20, %v7431_v57  ;;  %v12591_v0 = vld [vmem:[#allocation3 + $0x38] ss:$0 sps:$4 sm:$0x11]  }
 0xa68   : > { %7648 = vst.msk [vmem:[#allocation3 + $0x64] sm:$0xf] %vm4928_vm13, %v7409_v13  ;;  %7651 = vst [vmem:[#allocation3 + $0x68] sm:$0x1] %v7650_v58  ;;  %v7392_v3 = vsel %vm11789_vm5, %v7384_v25, %v7391_v43  ;;  %v7643_v8 = vsel %vm11654_vm0, %v7393_v45, %v7642_v38  ;;  %v7435_v4 = vrot.slane %v7431_v57, 4  ;;  %v7417_v34 = vor.u32 %v7415_v15, %v12564_v52 }
 0xa69   : > { %7641 = vst.msk [vmem:[#allocation3 + $0x58] sm:$0xf] %vm4928_vm13, %v7392_v3  ;;  %7644 = vst [vmem:[#allocation3 + $0x5c] sm:$0x1] %v7643_v8  ;;  %v7418_v31 = vrot.slane %v12564_v52, 4  ;;  %v9526_v9 = vpack.c.bf16 %v7051_v1, %v7051_v1  ;;  %v7938_v56 = vor.u32 %v7937_v27, %v7933_v36  ;;  %v7660_v62 = vsel %vm11795_vm7, %v7434_v30, %v7659_v37  ;;  %v12616_v27 = vld [vmem:[#allocation3 + $0x24] sm:$0xff]  }
 0xa6a   : > { %v7940_v19 = vshll.u32 %v12549_v61, 16  ;;  %v6979_v25 = vmul.f32 %v12428_v49, %v12512_v21  ;;  %v7921_v44 = vshrl.u32 %v12552_v16, 16  ;;  %7661 = vst [vmem:[#allocation3 + $0x78] sm:$0xf] %v7660_v62  ;;  %v7653_v41 = vsel %vm11795_vm7, %v7417_v34, %v7652_v2  ;;  %v7663_v36 = vld [vmem:[#allocation3 + $0x80] sm:$0x1] }
 0xa6b   : > { %v7437_v59 = vshrl.u32 %v9526_v9, 16  ;;  %v7440_v24 = vshll.u32 %v9526_v9, 16  ;;  %v7923_v23 = vshll.u32 %v12552_v16, 16  ;;  %7654 = vst [vmem:[#allocation3 + $0x6c] sm:$0xf] %v7653_v41  ;;  %v7928_v10 = vshll.u32 %v10334_v33, 16 }
 0xa6c   : > { %v7942_v26 = vrot.slane %v7940_v19, 1  ;;  %v7017_v48 = vadd.f32 %v12433_v55, %v6979_v25  ;;  %v8166_v54 = vrot.slane %v12539_v14, 1  ;;  %v12587_v35 = vpop.f32.mrb[56].mxu1  ;;  %v8167_v39 = vrot.slane %v12549_v61, 1  ;;  %v7656_v19 = vld [vmem:[#allocation3 + $0x74] sm:$0x1] }
 0xa6d   : > { %v7439_v21 = vrot.slane %v7437_v59, 7  ;;  %v7925_v46 = vrot.slane %v7923_v23, 1  ;;  %v8163_v38 = vrot.slane %v12552_v16, 1  ;;  %v12593_v32 = vpop.f32.mrb[57].mxu1  ;;  %v7930_v20 = vrot.slane %v7928_v10, 1  ;;  %v12600_v16 = vld [vmem:[#allocation3 + $0x30] sm:$0xff]  }
 0xa6e   : > { %v7943_v18 = vsel %vm5943_vm8, %v7938_v56, %v7942_v26  ;;  %v7049_v51 = vmax.f32 %v7017_v48, 0.0  ;;  %v8164_v47 = vrot.slane %v10334_v33, 1  ;;  %v12596_v12 = vpop.f32.mrb[58].mxu1  ;;  %v8168_v61 = vsel %vm6196_vm9, %v8166_v54, %v8167_v39 }
 0xa6f   : > { %v7442_v14 = vor.u32 %v7440_v24, %v7439_v21  ;;  %v7444_v63 = vrot.slane %v7439_v21, 4  ;;  %8128 = vrot.lane.b32.xlu1 %v7943_v18, %s10572_s27  ;;  %v7926_v37 = vor.u32 %v7925_v46, %v7921_v44  ;;  %v6984_v43 = vmul.f32 %v12524_v11, %v12428_v49  ;;  %v12607_v57 = vpop.f32.mrb[59].mxu1  ;;  %v10338_v46 = vld [vmem:[#allocation3 + $0x2c] ss:$0 sps:$4 sm:$0x11]  }
 0xa70   : > { %v9524_v17 = vpack.c.bf16 %v7049_v51, %v7049_v51  ;;  %v8165_v15 = vsel %vm6196_vm9, %v8163_v38, %v8164_v47  ;;  %v6982_v45 = vmul.f32 %v12428_v49, %v12531_v7  ;;  %v6985_v58 = vmul.f32 %v12536_v53, %v12428_v49 }
 0xa71   : > { %v7443_v2 = vsel %vm11789_vm5, %v7435_v4, %v7442_v14  ;;  %v7664_v1 = vsel %vm11654_vm0, %v7444_v63, %v7663_v36  ;;  %v7931_v13 = vsel %vm5943_vm8, %v7926_v37, %v7930_v20  ;;  %v7022_v33 = vadd.f32 %v12433_v55, %v6984_v43 }
 0xa72   : > { %7662 = vst.msk [vmem:[#allocation3 + $0x7c] sm:$0xf] %vm4928_vm13, %v7443_v2  ;;  %7665 = vst [vmem:[#allocation3 + $0x80] sm:$0x1] %v7664_v1  ;;  %v7420_v11 = vshrl.u32 %v9524_v17, 16  ;;  %v7423_v7 = vshll.u32 %v9524_v17, 16  ;;  %8126 = vrot.lane.b32.xlu0 %v7931_v13, %s10572_s27  ;;  %v7020_v3 = vadd.f32 %v12433_v55, %v6982_v45  ;;  %v7023_v8 = vadd.f32 %v12433_v55, %v6985_v58 }
 0xa73   : > { %8218 = vrot.lane.b32.xlu1 %v8168_v61, %s10573_s28  ;;  %v7957_v30 = vshrl.u32 %v12600_v16, 16  ;;  %v7959_v53 = vshll.u32 %v12600_v16, 16  ;;  %v7964_v4 = vshll.u32 %v12591_v0, 16  ;;  %v7054_v9 = vmax.f32 %v7022_v33, 0.0  ;;  %v7673_v17 = vld [vmem:[#allocation3 + $0x90] sm:$0xf] }
 0xa74   : > { %v7422_v34 = vrot.slane %v7420_v11, 7  ;;  %v7052_v56 = vmax.f32 %v7020_v3, 0.0  ;;  %v6983_v62 = vmul.f32 %v12428_v49, %v12541_v22  ;;  %v7055_v25 = vmax.f32 %v7023_v8, 0.0  ;;  %v7666_v13 = vld [vmem:[#allocation3 + $0x84] sm:$0xf] }
 0xa75   : > { %v7961_v44 = vrot.slane %v7959_v53, 1  ;;  %v7966_v41 = vrot.slane %v7964_v4, 1  ;;  %v7945_v59 = vshrl.u32 %v12616_v27, 16  ;;  %v9529_v26 = vpack.c.bf16 %v7054_v9, %v7054_v9  ;;  %v7677_v58 = vld [vmem:[#allocation3 + $0x98] sm:$0x1] }
 0xa76   : > { %v7425_v24 = vor.u32 %v7423_v7, %v7422_v34  ;;  %v7427_v23 = vrot.slane %v7422_v34, 4  ;;  %8216 = vrot.lane.b32.xlu0 %v8165_v15, %s10573_s28  ;;  %v9527_v48 = vpack.c.bf16 %v7052_v56, %v7052_v56  ;;  %v9530_v10 = vpack.c.bf16 %v7055_v25, %v7055_v25  ;;  %v12645_v56 = vld [vmem:[#allocation3 + $0x48] sm:$0xff]  }
 0xa77   : > { %v7962_v54 = vor.u32 %v7961_v44, %v7957_v30  ;;  %v7021_v21 = vadd.f32 %v12433_v55, %v6983_v62  ;;  %v7947_v39 = vshll.u32 %v12616_v27, 16  ;;  %v7463_v36 = vshrl.u32 %v9529_v26, 16 }
 0xa78   : > { %v7426_v22 = vsel %vm11789_vm5, %v7418_v31, %v7425_v24  ;;  %v7657_v38 = vsel %vm11654_vm0, %v7427_v23, %v7656_v19  ;;  %v7466_v18 = vshll.u32 %v9529_v26, 16  ;;  %v7446_v51 = vshrl.u32 %v9527_v48, 16 }
 0xa79   : > { %7655 = vst.msk [vmem:[#allocation3 + $0x70] sm:$0xf] %vm4928_vm13, %v7426_v22  ;;  %7658 = vst [vmem:[#allocation3 + $0x74] sm:$0x1] %v7657_v38  ;;  %v7449_v20 = vshll.u32 %v9527_v48, 16  ;;  %v7471_v47 = vshrl.u32 %v9530_v10, 16  ;;  %v7967_v37 = vsel %vm5943_vm8, %v7962_v54, %v7966_v41  ;;  %v6986_v54 = vmul.f32 %v12428_v49, %v12556_v28 }
 0xa7a   : > { %v7474_v14 = vshll.u32 %v9530_v10, 16  ;;  %v7465_v63 = vrot.slane %v7463_v36, 7  ;;  %v7053_v61 = vmax.f32 %v7021_v21, 0.0  ;;  %v7949_v52 = vrot.slane %v7947_v39, 1  ;;  %8132 = vrot.lane.b32.xlu1 %v7967_v37, %s10572_s27  ;;  %v7670_v48 = vld [vmem:[#allocation3 + $0x8c] sm:$0x1] }
 0xa7b   : > { %v7448_v15 = vrot.slane %v7446_v51, 7  ;;  %v7473_v31 = vrot.slane %v7471_v47, 7  ;;  %v7952_v43 = vshll.u32 %v10338_v46, 16  ;;  %v8172_v45 = vrot.slane %v12600_v16, 1  ;;  %v12670_v36 = vld [vmem:[#allocation3 + $0x3c] sm:$0xff]  }
 0xa7c   : > { %v7468_v2 = vor.u32 %v7466_v18, %v7465_v63  ;;  %v7469_v1 = vrot.slane %v7465_v63, 4  ;;  %v9528_v11 = vpack.c.bf16 %v7053_v61, %v7053_v61  ;;  %v7950_v7 = vor.u32 %v7949_v52, %v7945_v59  ;;  %v12654_v41 = vld [vmem:[#allocation3 + $0x50] ss:$0 sps:$4 sm:$0x11]  }
 0xa7d   : > { %v7451_v33 = vor.u32 %v7449_v20, %v7448_v15  ;;  %v7452_v3 = vrot.slane %v7448_v15, 4  ;;  %v7476_v8 = vor.u32 %v7474_v14, %v7473_v31  ;;  %v7478_v30 = vrot.slane %v7473_v31, 4  ;;  %v12683_v63 = vld [vmem:[#allocation3 + $0x44] ss:$0 sps:$4 sm:$0x11]  }
 0xa7e   : > { %v7674_v53 = vsel %vm11795_vm7, %v7468_v2, %v7673_v17  ;;  %v7454_v4 = vshrl.u32 %v9528_v11, 16  ;;  %v7457_v34 = vshll.u32 %v9528_v11, 16  ;;  %v7954_v9 = vrot.slane %v7952_v43, 1 }
 0xa7f   : > { %7675 = vst [vmem:[#allocation3 + $0x90] sm:$0xf] %v7674_v53  ;;  %v7667_v62 = vsel %vm11795_vm7, %v7451_v33, %v7666_v13  ;;  %v7477_v19 = vsel %vm11789_vm5, %v7469_v1, %v7476_v8  ;;  %v7678_v25 = vsel %vm11654_vm0, %v7478_v30, %v7677_v58  ;;  %v8173_v44 = vrot.slane %v12591_v0, 1  ;;  %v7687_v53 = vld [vmem:[#allocation3 + $0xa8] sm:$0xf] }
 0xa80   : > { %7668 = vst [vmem:[#allocation3 + $0x84] sm:$0xf] %v7667_v62  ;;  %7676 = vst.msk [vmem:[#allocation3 + $0x94] sm:$0xf] %vm4928_vm13, %v7477_v19  ;;  %v7456_v59 = vrot.slane %v7454_v4, 7  ;;  %v7955_v24 = vsel %vm5943_vm8, %v7950_v7, %v7954_v9  ;;  %v8169_v23 = vrot.slane %v12616_v27, 1  ;;  %v6988_v0 = vmul.f32 %v12554_v6, %v12428_v49 }
 0xa81   : > { %7679 = vst [vmem:[#allocation3 + $0x98] sm:$0x1] %v7678_v25  ;;  %v8170_v26 = vrot.slane %v10338_v46, 1  ;;  %8130 = vrot.lane.b32.xlu0 %v7955_v24, %s10572_s27  ;;  %v8174_v10 = vsel %vm6196_vm9, %v8172_v45, %v8173_v44  ;;  %v6989_v21 = vmul.f32 %v12558_v42, %v12428_v49  ;;  %v7981_v38 = vshrl.u32 %v12645_v56, 16  ;;  %v7680_v25 = vld [vmem:[#allocation3 + $0x9c] sm:$0xf] }
 0xa82   : > { %v7459_v39 = vor.u32 %v7457_v34, %v7456_v59  ;;  %v7461_v22 = vrot.slane %v7456_v59, 4  ;;  %8222 = vrot.lane.b32.xlu1 %v8174_v10, %s10573_s28  ;;  %v7026_v18 = vadd.f32 %v12433_v55, %v6988_v0  ;;  %v7024_v6 = vadd.f32 %v12433_v55, %v6986_v54 }
 0xa83   : > { %v8171_v46 = vsel %vm6196_vm9, %v8169_v23, %v8170_v26  ;;  %v7027_v51 = vadd.f32 %v12433_v55, %v6989_v21  ;;  %v7983_v28 = vshll.u32 %v12645_v56, 16  ;;  %v7988_v47 = vshll.u32 %v12654_v41, 16 }
 0xa84   : > { %v7460_v42 = vsel %vm11789_vm5, %v7452_v3, %v7459_v39  ;;  %v7671_v20 = vsel %vm11654_vm0, %v7461_v22, %v7670_v48  ;;  %v6987_v14 = vmul.f32 %v12428_v49, %v12566_v40  ;;  %v7058_v37 = vmax.f32 %v7026_v18, 0.0  ;;  %v7691_v39 = vld [vmem:[#allocation3 + $0xb0] sm:$0x1] }
 0xa85   : > { %7669 = vst.msk [vmem:[#allocation3 + $0x88] sm:$0xf] %vm4928_vm13, %v7460_v42  ;;  %7672 = vst [vmem:[#allocation3 + $0x8c] sm:$0x1] %v7671_v20  ;;  %8220 = vrot.lane.b32.xlu0 %v8171_v46, %s10573_s28  ;;  %v7056_v61 = vmax.f32 %v7024_v6, 0.0  ;;  %v7059_v52 = vmax.f32 %v7027_v51, 0.0 }
 0xa86   : > { %v7985_v17 = vrot.slane %v7983_v28, 1  ;;  %v7990_v15 = vrot.slane %v7988_v47, 1  ;;  %v7025_v31 = vadd.f32 %v12433_v55, %v6987_v14  ;;  %v7969_v43 = vshrl.u32 %v12670_v36, 16  ;;  %v12696_v6 = vld [vmem:[#allocation3 + $0x60] sm:$0xff]  }
 0xa87   : > { %v7971_v45 = vshll.u32 %v12670_v36, 16  ;;  %v9533_v2 = vpack.c.bf16 %v7058_v37, %v7058_v37  ;;  %v9531_v49 = vpack.c.bf16 %v7056_v61, %v7056_v61  ;;  %v9534_v40 = vpack.c.bf16 %v7059_v52, %v7059_v52  ;;  %v7684_v42 = vld [vmem:[#allocation3 + $0xa4] sm:$0x1]  ;;  %v12710_v52 = vld [vmem:[#allocation3 + $0x68] ss:$0 sps:$4 sm:$0x11]  }
 0xa88   : > { %v7986_v1 = vor.u32 %v7985_v17, %v7981_v38  ;;  %v7057_v13 = vmax.f32 %v7025_v31, 0.0  ;;  %v7976_v11 = vshll.u32 %v12683_v63, 16  ;;  %v8178_v7 = vrot.slane %v12645_v56, 1 }
 0xa89   : > { %v7973_v58 = vrot.slane %v7971_v45, 1  ;;  %v7497_v33 = vshrl.u32 %v9533_v2, 16  ;;  %v7500_v3 = vshll.u32 %v9533_v2, 16  ;;  %v7480_v8 = vshrl.u32 %v9531_v49, 16  ;;  %v12720_v2 = vld [vmem:[#allocation3 + $0x54] sm:$0xff]  }
 0xa8a   : > { %v7483_v30 = vshll.u32 %v9531_v49, 16  ;;  %v7505_v55 = vshrl.u32 %v9534_v40, 16  ;;  %v7508_v4 = vshll.u32 %v9534_v40, 16  ;;  %v7991_v34 = vsel %vm5943_vm8, %v7986_v1, %v7990_v15  ;;  %v10537_v15 = vld [vmem:[%s13230_s13] ss:$0 sm:$0xff] }
 0xa8b   : > { %v9532_v9 = vpack.c.bf16 %v7057_v13, %v7057_v13  ;;  %v7499_v62 = vrot.slane %v7497_v33, 7  ;;  %v7482_v19 = vrot.slane %v7480_v8, 7  ;;  %8136 = vrot.lane.b32.xlu1 %v7991_v34, %s10572_s27  ;;  %v7974_v44 = vor.u32 %v7973_v58, %v7969_v43  ;;  %v12727_v1 = vld [vmem:[#allocation3 + $0x5c] ss:$0 sps:$4 sm:$0x11]  }
 0xa8c   : > { %v7978_v59 = vrot.slane %v7976_v11, 1  ;;  %v7507_v24 = vrot.slane %v7505_v55, 7  ;;  %v8179_v48 = vrot.slane %v12654_v41, 1  ;;  %v8175_v20 = vrot.slane %v12670_v36, 1 }
 0xa8d   : > { %v7488_v23 = vshrl.u32 %v9532_v9, 16  ;;  %v7491_v26 = vshll.u32 %v9532_v9, 16  ;;  %v7502_v10 = vor.u32 %v7500_v3, %v7499_v62  ;;  %v7503_v0 = vrot.slane %v7499_v62, 4 }
 0xa8e   : > { %v7485_v54 = vor.u32 %v7483_v30, %v7482_v19  ;;  %v7486_v21 = vrot.slane %v7482_v19, 4  ;;  %v7510_v22 = vor.u32 %v7508_v4, %v7507_v24  ;;  %v7512_v46 = vrot.slane %v7507_v24, 4 }
 0xa8f   : > { %v7490_v38 = vrot.slane %v7488_v23, 7  ;;  %v7979_v18 = vsel %vm5943_vm8, %v7974_v44, %v7978_v59  ;;  %v7688_v51 = vsel %vm11795_vm7, %v7502_v10, %v7687_v53  ;;  %v8180_v41 = vsel %vm6196_vm9, %v8178_v7, %v8179_v48 }
 0xa90   : > { %v7681_v28 = vsel %vm11795_vm7, %v7485_v54, %v7680_v25  ;;  %8134 = vrot.lane.b32.xlu0 %v7979_v18, %s10572_s27  ;;  %7689 = vst [vmem:[#allocation3 + $0xa8] sm:$0xf] %v7688_v51  ;;  %v7511_v47 = vsel %vm11789_vm5, %v7503_v0, %v7510_v22  ;;  %v7692_v14 = vsel %vm11654_vm0, %v7512_v46, %v7691_v39  ;;  %v8176_v17 = vrot.slane %v12683_v63, 1  ;;  %v7694_v22 = vld [vmem:[#allocation3 + $0xb4] sm:$0xf] }
 0xa91   : > { %7682 = vst [vmem:[#allocation3 + $0x9c] sm:$0xf] %v7681_v28  ;;  %v7493_v37 = vor.u32 %v7491_v26, %v7490_v38  ;;  %v7495_v61 = vrot.slane %v7490_v38, 4  ;;  %8226 = vrot.lane.b32.xlu1 %v8180_v41, %s10573_s28  ;;  %7690 = vst.msk [vmem:[#allocation3 + $0xac] sm:$0xf] %vm4928_vm13, %v7511_v47  ;;  %v6992_v31 = vmul.f32 %v10537_v15, %v12587_v35  ;;  %v8007_v63 = vshll.u32 %v12696_v6, 16 }
 0xa92   : > { %7693 = vst [vmem:[#allocation3 + $0xb0] sm:$0x1] %v7692_v14  ;;  %v6990_v43 = vmul.f32 %v10537_v15, %v12593_v32  ;;  %v6993_v45 = vmul.f32 %v10537_v15, %v12596_v12  ;;  %v8177_v35 = vsel %vm6196_vm9, %v8175_v20, %v8176_v17  ;;  %v10538_v32 = vld [vmem:[%s13231_s14] ss:$0 sm:$0xff]  ;;  %v8005_v11 = vshrl.u32 %v12696_v6, 16 }
 0xa93   : > { %v7494_v49 = vsel %vm11789_vm5, %v7486_v21, %v7493_v37  ;;  %v7685_v40 = vsel %vm11654_vm0, %v7495_v61, %v7684_v42  ;;  %v7030_v12 = vadd.f32 %v10538_v32, %v6992_v31  ;;  %v8009_v7 = vrot.slane %v8007_v63, 1  ;;  %v7701_v21 = vld [vmem:[#allocation3 + $0xc0] sm:$0xf]  ;;  %v7705_v41 = vld [vmem:[#allocation3 + $0xc8] sm:$0x1] }
 0xa94   : > { %7683 = vst.msk [vmem:[#allocation3 + $0xa0] sm:$0xf] %vm4928_vm13, %v7494_v49  ;;  %7686 = vst [vmem:[#allocation3 + $0xa4] sm:$0x1] %v7685_v40  ;;  %v7028_v13 = vadd.f32 %v10538_v32, %v6990_v43  ;;  %v7031_v58 = vadd.f32 %v10538_v32, %v6993_v45  ;;  %8224 = vrot.lane.b32.xlu0 %v8177_v35, %s10573_s28  ;;  %v8012_v33 = vshll.u32 %v12710_v52, 16  ;;  %v7995_v55 = vshll.u32 %v12720_v2, 16 }
 0xa95   : > { %v6991_v3 = vmul.f32 %v10537_v15, %v12607_v57  ;;  %v7062_v8 = vmax.f32 %v7030_v12, 0.0  ;;  %v8010_v4 = vor.u32 %v8009_v7, %v8005_v11  ;;  %v8000_v62 = vshll.u32 %v12727_v1, 16  ;;  %v12748_v45 = vld [vmem:[#allocation3 + $0x78] sm:$0xff]   ;;  %v12750_v49 = vld [vmem:[#allocation3 + $0x80] ss:$0 sps:$4 sm:$0x11]  }
 0xa96   : > { %v7060_v30 = vmax.f32 %v7028_v13, 0.0  ;;  %v7063_v53 = vmax.f32 %v7031_v58, 0.0  ;;  %v8014_v34 = vrot.slane %v8012_v33, 1  ;;  %v7997_v59 = vrot.slane %v7995_v55, 1  ;;  %v7698_v7 = vld [vmem:[#allocation3 + $0xbc] sm:$0x1] }
 0xa97   : > { %v7029_v9 = vadd.f32 %v10538_v32, %v6991_v3  ;;  %v9537_v19 = vpack.c.bf16 %v7062_v8, %v7062_v8  ;;  %v7993_v26 = vshrl.u32 %v12720_v2, 16  ;;  %v8002_v57 = vrot.slane %v8000_v62, 1  ;;  %v12753_v32 = vld [vmem:[#allocation3 + $0x6c] sm:$0xff]   ;;  %v12755_v12 = vld [vmem:[#allocation3 + $0x74] ss:$0 sps:$4 sm:$0x11]  }
 0xa98   : > { %v9535_v25 = vpack.c.bf16 %v7060_v30, %v7060_v30  ;;  %v9538_v44 = vpack.c.bf16 %v7063_v53, %v7063_v53  ;;  %v8015_v24 = vsel %vm5943_vm8, %v8010_v4, %v8014_v34  ;;  %v8184_v54 = vrot.slane %v12696_v6, 1 }
 0xa99   : > { %v7061_v23 = vmax.f32 %v7029_v9, 0.0  ;;  %v7531_v48 = vshrl.u32 %v9537_v19, 16  ;;  %v7534_v10 = vshll.u32 %v9537_v19, 16  ;;  %8140 = vrot.lane.b32.xlu1 %v8015_v24, %s10572_s27  ;;  %v7998_v18 = vor.u32 %v7997_v59, %v7993_v26  ;;  %v12782_v59 = vld [vmem:[#allocation3 + $0x98] ss:$0 sps:$4 sm:$0x11]  }
 0xa9a   : > { %v7514_v0 = vshrl.u32 %v9535_v25, 16  ;;  %v7517_v39 = vshll.u32 %v9535_v25, 16  ;;  %v7539_v46 = vshrl.u32 %v9538_v44, 16  ;;  %v7542_v42 = vshll.u32 %v9538_v44, 16  ;;  %v12784_v24 = vld [vmem:[#allocation3 + $0x84] sm:$0xff]  }
 0xa9b   : > { %v9536_v38 = vpack.c.bf16 %v7061_v23, %v7061_v23  ;;  %v7533_v51 = vrot.slane %v7531_v48, 7  ;;  %v8185_v20 = vrot.slane %v12710_v52, 1  ;;  %v8003_v37 = vsel %vm5943_vm8, %v7998_v18, %v8002_v57  ;;  %v12787_v26 = vld [vmem:[#allocation3 + $0x8c] ss:$0 sps:$4 sm:$0x11]  }
 0xa9c   : > { %v7516_v28 = vrot.slane %v7514_v0, 7  ;;  %v7541_v47 = vrot.slane %v7539_v46, 7  ;;  %v8181_v61 = vrot.slane %v12720_v2, 1  ;;  %8138 = vrot.lane.b32.xlu0 %v8003_v37, %s10572_s27  ;;  %v8182_v33 = vrot.slane %v12727_v1, 1  ;;  %v12771_v1 = vld [vmem:[#allocation3 + $0x90] sm:$0xff]   ;;  %v12793_v46 = vld [vmem:[#allocation3 + $0xa8] sm:$0xff]  }
 0xa9d   : > { %v7522_v14 = vshrl.u32 %v9536_v38, 16  ;;  %v7536_v17 = vor.u32 %v7534_v10, %v7533_v51  ;;  %v7537_v15 = vrot.slane %v7533_v51, 4  ;;  %v7525_v43 = vshll.u32 %v9536_v38, 16 }
 0xa9e   : > { %v7519_v31 = vor.u32 %v7517_v39, %v7516_v28  ;;  %v7544_v40 = vor.u32 %v7542_v42, %v7541_v47  ;;  %v7546_v63 = vrot.slane %v7541_v47, 4  ;;  %v8186_v52 = vsel %vm6196_vm9, %v8184_v54, %v8185_v20 }
 0xa9f   : > { %v7524_v35 = vrot.slane %v7522_v14, 7  ;;  %v7702_v13 = vsel %vm11795_vm7, %v7536_v17, %v7701_v21  ;;  %v7520_v58 = vrot.slane %v7516_v28, 4  ;;  %8230 = vrot.lane.b32.xlu1 %v8186_v52, %s10573_s28  ;;  %v8183_v5 = vsel %vm6196_vm9, %v8181_v61, %v8182_v33  ;;  %v12803_v14 = vld [vmem:[#allocation3 + $0x9c] sm:$0xff]  }
 0xaa0   : > { %v7695_v11 = vsel %vm11795_vm7, %v7519_v31, %v7694_v22  ;;  %7703 = vst [vmem:[#allocation3 + $0xc0] sm:$0xf] %v7702_v13  ;;  %v7545_v3 = vsel %vm11789_vm5, %v7537_v15, %v7544_v40  ;;  %v7706_v8 = vsel %vm11654_vm0, %v7546_v63, %v7705_v41  ;;  %v8031_v55 = vshll.u32 %v12748_v45, 16  ;;  %8228 = vrot.lane.b32.xlu0 %v8183_v5, %s10573_s28  ;;  %v12807_v15 = vld [vmem:[#allocation3 + $0xb0] ss:$0 sps:$4 sm:$0x11]  }
 0xaa1   : > { %7696 = vst [vmem:[#allocation3 + $0xb4] sm:$0xf] %v7695_v11  ;;  %v7527_v30 = vor.u32 %v7525_v43, %v7524_v35  ;;  %v7529_v53 = vrot.slane %v7524_v35, 4  ;;  %7704 = vst.msk [vmem:[#allocation3 + $0xc4] sm:$0xf] %vm4928_vm13, %v7545_v3  ;;  %v8036_v4 = vshll.u32 %v12750_v49, 16 }
 0xaa2   : > { %7707 = vst [vmem:[#allocation3 + $0xc8] sm:$0x1] %v7706_v8  ;;  %v8019_v62 = vshll.u32 %v12753_v32, 16  ;;  %v8024_v19 = vshll.u32 %v12755_v12, 16  ;;  %v8029_v25 = vshrl.u32 %v12748_v45, 16  ;;  %v8033_v44 = vrot.slane %v8031_v55, 1 }
 0xaa3   : > { %v7528_v34 = vsel %vm11789_vm5, %v7520_v58, %v7527_v30  ;;  %v7699_v9 = vsel %vm11654_vm0, %v7529_v53, %v7698_v7  ;;  %v8017_v50 = vshrl.u32 %v12753_v32, 16  ;;  %v8038_v48 = vrot.slane %v8036_v4, 1  ;;  %v12810_v43 = vld [vmem:[#allocation3 + $0xa4] ss:$0 sps:$4 sm:$0x11]  }
 0xaa4   : > { %7697 = vst.msk [vmem:[#allocation3 + $0xb8] sm:$0xf] %vm4928_vm13, %v7528_v34  ;;  %7700 = vst [vmem:[#allocation3 + $0xbc] sm:$0x1] %v7699_v9  ;;  %v8021_v23 = vrot.slane %v8019_v62, 1  ;;  %v8034_v57 = vor.u32 %v8033_v44, %v8029_v25  ;;  %v8190_v10 = vrot.slane %v12748_v45, 1 }
 0xaa5   : > { %v8055_v0 = vshll.u32 %v12771_v1, 16  ;;  %v8026_v21 = vrot.slane %v8024_v19, 1  ;;  %v8191_v39 = vrot.slane %v12750_v49, 1  ;;  %v8053_v22 = vshrl.u32 %v12771_v1, 16  ;;  %v7071_v25 = vld [vmem:[#allocation3] sm:$0x1] }
 0xaa6   : > { %v8022_v54 = vor.u32 %v8021_v23, %v8017_v50  ;;  %v8039_v38 = vsel %vm5943_vm8, %v8034_v57, %v8038_v48  ;;  %v8060_v51 = vshll.u32 %v12782_v59, 16  ;;  %v8043_v28 = vshll.u32 %v12784_v24, 16  ;;  %v7125_v44 = vld [vmem:[#allocation3 + $0x8] sm:$0x1] }
 0xaa7   : > { %v8057_v18 = vrot.slane %v8055_v0, 1  ;;  %8144 = vrot.lane.b32.xlu1 %v8039_v38, %s10572_s27  ;;  %v8187_v41 = vrot.slane %v12753_v32, 1  ;;  %v8188_v20 = vrot.slane %v12755_v12, 1  ;;  %v8048_v47 = vshll.u32 %v12787_v26, 16 }
 0xaa8   : > { %v8027_v42 = vsel %vm5943_vm8, %v8022_v54, %v8026_v21  ;;  %v8041_v61 = vshrl.u32 %v12784_v24, 16  ;;  %v8045_v17 = vrot.slane %v8043_v28, 1  ;;  %v8079_v31 = vshll.u32 %v12793_v46, 16  ;;  %v12818_v11 = vld [vmem:[#allocation3 + $0xc0] sm:$0xff]  }
 0xaa9   : > { %8142 = vrot.lane.b32.xlu0 %v8027_v42, %s10572_s27  ;;  %v8058_v37 = vor.u32 %v8057_v18, %v8053_v22  ;;  %v8192_v49 = vsel %vm6196_vm9, %v8190_v10, %v8191_v39  ;;  %v8062_v40 = vrot.slane %v8060_v51, 1  ;;  %v8189_v35 = vsel %vm6196_vm9, %v8187_v41, %v8188_v20  ;;  %v12836_v48 = vld [vmem:[#allocation3 + $0xc8] ss:$0 sps:$4 sm:$0x11]   ;;  %v10539_v18 = vld [vmem:[%s13232_s15 + $0x14] ss:$0 sps:$4 sm:$0xff]  }
 0xaaa   : > { %v8046_v63 = vor.u32 %v8045_v17, %v8041_v61  ;;  %v8050_v52 = vrot.slane %v8048_v47, 1  ;;  %v8067_v12 = vshll.u32 %v12803_v14, 16  ;;  %v8081_v58 = vrot.slane %v8079_v31, 1 }
 0xaab   : > { %8234 = vrot.lane.b32.xlu1 %v8192_v49, %s10573_s28  ;;  %v8063_v13 = vsel %vm5943_vm8, %v8058_v37, %v8062_v40  ;;  %v12821_v3 = vld [vmem:[#allocation3 + $0xb4] sm:$0xff]   ;;  %v8196_v8 = vrot.slane %v12771_v1, 1  ;;  %v8197_v30 = vrot.slane %v12782_v59, 1  ;;  %v8077_v53 = vshrl.u32 %v12793_v46, 16  ;;  %v7122_v40 = vld [vmem:[#allocation3 + $0xcc] sm:$0x1] }
 0xaac   : > { %v8051_v7 = vsel %vm5943_vm8, %v8046_v63, %v8050_v52  ;;  %v8069_v33 = vrot.slane %v8067_v12, 1  ;;  %v8084_v5 = vshll.u32 %v12807_v15, 16  ;;  %v8193_v55 = vrot.slane %v12784_v24, 1  ;;  %v10362_v54 = vld [vmem:[#allocation3 + $0xbc] ss:$0 sps:$4 sm:$0x11]  }
 0xaad   : > { %8232 = vrot.lane.b32.xlu0 %v8189_v35, %s10573_s28  ;;  %v8194_v4 = vrot.slane %v12787_v26, 1  ;;  %v8065_v34 = vshrl.u32 %v12803_v14, 16  ;;  %v8072_v9 = vshll.u32 %v12810_v43, 16  ;;  %v8082_v62 = vor.u32 %v8081_v58, %v8077_v53  ;;  %v12841_v26 = vld [vmem:[%s13232_s15] sm:$0xff]   ;;  %v7176_v52 = vld [vmem:[#allocation3 + $0xd4] sm:$0x1] }
 0xaae   : > { %v8103_v19 = vshll.u32 %v12818_v11, 16  ;;  %v8091_v50 = vshll.u32 %v12821_v3, 16  ;;  %v8198_v23 = vsel %vm6196_vm9, %v8196_v8, %v8197_v30  ;;  %v8086_v57 = vrot.slane %v8084_v5, 1 }
 0xaaf   : > { %8148 = vrot.lane.b32.xlu1 %v8063_v13, %s10572_s27  ;;  %v8070_v59 = vor.u32 %v8069_v33, %v8065_v34  ;;  %v8195_v10 = vsel %vm6196_vm9, %v8193_v55, %v8194_v4  ;;  %v8074_v0 = vrot.slane %v8072_v9, 1  ;;  %v7072_v21 = vsel %vm11654_vm0, 0, %v7071_v25 }
 0xab0   : > { %v7126_v39 = vsel %vm11686_vm3, 0, %v7125_v44  ;;  %v8087_v22 = vsel %vm5943_vm8, %v8082_v62, %v8086_v57  ;;  %v8105_v38 = vrot.slane %v8103_v19, 1  ;;  %7073 = vst [vmem:[#allocation3] sm:$0x1] %v7072_v21  ;;  %v8373_v51 = vsel %vm944_vm10, %v10539_v18, 0 }
 0xab1   : > { %8146 = vrot.lane.b32.xlu0 %v8051_v7, %s10572_s27  ;;  %7127 = vst [vmem:[#allocation3 + $0x8] sm:$0x1] %v7126_v39  ;;  %v8075_v28 = vsel %vm5943_vm8, %v8070_v59, %v8074_v0  ;;  %v8093_v42 = vrot.slane %v8091_v50, 1  ;;  %9853 = vmatpush3.bf16.msra.mxu0 %v8373_v51  ;;  %v8202_v41 = vrot.slane %v12793_v46, 1  ;;  %v8203_v20 = vrot.slane %v12807_v15, 1 }
 0xab2   : > { %v8101_v47 = vshrl.u32 %v12818_v11, 16  ;;  %v8108_v37 = vshll.u32 %v12836_v48, 16  ;;  %9886 = vmatprep.subr.bf16.mxu0 %v12841_v26  ;;  %v8199_v61 = vrot.slane %v12803_v14, 1  ;;  %v8200_v17 = vrot.slane %v12810_v43, 1 }
 0xab3   : > { %8238 = vrot.lane.b32.xlu1 %v8198_v23, %s10573_s28  ;;  %v8089_v31 = vshrl.u32 %v12821_v3, 16  ;;  %v8096_v49 = vshll.u32 %v10362_v54, 16  ;;  %v7123_v15 = vsel %vm11654_vm0, 0, %v7122_v40  ;;  %v8204_v12 = vsel %vm6196_vm9, %v8202_v41, %v8203_v20 }
 0xab4   : > { %v8106_v63 = vor.u32 %v8105_v38, %v8101_v47  ;;  %7124 = vst [vmem:[#allocation3 + $0xcc] sm:$0x1] %v7123_v15  ;;  %v8110_v13 = vrot.slane %v8108_v37, 1  ;;  %v7177_v58 = vsel %vm11686_vm3, 0, %v7176_v52  ;;  %v8201_v43 = vsel %vm6196_vm9, %v8199_v61, %v8200_v17  ;;  %v10540_v61 = vld [vmem:[#allocation3 + $0xc] sm:$0xff]  }
 0xab5   : > { %8236 = vrot.lane.b32.xlu0 %v8195_v10, %s10573_s28  ;;  %v8094_v35 = vor.u32 %v8093_v42, %v8089_v31  ;;  %v8098_v7 = vrot.slane %v8096_v49, 1  ;;  %7178 = vst [vmem:[#allocation3 + $0xd4] sm:$0x1] %v7177_v58  ;;  %v8208_v5 = vrot.slane %v12818_v11, 1  ;;  %v8209_v55 = vrot.slane %v12836_v48, 1  ;;  %v10541_v49 = vld [vmem:[#allocation3 + $0x18] sm:$0xff]  }
 0xab6   : > { %v8111_v60 = vsel %vm5943_vm8, %v8106_v63, %v8110_v13  ;;  %v8205_v34 = vrot.slane %v12821_v3, 1  ;;  %v8206_v9 = vrot.slane %v10362_v54, 1  ;;  %v10368_v15 = vld [vmem:[%s13232_s15 + $0x8] ss:$0 sps:$4 sm:$0xff]  }
 0xab7   : > { %8152 = vrot.lane.b32.xlu1 %v8087_v22, %s10572_s27  ;;  %v12873_v33 = vld [vmem:[#allocation3] sm:$0xff]   ;;  %v8099_v30 = vsel %vm5943_vm8, %v8094_v35, %v8098_v7  ;;  %v8210_v23 = vsel %vm6196_vm9, %v8208_v5, %v8209_v55  ;;  %v8548_v52 = vsel %vm944_vm10, %v10368_v15, 0 }
 0xab8   : > { %v10364_v8 = vld [vmem:[#allocation3 + $0x8] ss:$0 sps:$4 sm:$0x11]   ;;  %v7909_v53 = vshrl.u32 %v12873_v33, 16  ;;  %v7911_v29 = vshll.u32 %v12873_v33, 16  ;;  %v8160_v19 = vrot.slane %v12873_v33, 1  ;;  %v8207_v48 = vsel %vm6196_vm9, %v8205_v34, %v8206_v9 }
 0xab9   : > { %8150 = vrot.lane.b32.xlu0 %v8075_v28, %s10572_s27  ;;  %v7916_v4 = vshll.u32 %v10364_v8, 16  ;;  %v8161_v25 = vrot.slane %v10364_v8, 1 }
 0xaba   : > { %v7913_v62 = vrot.slane %v7911_v29, 1 }
 0xabb   : > { %8242 = vrot.lane.b32.xlu1 %v8204_v12, %s10573_s28  ;;  %v12886_v44 = vld [vmem:[#allocation3 + $0xcc] sm:$0xff]   ;;  %v7918_v50 = vrot.slane %v7916_v4, 1  ;;  %v8162_v54 = vsel %vm6196_vm9, %v8160_v19, %v8161_v25  ;;  %v12924_v12 = vld [vmem:[%s13232_s15 + $0x18] sm:$0xff]  }
 0xabc   : > { %v7914_v59 = vor.u32 %v7913_v62, %v7909_v53  ;;  %v10371_v57 = vld [vmem:[#allocation3 + $0xd4] ss:$0 sps:$4 sm:$0x11]   ;;  %v8113_v10 = vshrl.u32 %v12886_v44, 16  ;;  %v8115_v0 = vshll.u32 %v12886_v44, 16  ;;  %v8211_v39 = vrot.slane %v12886_v44, 1 }
 0xabd   : > { %8240 = vrot.lane.b32.xlu0 %v8201_v43, %s10573_s28  ;;  %v8120_v21 = vshll.u32 %v10371_v57, 16  ;;  %v8212_v22 = vrot.slane %v10371_v57, 1 }
 0xabe   : > { %v7919_v38 = vsel %vm5943_vm8, %v7914_v59, %v7918_v50  ;;  %v8117_v18 = vrot.slane %v8115_v0, 1 }
 0xabf   : > { %8156 = vrot.lane.b32.xlu1 %v8111_v60, %s10572_s27  ;;  %v8122_v51 = vrot.slane %v8120_v21, 1  ;;  %v8213_v42 = vsel %vm6196_vm9, %v8211_v39, %v8212_v22 }
 0xac0   : > { %v8118_v28 = vor.u32 %v8117_v18, %v8113_v10 }
 0xac1   : > { %8154 = vrot.lane.b32.xlu0 %v8099_v30, %s10572_s27 }
 0xac2   : > { %v8123_v41 = vsel %vm5943_vm8, %v8118_v28, %v8122_v51 }
 0xac3   : > { %8246 = vrot.lane.b32.xlu1 %v8210_v23, %s10573_s28 }
 0xac5   : > { %8244 = vrot.lane.b32.xlu0 %v8207_v48, %s10573_s28 }
 0xac7   : > { %8214 = vrot.lane.b32.xlu1 %v8162_v54, %s10573_s28 }
 0xac9   : > { %8124 = vrot.lane.b32.xlu0 %v7919_v38, %s10572_s27 }
 0xacb   : > { %8248 = vrot.lane.b32.xlu1 %v8213_v42, %s10573_s28 }
 0xacd   : > { %8158 = vrot.lane.b32.xlu0 %v8123_v41, %s10572_s27 }
 0xae1   : > { %v8129_v20 = vpop.permute.xlu1 %8128 }
 0xae2   : > { %v8255_v40 = vsel %vm940_vm11, %v10541_v49, %v8129_v20 }
 0xae4   : > { %v8127_v47 = vpop.permute.xlu0 %8126 }
 0xae5   : > { %v8219_v37 = vpop.permute.xlu1 %8218  ;;  %v8253_v17 = vsel %vm940_vm11, %v10540_v61, %v8127_v47 }
 0xae6   : > { %v12912_v35 = vsel %vm6323_vm1, %v8255_v40, %v8219_v37 }
 0xae8   : > { %v8217_v31 = vpop.permute.xlu0 %8216 }
 0xae9   : > { %v12906_v63 = vsel %vm6323_vm1, %v8253_v17, %v8217_v31 }
 0xaea   : > { %9854 = vmatprep.mubr.msk.bf16.mxu0 %vm923_vm6, %v12906_v63 }
 0xaeb   : > { %9855 = vmatmul.mubr.msk.bf16.vlgmr.msra.gmra.mrb[28].mxu0 %vm923_vm6, %v12912_v35 }
 0xaec   : > { %9887 = vmatpush3.bf16.msra.mxu0 %v12841_v26  ;;  %v8133_v13 = vpop.permute.xlu1 %8132 }
 0xaed   : > { %10096 = vmatprep.subr.msk.bf16.mxu0 %vm944_vm10, %v10368_v15  ;;  %v8259_v26 = vsel %vm940_vm11, %v12600_v16, %v8133_v13 }
 0xaf0   : > { %9889 = vmatpush3.bf16.msra.mxu0 %v8548_v52 }
 0xaf1   : > { %9922 = vmatprep.subr.bf16.mxu0 %v12924_v12 }
 0xaf3   : > { %v8131_v58 = vpop.permute.xlu0 %8130 }
 0xaf4   : > { %v8223_v43 = vpop.permute.xlu1 %8222  ;;  %v8257_v7 = vsel %vm940_vm11, %v12616_v27, %v8131_v58 }
 0xaf5   : > { %v12935_v30 = vsel %vm6323_vm1, %v8259_v26, %v8223_v43 }
 0xaf7   : > { %v8221_v60 = vpop.permute.xlu0 %8220 }
 0xaf8   : > { %v12932_v8 = vsel %vm6323_vm1, %v8257_v7, %v8221_v60  ;;  %v13073_v7 = vld [vmem:[%s13233_s16] ss:$0 sm:$0xff] }
 0xaf9   : > { %9858 = vmatprep.mubr.msk.bf16.mxu0 %vm923_vm6, %v12932_v8  ;;  %v13078_v60 = vld [vmem:[%s13234_s17] ss:$0 sm:$0xff] }
 0xafa   : > { %9859 = vmatmul.mubr.msk.bf16.gmra.mrb[32].mxu0 %vm923_vm6, %v12935_v30 }
 0xafd   : > { %v8137_v53 = vpop.permute.xlu1 %8136 }
 0xafe   : > { %v8263_v16 = vsel %vm940_vm11, %v12645_v56, %v8137_v53 }
 0xb02   : > { %v8135_v29 = vpop.permute.xlu0 %8134 }
 0xb03   : > { %v8227_v5 = vpop.permute.xlu1 %8226  ;;  %v8261_v27 = vsel %vm940_vm11, %v12670_v36, %v8135_v29 }
 0xb04   : > { %v12949_v34 = vsel %vm6323_vm1, %v8263_v16, %v8227_v5 }
 0xb06   : > { %v8225_v55 = vpop.permute.xlu0 %8224 }
 0xb07   : > { %v12946_v4 = vsel %vm6323_vm1, %v8261_v27, %v8225_v55 }
 0xb08   : > { %9862 = vmatprep.mubr.msk.bf16.mxu0 %vm923_vm6, %v12946_v4 }
 0xb09   : > { %9863 = vmatmul.mubr.msk.bf16.gmra.mrb[36].mxu0 %vm923_vm6, %v12949_v34 }
 0xb0b   : > { %v8141_v9 = vpop.permute.xlu1 %8140 }
 0xb0c   : > { %v8267_v56 = vsel %vm940_vm11, %v12696_v6, %v8141_v9 }
 0xb0e   : > { %v8139_v62 = vpop.permute.xlu0 %8138 }
 0xb0f   : > { %v8265_v36 = vsel %vm940_vm11, %v12720_v2, %v8139_v62 }
 0xb11   : > { %v8231_v19 = vpop.permute.xlu1 %8230 }
 0xb12   : > { %v8229_v25 = vpop.permute.xlu0 %8228  ;;  %v12963_v50 = vsel %vm6323_vm1, %v8267_v56, %v8231_v19 }
 0xb13   : > { %v12960_v59 = vsel %vm6323_vm1, %v8265_v36, %v8229_v25 }
 0xb14   : > { %9866 = vmatprep.mubr.msk.bf16.mxu0 %vm923_vm6, %v12960_v59 }
 0xb15   : > { %9867 = vmatmul.mubr.msk.bf16.gmra.mrb[40].mxu0 %vm923_vm6, %v12963_v50 }
 0xb19   : > { %v8145_v23 = vpop.permute.xlu1 %8144 }
 0xb1a   : > { %v8271_v6 = vsel %vm940_vm11, %v12748_v45, %v8145_v23 }
 0xb1b   : > { %v8143_v57 = vpop.permute.xlu0 %8142 }
 0xb1c   : > { %v8269_v2 = vsel %vm940_vm11, %v12753_v32, %v8143_v57 }
 0xb1d   : > { %v8235_v48 = vpop.permute.xlu1 %8234 }
 0xb1e   : > { %v12977_v54 = vsel %vm6323_vm1, %v8271_v6, %v8235_v48 }
 0xb1f   : > { %v8233_v10 = vpop.permute.xlu0 %8232 }
 0xb20   : > { %v12974_v0 = vsel %vm6323_vm1, %v8269_v2, %v8233_v10 }
 0xb21   : > { %9870 = vmatprep.mubr.msk.bf16.mxu0 %vm923_vm6, %v12974_v0  ;;  %v8149_v21 = vpop.permute.xlu1 %8148 }
 0xb22   : > { %9871 = vmatmul.mubr.msk.bf16.gmra.mrb[44].mxu0 %vm923_vm6, %v12977_v54  ;;  %v8275_v45 = vsel %vm940_vm11, %v12771_v1, %v8149_v21 }
 0xb23   : > { %v8147_v39 = vpop.permute.xlu0 %8146 }
 0xb24   : > { %v8273_v32 = vsel %vm940_vm11, %v12784_v24, %v8147_v39 }
 0xb25   : > { %v8239_v22 = vpop.permute.xlu1 %8238 }
 0xb26   : > { %v8311_v51 = vsel %vm6323_vm1, %v8275_v45, %v8239_v22 }
 0xb27   : > { %v8237_v38 = vpop.permute.xlu0 %8236 }
 0xb28   : > { %v8309_v18 = vsel %vm6323_vm1, %v8273_v32, %v8237_v38 }
 0xb29   : > { %9874 = vmatprep.mubr.msk.bf16.mxu0 %vm923_vm6, %v8309_v18  ;;  %v8153_v28 = vpop.permute.xlu1 %8152 }
 0xb2a   : > { %9875 = vmatmul.mubr.msk.bf16.gmra.mrb[48].mxu0 %vm923_vm6, %v8311_v51  ;;  %v8279_v24 = vsel %vm940_vm11, %v12793_v46, %v8153_v28 }
 0xb2b   : > { %v8151_v42 = vpop.permute.xlu0 %8150 }
 0xb2c   : > { %v8277_v20 = vsel %vm940_vm11, %v12803_v14, %v8151_v42 }
 0xb2d   : > { %v8243_v41 = vpop.permute.xlu1 %8242 }
 0xb2e   : > { %v8315_v37 = vsel %vm6323_vm1, %v8279_v24, %v8243_v41 }
 0xb2f   : > { %v8241_v47 = vpop.permute.xlu0 %8240 }
 0xb30   : > { %v8313_v1 = vsel %vm6323_vm1, %v8277_v20, %v8241_v47 }
 0xb31   : > { %9878 = vmatprep.mubr.msk.bf16.mxu0 %vm923_vm6, %v8313_v1  ;;  %v8157_v61 = vpop.permute.xlu1 %8156 }
 0xb32   : > { %9879 = vmatmul.mubr.msk.bf16.gmra.mrb[52].mxu0 %vm923_vm6, %v8315_v37  ;;  %v8283_v14 = vsel %vm940_vm11, %v12818_v11, %v8157_v61  ;;  %v10372_v11 = vld [vmem:[%s13232_s15 + $0x20] ss:$0 sps:$4 sm:$0xff]  }
 0xb33   : > { %v8155_v17 = vpop.permute.xlu0 %8154 }
 0xb34   : > { %v8281_v49 = vsel %vm940_vm11, %v12821_v3, %v8155_v17  ;;  %v8723_v3 = vsel %vm944_vm10, %v10372_v11, 0 }
 0xb35   : > { %v8247_v31 = vpop.permute.xlu1 %8246 }
 0xb36   : > { %v8319_v15 = vsel %vm6323_vm1, %v8283_v14, %v8247_v31 }
 0xb37   : > { %v8245_v40 = vpop.permute.xlu0 %8244 }
 0xb38   : > { %v8317_v46 = vsel %vm6323_vm1, %v8281_v49, %v8245_v40 }
 0xb39   : > { %9882 = vmatprep.mubr.msk.bf16.mxu0 %vm923_vm6, %v8317_v46  ;;  %v8215_v52 = vpop.permute.xlu1 %8214 }
 0xb3a   : > { %9883 = vmatmul.mubr.msk.bf16.gmra.mrb[56].mxu0 %vm923_vm6, %v8319_v15 }
 0xb3b   : > { %v8125_v13 = vpop.permute.xlu0 %8124 }
 0xb3c   : > { %v8251_v58 = vsel %vm940_vm11, %v12873_v33, %v8125_v13 }
 0xb3d   : > { %v8287_v43 = vsel %vm6323_vm1, %v8251_v58, %v8215_v52 }
 0xb3e   : > { %9890 = vmatprep.mubr.msk.bf16.mxu0 %vm923_vm6, %v8287_v43 }
 0xb3f   : > { %v8159_v33 = vpop.permute.xlu0 %8158 }
 0xb42   : > { %9891 = vmatmul.mubr.msk.bf16.vlgmr.msra.gmra.mrb[28].mxu0 %vm923_vm6, %v12906_v63  ;;  %v8285_v63 = vsel %vm940_vm11, %v12886_v44, %v8159_v33 }
 0xb43   : > { %9923 = vmatpush3.bf16.msra.mxu0 %v12924_v12  ;;  %9894 = vmatprep.mubr.msk.bf16.mxu0 %vm923_vm6, %v12912_v35 }
 0xb44   : > { %10097 = vmatprep.subr.msk.bf16.mxu0 %vm944_vm10, %v10372_v11 }
 0xb47   : > { %9925 = vmatpush3.bf16.msra.mxu0 %v8723_v3 }
 0xb4a   : > { %9895 = vmatmul.mubr.msk.bf16.gmra.mrb[32].mxu0 %vm923_vm6, %v12932_v8 }
 0xb4b   : > { %9898 = vmatprep.mubr.msk.bf16.mxu0 %vm923_vm6, %v12935_v30 }
 0xb52   : > { %9899 = vmatmul.mubr.msk.bf16.gmra.mrb[36].mxu0 %vm923_vm6, %v12946_v4 }
 0xb53   : > { %9902 = vmatprep.mubr.msk.bf16.mxu0 %vm923_vm6, %v12949_v34 }
 0xb5a   : > { %9903 = vmatmul.mubr.msk.bf16.gmra.mrb[40].mxu0 %vm923_vm6, %v12960_v59 }
 0xb5b   : > { %9906 = vmatprep.mubr.msk.bf16.mxu0 %vm923_vm6, %v12963_v50 }
 0xb62   : > { %9907 = vmatmul.mubr.msk.bf16.gmra.mrb[44].mxu0 %vm923_vm6, %v12974_v0 }
 0xb63   : > { %9910 = vmatprep.mubr.msk.bf16.mxu0 %vm923_vm6, %v12977_v54 }
 0xb6a   : > { %9911 = vmatmul.mubr.msk.bf16.gmra.mrb[48].mxu0 %vm923_vm6, %v8309_v18 }
 0xb6b   : > { %9914 = vmatprep.mubr.msk.bf16.mxu0 %vm923_vm6, %v8311_v51 }
 0xb72   : > { %9915 = vmatmul.mubr.msk.bf16.gmra.mrb[52].mxu0 %vm923_vm6, %v8313_v1 }
 0xb73   : > { %9918 = vmatprep.mubr.msk.bf16.mxu0 %vm923_vm6, %v8315_v37 }
 0xb7a   : > { %9919 = vmatmul.mubr.msk.bf16.gmra.mrb[56].mxu0 %vm923_vm6, %v8317_v46 }
 0xb7b   : > { %9926 = vmatprep.mubr.msk.bf16.mxu0 %vm923_vm6, %v12912_v35  ;;  %v8249_v35 = vpop.permute.xlu1 %8248 }
 0xb7c   : > { %v8321_v12 = vsel %vm6323_vm1, %v8285_v63, %v8249_v35 }
 0xb82   : > { %9927 = vmatmul.mubr.msk.bf16.vlgmr.msra.gmra.mrb[28].mxu0 %vm923_vm6, %v12932_v8 }
 0xb83   : > { %9930 = vmatprep.mubr.msk.bf16.mxu0 %vm923_vm6, %v12935_v30 }
 0xb8a   : > { %9931 = vmatmul.mubr.msk.bf16.gmra.mrb[32].mxu0 %vm923_vm6, %v12946_v4 }
 0xb8b   : > { %9934 = vmatprep.mubr.msk.bf16.mxu0 %vm923_vm6, %v12949_v34 }
 0xb92   : > { %9935 = vmatmul.mubr.msk.bf16.gmra.mrb[36].mxu0 %vm923_vm6, %v12960_v59 }
 0xb93   : > { %9938 = vmatprep.mubr.msk.bf16.mxu0 %vm923_vm6, %v12963_v50 }
 0xb9a   : > { %9939 = vmatmul.mubr.msk.bf16.gmra.mrb[40].mxu0 %vm923_vm6, %v12974_v0 }
 0xb9b   : > { %9942 = vmatprep.mubr.msk.bf16.mxu0 %vm923_vm6, %v12977_v54 }
 0xba2   : > { %9943 = vmatmul.mubr.msk.bf16.gmra.mrb[44].mxu0 %vm923_vm6, %v8309_v18 }
 0xba3   : > { %9946 = vmatprep.mubr.msk.bf16.mxu0 %vm923_vm6, %v8311_v51 }
 0xbaa   : > { %9947 = vmatmul.mubr.msk.bf16.gmra.mrb[48].mxu0 %vm923_vm6, %v8313_v1 }
 0xbab   : > { %9950 = vmatprep.mubr.msk.bf16.mxu0 %vm923_vm6, %v8315_v37 }
 0xbb2   : > { %9951 = vmatmul.mubr.msk.bf16.gmra.mrb[52].mxu0 %vm923_vm6, %v8317_v46 }
 0xbb3   : > { %9954 = vmatprep.mubr.msk.bf16.mxu0 %vm923_vm6, %v8319_v15 }
 0xbba   : > { %9955 = vmatmul.mubr.msk.bf16.gmra.mrb[56].mxu0 %vm923_vm6, %v8321_v12 }
 0xc55   : > { %v9928_v26 = vpop.f32.mrb[28].mxu0 }
 0xc56   : > { %v8926_v8 = vmul.f32 %v9928_v26, %v13073_v7  ;;  %v8759_v44 = vpop.f32.mrb[29].mxu0 }
 0xc57   : > { %v8924_v30 = vmul.f32 %v13073_v7, %v8759_v44  ;;  %v9929_v53 = vpop.f32.mrb[30].mxu0 }
 0xc58   : > { %v8964_v29 = vadd.f32 %v13078_v60, %v8926_v8  ;;  %v8927_v5 = vmul.f32 %v9929_v53, %v13073_v7  ;;  %v8762_v27 = vpop.f32.mrb[31].mxu0 }
 0xc59   : > { %v8962_v55 = vadd.f32 %v13078_v60, %v8924_v30  ;;  %v8925_v16 = vmul.f32 %v13073_v7, %v8762_v27 }
 0xc5a   : > { %v8996_v4 = vmax.f32 %v8964_v29, 0.0  ;;  %v8965_v34 = vadd.f32 %v13078_v60, %v8927_v5 }
 0xc5b   : > { %v8994_v9 = vmax.f32 %v8962_v55, 0.0  ;;  %v8963_v62 = vadd.f32 %v13078_v60, %v8925_v16 }
 0xc5c   : > { %9028 = vst.msk [vmem:[%s13088_s19 + $0x10] sm:$0xff] %vm940_vm11, %v8996_v4  ;;  %v8997_v19 = vmax.f32 %v8965_v34, 0.0 }
 0xc5d   : > { %9026 = vst.msk [vmem:[%s13088_s19] sm:$0xff] %vm940_vm11, %v8994_v9  ;;  %v8995_v36 = vmax.f32 %v8963_v62, 0.0  ;;  %v9932_v25 = vpop.f32.mrb[32].mxu0 }
 0xc5e   : > { %9029 = vst.msk [vmem:[%s13088_s19 + $0x18] sm:$0xff] %vm940_vm11, %v8997_v19  ;;  %v8930_v56 = vmul.f32 %v9932_v25, %v13073_v7  ;;  %v8775_v59 = vpop.f32.mrb[33].mxu0 }
 0xc5f   : > { %9027 = vst.msk [vmem:[%s13088_s19 + $0x8] sm:$0xff] %vm940_vm11, %v8995_v36  ;;  %v8928_v50 = vmul.f32 %v13073_v7, %v8775_v59  ;;  %v9933_v23 = vpop.f32.mrb[34].mxu0 }
 0xc60   : > { %v8968_v57 = vadd.f32 %v13078_v60, %v8930_v56  ;;  %v8931_v48 = vmul.f32 %v9933_v23, %v13073_v7  ;;  %v8778_v2 = vpop.f32.mrb[35].mxu0 }
 0xc61   : > { %v8966_v10 = vadd.f32 %v13078_v60, %v8928_v50  ;;  %v8929_v6 = vmul.f32 %v13073_v7, %v8778_v2 }
 0xc62   : > { %v9000_v0 = vmax.f32 %v8968_v57, 0.0  ;;  %v8969_v54 = vadd.f32 %v13078_v60, %v8931_v48 }
 0xc63   : > { %v8998_v21 = vmax.f32 %v8966_v10, 0.0  ;;  %v8967_v39 = vadd.f32 %v13078_v60, %v8929_v6 }
 0xc64   : > { %9032 = vst.msk [vmem:[%s13088_s19 + $0x30] sm:$0xff] %vm940_vm11, %v9000_v0  ;;  %v9001_v22 = vmax.f32 %v8969_v54, 0.0 }
 0xc65   : > { %9030 = vst.msk [vmem:[%s13088_s19 + $0x20] sm:$0xff] %vm940_vm11, %v8998_v21  ;;  %v8999_v32 = vmax.f32 %v8967_v39, 0.0  ;;  %v9936_v38 = vpop.f32.mrb[36].mxu0 }
 0xc66   : > { %9033 = vst.msk [vmem:[%s13088_s19 + $0x38] sm:$0xff] %vm940_vm11, %v9001_v22  ;;  %v8934_v45 = vmul.f32 %v9936_v38, %v13073_v7  ;;  %v8791_v18 = vpop.f32.mrb[37].mxu0 }
 0xc67   : > { %9031 = vst.msk [vmem:[%s13088_s19 + $0x28] sm:$0xff] %vm940_vm11, %v8999_v32  ;;  %v8932_v51 = vmul.f32 %v13073_v7, %v8791_v18  ;;  %v9937_v28 = vpop.f32.mrb[38].mxu0 }
 0xc68   : > { %v8972_v42 = vadd.f32 %v13078_v60, %v8934_v45  ;;  %v8935_v41 = vmul.f32 %v9937_v28, %v13073_v7  ;;  %v8794_v20 = vpop.f32.mrb[39].mxu0 }
 0xc69   : > { %v8970_v47 = vadd.f32 %v13078_v60, %v8932_v51  ;;  %v8933_v24 = vmul.f32 %v13073_v7, %v8794_v20 }
 0xc6a   : > { %v9004_v1 = vmax.f32 %v8972_v42, 0.0  ;;  %v8973_v37 = vadd.f32 %v13078_v60, %v8935_v41 }
 0xc6b   : > { %v9002_v61 = vmax.f32 %v8970_v47, 0.0  ;;  %v8971_v17 = vadd.f32 %v13078_v60, %v8933_v24 }
 0xc6c   : > { %9036 = vst.msk [vmem:[%s13088_s19 + $0x50] sm:$0xff] %vm940_vm11, %v9004_v1  ;;  %v9005_v31 = vmax.f32 %v8973_v37, 0.0 }
 0xc6d   : > { %9034 = vst.msk [vmem:[%s13088_s19 + $0x40] sm:$0xff] %vm940_vm11, %v9002_v61  ;;  %v9003_v49 = vmax.f32 %v8971_v17, 0.0  ;;  %v9940_v40 = vpop.f32.mrb[40].mxu0 }
 0xc6e   : > { %9037 = vst.msk [vmem:[%s13088_s19 + $0x58] sm:$0xff] %vm940_vm11, %v9005_v31  ;;  %v8938_v14 = vmul.f32 %v9940_v40, %v13073_v7  ;;  %v8807_v46 = vpop.f32.mrb[41].mxu0 }
 0xc6f   : > { %9035 = vst.msk [vmem:[%s13088_s19 + $0x48] sm:$0xff] %vm940_vm11, %v9003_v49  ;;  %v8936_v15 = vmul.f32 %v13073_v7, %v8807_v46  ;;  %v9941_v52 = vpop.f32.mrb[42].mxu0 }
 0xc70   : > { %v8976_v13 = vadd.f32 %v13078_v60, %v8938_v14  ;;  %v8939_v58 = vmul.f32 %v9941_v52, %v13073_v7  ;;  %v8810_v43 = vpop.f32.mrb[43].mxu0 }
 0xc71   : > { %v8974_v11 = vadd.f32 %v13078_v60, %v8936_v15  ;;  %v8937_v3 = vmul.f32 %v13073_v7, %v8810_v43 }
 0xc72   : > { %v9008_v33 = vmax.f32 %v8976_v13, 0.0  ;;  %v8977_v63 = vadd.f32 %v13078_v60, %v8939_v58 }
 0xc73   : > { %v9006_v35 = vmax.f32 %v8974_v11, 0.0  ;;  %v8975_v12 = vadd.f32 %v13078_v60, %v8937_v3 }
 0xc74   : > { %9040 = vst.msk [vmem:[%s13088_s19 + $0x70] sm:$0xff] %vm940_vm11, %v9008_v33  ;;  %v9009_v26 = vmax.f32 %v8977_v63, 0.0 }
 0xc75   : > { %9038 = vst.msk [vmem:[%s13088_s19 + $0x60] sm:$0xff] %vm940_vm11, %v9006_v35  ;;  %v9007_v8 = vmax.f32 %v8975_v12, 0.0  ;;  %v9944_v44 = vpop.f32.mrb[44].mxu0 }
 0xc76   : > { %9041 = vst.msk [vmem:[%s13088_s19 + $0x78] sm:$0xff] %vm940_vm11, %v9009_v26  ;;  %v8942_v30 = vmul.f32 %v9944_v44, %v13073_v7  ;;  %v8823_v53 = vpop.f32.mrb[45].mxu0 }
 0xc77   : > { %9039 = vst.msk [vmem:[%s13088_s19 + $0x68] sm:$0xff] %vm940_vm11, %v9007_v8  ;;  %v8940_v29 = vmul.f32 %v13073_v7, %v8823_v53  ;;  %v9945_v5 = vpop.f32.mrb[46].mxu0 }
 0xc78   : > { %v8980_v27 = vadd.f32 %v13078_v60, %v8942_v30  ;;  %v8943_v55 = vmul.f32 %v9945_v5, %v13073_v7  ;;  %v8826_v16 = vpop.f32.mrb[47].mxu0 }
 0xc79   : > { %v8978_v4 = vadd.f32 %v13078_v60, %v8940_v29  ;;  %v8941_v34 = vmul.f32 %v13073_v7, %v8826_v16 }
 0xc7a   : > { %v9012_v9 = vmax.f32 %v8980_v27, 0.0  ;;  %v8981_v62 = vadd.f32 %v13078_v60, %v8943_v55 }
 0xc7b   : > { %v9010_v19 = vmax.f32 %v8978_v4, 0.0  ;;  %v8979_v36 = vadd.f32 %v13078_v60, %v8941_v34 }
 0xc7c   : > { %9044 = vst.msk [vmem:[%s13088_s19 + $0x90] sm:$0xff] %vm940_vm11, %v9012_v9  ;;  %v9013_v25 = vmax.f32 %v8981_v62, 0.0 }
 0xc7d   : > { %9042 = vst.msk [vmem:[%s13088_s19 + $0x80] sm:$0xff] %vm940_vm11, %v9010_v19  ;;  %v9011_v56 = vmax.f32 %v8979_v36, 0.0  ;;  %v9948_v59 = vpop.f32.mrb[48].mxu0 }
 0xc7e   : > { %9045 = vst.msk [vmem:[%s13088_s19 + $0x98] sm:$0xff] %vm940_vm11, %v9013_v25  ;;  %v8946_v50 = vmul.f32 %v9948_v59, %v13073_v7  ;;  %v8839_v23 = vpop.f32.mrb[49].mxu0 }
 0xc7f   : > { %9043 = vst.msk [vmem:[%s13088_s19 + $0x88] sm:$0xff] %vm940_vm11, %v9011_v56  ;;  %v8944_v57 = vmul.f32 %v13073_v7, %v8839_v23  ;;  %v9949_v48 = vpop.f32.mrb[50].mxu0 }
 0xc80   : > { %v8984_v2 = vadd.f32 %v13078_v60, %v8946_v50  ;;  %v8947_v10 = vmul.f32 %v9949_v48, %v13073_v7  ;;  %v8842_v6 = vpop.f32.mrb[51].mxu0 }
 0xc81   : > { %v8982_v0 = vadd.f32 %v13078_v60, %v8944_v57  ;;  %v8945_v54 = vmul.f32 %v13073_v7, %v8842_v6 }
 0xc82   : > { %v9016_v21 = vmax.f32 %v8984_v2, 0.0  ;;  %v8985_v39 = vadd.f32 %v13078_v60, %v8947_v10 }
 0xc83   : > { %v9014_v22 = vmax.f32 %v8982_v0, 0.0  ;;  %v8983_v32 = vadd.f32 %v13078_v60, %v8945_v54 }
 0xc84   : > { %9048 = vst.msk [vmem:[%s13088_s19 + $0xb0] sm:$0xff] %vm940_vm11, %v9016_v21  ;;  %v9017_v38 = vmax.f32 %v8985_v39, 0.0 }
 0xc85   : > { %9046 = vst.msk [vmem:[%s13088_s19 + $0xa0] sm:$0xff] %vm940_vm11, %v9014_v22  ;;  %v9015_v45 = vmax.f32 %v8983_v32, 0.0  ;;  %v9952_v18 = vpop.f32.mrb[52].mxu0 }
 0xc86   : > { %9049 = vst.msk [vmem:[%s13088_s19 + $0xb8] sm:$0xff] %vm940_vm11, %v9017_v38  ;;  %v8950_v51 = vmul.f32 %v9952_v18, %v13073_v7  ;;  %v8855_v28 = vpop.f32.mrb[53].mxu0 }
 0xc87   : > { %9047 = vst.msk [vmem:[%s13088_s19 + $0xa8] sm:$0xff] %vm940_vm11, %v9015_v45  ;;  %v8948_v42 = vmul.f32 %v13073_v7, %v8855_v28  ;;  %v9953_v41 = vpop.f32.mrb[54].mxu0 }
 0xc88   : > { %v8988_v20 = vadd.f32 %v13078_v60, %v8950_v51  ;;  %v8951_v47 = vmul.f32 %v9953_v41, %v13073_v7  ;;  %v8858_v24 = vpop.f32.mrb[55].mxu0 }
 0xc89   : > { %v8986_v1 = vadd.f32 %v13078_v60, %v8948_v42  ;;  %v8949_v37 = vmul.f32 %v13073_v7, %v8858_v24 }
 0xc8a   : > { %v9020_v61 = vmax.f32 %v8988_v20, 0.0  ;;  %v8989_v17 = vadd.f32 %v13078_v60, %v8951_v47 }
 0xc8b   : > { %v9018_v31 = vmax.f32 %v8986_v1, 0.0  ;;  %v8987_v49 = vadd.f32 %v13078_v60, %v8949_v37 }
 0xc8c   : > { %9052 = vst.msk [vmem:[%s13088_s19 + $0xd0] sm:$0xff] %vm940_vm11, %v9020_v61  ;;  %v9021_v40 = vmax.f32 %v8989_v17, 0.0 }
 0xc8d   : > { %9050 = vst.msk [vmem:[%s13088_s19 + $0xc0] sm:$0xff] %vm940_vm11, %v9018_v31  ;;  %v9019_v14 = vmax.f32 %v8987_v49, 0.0  ;;  %v9956_v46 = vpop.f32.mrb[56].mxu0 }
 0xc8e   : > { %9053 = vst.msk [vmem:[%s13088_s19 + $0xd8] sm:$0xff] %vm940_vm11, %v9021_v40  ;;  %v8954_v15 = vmul.f32 %v9956_v46, %v13073_v7  ;;  %v8871_v52 = vpop.f32.mrb[57].mxu0 }
 0xc8f   : > { %9051 = vst.msk [vmem:[%s13088_s19 + $0xc8] sm:$0xff] %vm940_vm11, %v9019_v14  ;;  %v8952_v13 = vmul.f32 %v13073_v7, %v8871_v52  ;;  %v9957_v58 = vpop.f32.mrb[58].mxu0 }
 0xc90   : > { %v8992_v43 = vadd.f32 %v13078_v60, %v8954_v15  ;;  %v8955_v11 = vmul.f32 %v9957_v58, %v13073_v7  ;;  %v8874_v3 = vpop.f32.mrb[59].mxu0 }
 0xc91   : > { %v8990_v33 = vadd.f32 %v13078_v60, %v8952_v13  ;;  %v8953_v63 = vmul.f32 %v13073_v7, %v8874_v3 }
 0xc92   : > { %v9024_v35 = vmax.f32 %v8992_v43, 0.0  ;;  %v8993_v12 = vadd.f32 %v13078_v60, %v8955_v11 }
 0xc93   : > { %v9022_v26 = vmax.f32 %v8990_v33, 0.0  ;;  %v8991_v8 = vadd.f32 %v13078_v60, %v8953_v63 }
 0xc94   : > { %9056 = vst.msk [vmem:[%s13088_s19 + $0xf0] sm:$0xff] %vm940_vm11, %v9024_v35  ;;  %v9025_v44 = vmax.f32 %v8993_v12, 0.0 }
 0xc95   : > { %9054 = vst.msk [vmem:[%s13088_s19 + $0xe0] sm:$0xff] %vm940_vm11, %v9022_v26  ;;  %v9023_v30 = vmax.f32 %v8991_v8, 0.0 }
 0xc96   : > { %9057 = vst.msk [vmem:[%s13088_s19 + $0xf8] sm:$0xff] %vm940_vm11, %v9025_v44 }
 0xc97   : > { %9055 = vst.msk [vmem:[%s13088_s19 + $0xe8] sm:$0xff] %vm940_vm11, %v9023_v30 }
 0xc98 PF: > { %s30_s29 = sadd.s32 1, %s10548_s29  }
 0xc99   : > { %p27_p4 = scmp.ge.s32.totalorder %s30_s29, 4  }
 0xc9b   :  { %29 = sbr.rel (!%p27_p4) target bundleno = 4 (0x4), region = 129 }

</bundles_post_ra>
